<compile_context>
chip_gen: v6e
topology: v6e:2x2x1
jax: 0.10.0
libtpu: 0.0.40
codegen_flags: <defaults>
</compile_context>

<pallas_src>
import functools

import jax
import jax.numpy as jnp
from jax.experimental import pallas as pl
from jax.experimental.pallas import tpu as pltpu


def attention_block_kernel(x_ref, gavg_ref, gamma_ref, beta_ref,
                           wq_ref, wk_ref, wv_ref, bq_ref, bk_ref, bv_ref,
                           wp_ref, bproj_ref,
                           o_ref,
                           y_ref, k_ref, v_ref,
                           *, heads, eps, tq):
    HW, Cp = x_ref.shape                       # batch dim squeezed; Cp is lane-padded C

    # ---- per-batch shared work: GroupNorm + K/V, only on the first query tile ----
    @pl.when(pl.program_id(1) == 0)
    def _prep():
        x = x_ref[...]                                              # [HW, Cp] f32
        gavg = gavg_ref[...]                                        # [Cp, Cp] f32
        # two-pass GroupNorm statistics (f32): group mean, then centered variance
        chan_mean = jnp.mean(x, axis=0, keepdims=True)              # [1, Cp]
        g_mean = jnp.dot(chan_mean, gavg,
                         preferred_element_type=jnp.float32)        # [1, Cp] per-group mean
        xc = x - g_mean                                             # centered
        chan_var = jnp.mean(xc * xc, axis=0, keepdims=True)         # [1, Cp]
        g_var = jnp.dot(chan_var, gavg,
                        preferred_element_type=jnp.float32)         # [1, Cp] per-group var
        inv = jax.lax.rsqrt(g_var + eps)
        # fused affine: one FMA pass over the [HW, Cp] slab
        y = (xc * (inv * gamma_ref[...]) + beta_ref[...]).astype(jnp.bfloat16)
        y_ref[...] = y
        # K/V for all heads (head-major layout, no lane slicing); each iteration
        # ends in a scratch store so live ranges stay short.
        for h in range(heads):
            k_ref[h] = (jnp.dot(y, wk_ref[h], preferred_element_type=jnp.float32)
                        + bk_ref[h]).astype(jnp.bfloat16)           # [HW, dh]
            v_ref[h] = (jnp.dot(y, wv_ref[h], preferred_element_type=jnp.float32)
                        + bv_ref[h]).astype(jnp.bfloat16)           # [HW, dh]

    # ---- this query tile ----
    row = pl.multiple_of(pl.program_id(1) * tq, tq)
    yq = y_ref[pl.ds(row, tq), :]                                   # [tq, Cp] bf16

    def head_body(h, acc):
        # q for this head & tile; attention scale was folded into wq/bq at prep.
        qh = (jnp.dot(yq, wq_ref[h], preferred_element_type=jnp.float32)
              + bq_ref[h]).astype(jnp.bfloat16)                     # [tq, dh]
        # q @ k^T without materializing a transpose
        s = jax.lax.dot_general(qh, k_ref[h], (((1,), (1,)), ((), ())),
                                preferred_element_type=jnp.float32)  # [tq, HW]
        m = jnp.max(s, axis=-1, keepdims=True)
        p = jnp.exp(s - m)                                          # unnormalized probs
        denom = jnp.sum(p, axis=-1, keepdims=True)                  # [tq, 1]
        oh = jnp.dot(p.astype(jnp.bfloat16), v_ref[h],
                     preferred_element_type=jnp.float32)            # [tq, dh]
        # normalize after the PV matmul (cheapest place); exact reciprocal
        oh = oh * pl.reciprocal(denom, approx=False)
        # this head's contribution to the output projection
        return acc + jnp.dot(oh.astype(jnp.bfloat16), wp_ref[h],
                             preferred_element_type=jnp.float32)    # [tq, Cp]

    acc = jax.lax.fori_loop(0, heads, head_body,
                            jnp.zeros((tq, Cp), jnp.float32), unroll=True)

    # lane-dense [tq, Cp] store: projection bias + residual
    x_rows = x_ref[pl.ds(row, tq), :]                               # [tq, Cp] f32
    o_ref[...] = acc + bproj_ref[...] + x_rows


def _pick_tq(HW):
    """Largest query tile <= 256 dividing HW (bounds the [tq, HW] score tile)."""
    for t in (256, 128, 64, 32, 16, 8):
        if HW % t == 0:
            return min(t, HW)
    return HW


def prepare_params(gamma, beta, Wqkv, bqkv, Wproj, bproj, *, heads, num_groups=32):
    """Rearrange PyTorch-layout parameters into kernel-friendly layouts.

    gamma/beta: [C]; Wqkv: [3C, C]; bqkv: [3C]; Wproj: [C, C]; bproj: [C].
    Returns padded / head-split / bf16 operands (scale folded into Wq, bq).
    """
    C = gamma.shape[0]
    assert C % heads == 0 and C % num_groups == 0
    dh = C // heads
    scale = dh ** (-0.5)
    Cp = max(128, -(-C // 128) * 128)     # lane-pad channels when C < 128
    pad = Cp - C

    # Group-averaging matrix (zero in padded rows/cols): stats @ gavg -> group stats
    cpg = C // num_groups
    gid = jnp.arange(C) // cpg
    gavg = (gid[:, None] == gid[None, :]).astype(jnp.float32) / cpg
    gavg = jnp.pad(gavg, ((0, pad), (0, pad)))

    gamma_p = jnp.pad(gamma, (0, pad)).reshape(1, Cp).astype(jnp.float32)
    beta_p = jnp.pad(beta, (0, pad)).reshape(1, Cp).astype(jnp.float32)

    Wq, Wk, Wv = jnp.split(Wqkv, 3, axis=0)      # [C_out, C_in] each
    bq, bk, bv = jnp.split(bqkv, 3, axis=0)      # [C] each

    def head_w(Wm, s=1.0):
        # [C_out, C_in] -> [heads, Cp_in, dh] (per-head, input-major, input-padded)
        Wh = (s * Wm).reshape(heads, dh, C)
        Wh = jnp.transpose(Wh, (0, 2, 1))
        Wh = jnp.pad(Wh, ((0, 0), (0, pad), (0, 0)))
        return Wh.astype(jnp.bfloat16)

    def head_b(bm, s=1.0):
        return (s * bm).reshape(heads, 1, dh).astype(jnp.float32)

    wq3 = head_w(Wq, scale)      # attention scale folded into q weights/bias
    wk3 = head_w(Wk)
    wv3 = head_w(Wv)
    bq3 = head_b(bq, scale)
    bk3 = head_b(bk)
    bv3 = head_b(bv)

    # Wproj: [C_out, C_in] -> [heads, dh, Cp_out]
    wp3 = jnp.transpose(Wproj.reshape(C, heads, dh), (1, 2, 0))
    wp3 = jnp.pad(wp3, ((0, 0), (0, 0), (0, pad))).astype(jnp.bfloat16)
    bproj_p = jnp.pad(bproj, (0, pad)).reshape(1, Cp).astype(jnp.float32)

    return (gavg, gamma_p, beta_p, wq3, wk3, wv3, bq3, bk3, bv3, wp3, bproj_p)


def attention_block(x_nchw, params, *, heads):
    """x_nchw: [B, C, H, W] float32."""
    gavg, gamma_p, beta_p, wq3, wk3, wv3, bq3, bk3, bv3, wp3, bproj_p = params
    B, C, H, W = x_nchw.shape
    HW = H * W
    Cp = gamma_p.shape[-1]
    dh = wq3.shape[-1]
    tq = _pick_tq(HW)
    nqt = HW // tq

    xt = jnp.transpose(x_nchw.reshape(B, C, HW), (0, 2, 1))      # [B, HW, C]
    if Cp != C:
        xt = jnp.pad(xt, ((0, 0), (0, 0), (0, Cp - C)))          # lane-pad to Cp

    kernel = functools.partial(attention_block_kernel,
                               heads=heads, eps=1e-6, tq=tq)

    # VMEM budget: double-buffered IO blocks + weights + persistent scratch +
    # headroom for live intermediates; floor at the 32 MiB default scoped limit,
    # cap at 56 MiB (within v7x's 64 MiB physical VMEM).
    f32b, bf16b = 4, 2
    blocks = 2 * (HW * Cp * f32b) + 2 * (tq * Cp * f32b)                  # x + out, 2-deep
    weights = 2 * (Cp * Cp * f32b + 3 * Cp * f32b
                   + 3 * heads * Cp * dh * bf16b + 3 * heads * dh * f32b
                   + heads * dh * Cp * bf16b + Cp * f32b)
    scratch = HW * Cp * bf16b + 2 * heads * HW * dh * bf16b
    live = 2 * HW * Cp * f32b + 4 * tq * HW * f32b + 6 * tq * Cp * f32b
    vmem_limit = int(min(max(blocks + weights + scratch + live,
                             32 * 1024 * 1024), 56 * 1024 * 1024))

    flops = B * (8 * HW * Cp + 8 * HW * Cp * C + 4 * HW * HW * C)
    ce = pl.CostEstimate(flops=int(flops),
                         transcendentals=int(B * heads * HW * HW),
                         bytes_accessed=int(B * 2 * HW * Cp * 4))

    out = pl.pallas_call(
        kernel,
        out_shape=jax.ShapeDtypeStruct((B, HW, Cp), jnp.float32),
        grid_spec=pltpu.PrefetchScalarGridSpec(
            num_scalar_prefetch=0,
            grid=(B, nqt),
            in_specs=[
                pl.BlockSpec((pl.Squeezed(), HW, Cp), lambda b, q: (b, 0, 0)),   # x
                pl.BlockSpec((Cp, Cp), lambda b, q: (0, 0)),          # group-avg (f32)
                pl.BlockSpec((1, Cp), lambda b, q: (0, 0)),           # gamma
                pl.BlockSpec((1, Cp), lambda b, q: (0, 0)),           # beta
                pl.BlockSpec((heads, Cp, dh), lambda b, q: (0, 0, 0)),  # Wq (scaled, bf16)
                pl.BlockSpec((heads, Cp, dh), lambda b, q: (0, 0, 0)),  # Wk (bf16)
                pl.BlockSpec((heads, Cp, dh), lambda b, q: (0, 0, 0)),  # Wv (bf16)
                pl.BlockSpec((heads, 1, dh), lambda b, q: (0, 0, 0)),   # bq (scaled)
                pl.BlockSpec((heads, 1, dh), lambda b, q: (0, 0, 0)),   # bk
                pl.BlockSpec((heads, 1, dh), lambda b, q: (0, 0, 0)),   # bv
                pl.BlockSpec((heads, dh, Cp), lambda b, q: (0, 0, 0)),  # Wproj (bf16)
                pl.BlockSpec((1, Cp), lambda b, q: (0, 0)),             # bproj
            ],
            out_specs=pl.BlockSpec((pl.Squeezed(), tq, Cp), lambda b, q: (b, q, 0)),
            scratch_shapes=[
                pltpu.VMEM((HW, Cp), jnp.bfloat16),          # normalized y
                pltpu.VMEM((heads, HW, dh), jnp.bfloat16),   # K (head-major)
                pltpu.VMEM((heads, HW, dh), jnp.bfloat16),   # V (head-major)
            ],
        ),
        compiler_params=pltpu.CompilerParams(
            dimension_semantics=("parallel", "arbitrary"),
            vmem_limit_bytes=vmem_limit),
        cost_estimate=ce,
    )(xt, gavg, gamma_p, beta_p, wq3, wk3, wv3, bq3, bk3, bv3, wp3, bproj_p)

    out = out[:, :, :C] if Cp != C else out
    return jnp.transpose(out, (0, 2, 1)).reshape(B, C, H, W)


def ref_attention_block(x, gamma, beta, Wqkv, bqkv, Wproj, bproj,
                        *, heads, num_groups=32, eps=1e-6):
    """Pure-JAX f32 reference mirroring the PyTorch forward."""
    B, C, H, W = x.shape
    HW = H * W
    cpg = C // num_groups
    xr = x.reshape(B, num_groups, cpg * HW)
    mean = xr.mean(axis=-1, keepdims=True)
    var = ((xr - mean) ** 2).mean(axis=-1, keepdims=True)
    y = (xr - mean) / jnp.sqrt(var + eps)
    y = y.reshape(B, C, HW) * gamma[None, :, None] + beta[None, :, None]

    qkv = jnp.einsum('oc,bcl->bol', Wqkv, y) + bqkv[None, :, None]
    q, k, v = jnp.split(qkv, 3, axis=1)
    dh = C // heads

    def to_heads(t):  # [B, C, HW] -> [B, h, HW, dh]
        return jnp.transpose(t.reshape(B, heads, dh, HW), (0, 1, 3, 2))

    q, k, v = map(to_heads, (q, k, v))
    attn = jnp.einsum('bhqd,bhkd->bhqk', q, k) * (dh ** (-0.5))
    attn = jax.nn.softmax(attn, axis=-1)
    out = jnp.einsum('bhqk,bhkd->bhqd', attn, v)
    out = jnp.transpose(out, (0, 1, 3, 2)).reshape(B, C, HW)
    out = jnp.einsum('oc,bcl->bol', Wproj, out) + bproj[None, :, None]
    return out.reshape(B, C, H, W) + x


if __name__ == "__main__":
    # GroupNorm(32 groups) requires C % 32 == 0: C=64, heads=4 (dim_head=16),
    # spatial 8x8, batch 2.
    B, C, H, W = 2, 64, 8, 8
    HEADS = 4
    NUM_GROUPS = 32

    key = jax.random.PRNGKey(0)
    kx, kg, kb, kw1, kb1, kw2, kb2 = jax.random.split(key, 7)

    x = jax.random.normal(kx, (B, C, H, W), dtype=jnp.float32)

    # Deterministic synthetic parameters (module __init__ gives the shapes).
    gamma = 1.0 + 0.1 * jax.random.normal(kg, (C,), dtype=jnp.float32)
    beta = 0.1 * jax.random.normal(kb, (C,), dtype=jnp.float32)
    Wqkv = 0.05 * jax.random.normal(kw1, (3 * C, C), dtype=jnp.float32)   # Conv1d(C,3C,1)
    bqkv = 0.05 * jax.random.normal(kb1, (3 * C,), dtype=jnp.float32)
    Wproj = 0.05 * jax.random.normal(kw2, (C, C), dtype=jnp.float32)      # Conv1d(C,C,1)
    bproj = 0.05 * jax.random.normal(kb2, (C,), dtype=jnp.float32)

    params = prepare_params(gamma, beta, Wqkv, bqkv, Wproj, bproj,
                            heads=HEADS, num_groups=NUM_GROUPS)

    out = attention_block(x, params, heads=HEADS)
    out = jax.block_until_ready(out)

    ref = ref_attention_block(x, gamma, beta, Wqkv, bqkv, Wproj, bproj,
                              heads=HEADS, num_groups=NUM_GROUPS)
    assert out.shape == (B, C, H, W)
    # bf16 MXU operands with f32 accumulation -> widened tolerance vs f32 reference.
    max_err = jnp.max(jnp.abs(out - ref))
    assert jnp.allclose(out, ref, atol=5e-2, rtol=5e-2), f"max abs err {max_err}"

    print("KERNEL_OK")
</pallas_src>

<mosaic_0001>
module attributes {stable_mosaic.version = 11 : i64} {
  func.func @attention_block_kernel(%arg0: i32, %arg1: i32, %arg2: memref<1x64x128xf32, #tpu.memory_space<vmem>>, %arg3: memref<128x128xf32, #tpu.memory_space<vmem>>, %arg4: memref<1x128xf32, #tpu.memory_space<vmem>>, %arg5: memref<1x128xf32, #tpu.memory_space<vmem>>, %arg6: memref<4x128x16xbf16, #tpu.memory_space<vmem>>, %arg7: memref<4x128x16xbf16, #tpu.memory_space<vmem>>, %arg8: memref<4x128x16xbf16, #tpu.memory_space<vmem>>, %arg9: memref<4x1x16xf32, #tpu.memory_space<vmem>>, %arg10: memref<4x1x16xf32, #tpu.memory_space<vmem>>, %arg11: memref<4x1x16xf32, #tpu.memory_space<vmem>>, %arg12: memref<4x16x128xbf16, #tpu.memory_space<vmem>>, %arg13: memref<1x128xf32, #tpu.memory_space<vmem>>, %arg14: memref<1x64x128xf32, #tpu.memory_space<vmem>>, %arg15: memref<64x128xbf16, #tpu.memory_space<vmem>>, %arg16: memref<4x64x16xbf16, #tpu.memory_space<vmem>>, %arg17: memref<4x64x16xbf16, #tpu.memory_space<vmem>>) attributes {dimension_semantics = [#tpu.dimension_semantics<parallel>, #tpu.dimension_semantics<arbitrary>], iteration_bounds = array<i64: 2, 1>, scalar_prefetch = 0 : i64, scratch_operands = 3 : i64, tpu.core_type = #tpu.core_type<tc>, window_params = [{transform_indices = @transform_0, window_bounds = array<i64: 1, 64, 128>}, {pipeline_mode = #tpu.pipeline_mode<synchronous>, transform_indices = @transform_1, window_bounds = array<i64: 128, 128>}, {pipeline_mode = #tpu.pipeline_mode<synchronous>, transform_indices = @transform_2, window_bounds = array<i64: 1, 128>}, {pipeline_mode = #tpu.pipeline_mode<synchronous>, transform_indices = @transform_3, window_bounds = array<i64: 1, 128>}, {pipeline_mode = #tpu.pipeline_mode<synchronous>, transform_indices = @transform_4, window_bounds = array<i64: 4, 128, 16>}, {pipeline_mode = #tpu.pipeline_mode<synchronous>, transform_indices = @transform_5, window_bounds = array<i64: 4, 128, 16>}, {pipeline_mode = #tpu.pipeline_mode<synchronous>, transform_indices = @transform_6, window_bounds = array<i64: 4, 128, 16>}, {pipeline_mode = #tpu.pipeline_mode<synchronous>, transform_indices = @transform_7, window_bounds = array<i64: 4, 1, 16>}, {pipeline_mode = #tpu.pipeline_mode<synchronous>, transform_indices = @transform_8, window_bounds = array<i64: 4, 1, 16>}, {pipeline_mode = #tpu.pipeline_mode<synchronous>, transform_indices = @transform_9, window_bounds = array<i64: 4, 1, 16>}, {pipeline_mode = #tpu.pipeline_mode<synchronous>, transform_indices = @transform_10, window_bounds = array<i64: 4, 16, 128>}, {pipeline_mode = #tpu.pipeline_mode<synchronous>, transform_indices = @transform_11, window_bounds = array<i64: 1, 128>}, {transform_indices = @transform_12, window_bounds = array<i64: 1, 64, 128>}]} {
    %c0_i32 = arith.constant 0 : i32
    %0 = arith.cmpi eq, %arg1, %c0_i32 : i32
    %1 = arith.extui %0 : i1 to i32
    %c0_i32_0 = arith.constant 0 : i32
    %2 = arith.cmpi ne, %1, %c0_i32_0 : i32
    scf.if %2 {
      %c0_73 = arith.constant 0 : index
      %c0_74 = arith.constant 0 : index
      %c0_75 = arith.constant 0 : index
      %158 = vector.load %arg2[%c0_73, %c0_74, %c0_75] : memref<1x64x128xf32, #tpu.memory_space<vmem>>, vector<1x64x128xf32>
      %159 = vector.shape_cast %158 : vector<1x64x128xf32> to vector<64x128xf32>
      %c0_76 = arith.constant 0 : index
      %c0_77 = arith.constant 0 : index
      %160 = vector.load %arg3[%c0_76, %c0_77] : memref<128x128xf32, #tpu.memory_space<vmem>>, vector<128x128xf32>
      %cst_78 = arith.constant dense<0.000000e+00> : vector<128xf32>
      %161 = vector.multi_reduction <add>, %159, %cst_78 [0] : vector<64x128xf32> to vector<128xf32>
      %162 = vector.shape_cast %161 : vector<128xf32> to vector<1x128xf32>
      %cst_79 = arith.constant 6.400000e+01 : f32
      %163 = vector.broadcast %cst_79 : f32 to vector<1x128xf32>
      %164 = arith.divf %162, %163 : vector<1x128xf32>
      %cst_80 = arith.constant dense<0.000000e+00> : vector<1x128xf32>
      %165 = tpu.matmul %164, %160, %cst_80 {dimension_numbers = #tpu.dot_dimension_numbers<[1], [0], [0], [1], [0, 0, 1, 1], [], []>} : vector<1x128xf32>, vector<128x128xf32>, vector<1x128xf32> -> vector<1x128xf32>
      %166 = vector.broadcast %165 : vector<1x128xf32> to vector<64x128xf32>
      %167 = arith.subf %159, %166 : vector<64x128xf32>
      %168 = arith.mulf %167, %167 : vector<64x128xf32>
      %cst_81 = arith.constant dense<0.000000e+00> : vector<128xf32>
      %169 = vector.multi_reduction <add>, %168, %cst_81 [0] : vector<64x128xf32> to vector<128xf32>
      %170 = vector.shape_cast %169 : vector<128xf32> to vector<1x128xf32>
      %cst_82 = arith.constant 6.400000e+01 : f32
      %171 = vector.broadcast %cst_82 : f32 to vector<1x128xf32>
      %172 = arith.divf %170, %171 : vector<1x128xf32>
      %cst_83 = arith.constant dense<0.000000e+00> : vector<1x128xf32>
      %173 = tpu.matmul %172, %160, %cst_83 {dimension_numbers = #tpu.dot_dimension_numbers<[1], [0], [0], [1], [0, 0, 1, 1], [], []>} : vector<1x128xf32>, vector<128x128xf32>, vector<1x128xf32> -> vector<1x128xf32>
      %cst_84 = arith.constant 9.99999997E-7 : f32
      %174 = vector.broadcast %cst_84 : f32 to vector<1x128xf32>
      %175 = arith.addf %173, %174 : vector<1x128xf32>
      %176 = math.rsqrt %175 : vector<1x128xf32>
      %c0_85 = arith.constant 0 : index
      %c0_86 = arith.constant 0 : index
      %177 = vector.load %arg4[%c0_85, %c0_86] : memref<1x128xf32, #tpu.memory_space<vmem>>, vector<1x128xf32>
      %178 = arith.mulf %176, %177 : vector<1x128xf32>
      %179 = vector.broadcast %178 : vector<1x128xf32> to vector<64x128xf32>
      %180 = arith.mulf %167, %179 : vector<64x128xf32>
      %c0_87 = arith.constant 0 : index
      %c0_88 = arith.constant 0 : index
      %181 = vector.load %arg5[%c0_87, %c0_88] : memref<1x128xf32, #tpu.memory_space<vmem>>, vector<1x128xf32>
      %182 = vector.broadcast %181 : vector<1x128xf32> to vector<64x128xf32>
      %183 = arith.addf %180, %182 : vector<64x128xf32>
      %184 = arith.truncf %183 : vector<64x128xf32> to vector<64x128xbf16>
      %c0_89 = arith.constant 0 : index
      %c0_90 = arith.constant 0 : index
      %185 = vector.load %arg15[%c0_89, %c0_90] : memref<64x128xbf16, #tpu.memory_space<vmem>>, vector<64x128xbf16>
      tpu.vector_store %arg15[%c0_89, %c0_90], %184 {strides = array<i32>} : memref<64x128xbf16, #tpu.memory_space<vmem>>, vector<64x128xbf16>,
      %c0_91 = arith.constant 0 : index
      %c0_92 = arith.constant 0 : index
      %c0_93 = arith.constant 0 : index
      %186 = vector.load %arg7[%c0_91, %c0_92, %c0_93] : memref<4x128x16xbf16, #tpu.memory_space<vmem>>, vector<1x128x16xbf16>
      %187 = vector.shape_cast %186 : vector<1x128x16xbf16> to vector<128x16xbf16>
      %cst_94 = arith.constant dense<0.000000e+00> : vector<64x16xf32>
      %188 = tpu.matmul %184, %187, %cst_94 {dimension_numbers = #tpu.dot_dimension_numbers<[1], [0], [0], [1], [0, 0, 1, 1], [], []>} : vector<64x128xbf16>, vector<128x16xbf16>, vector<64x16xf32> -> vector<64x16xf32>
      %c0_95 = arith.constant 0 : index
      %c0_96 = arith.constant 0 : index
      %c0_97 = arith.constant 0 : index
      %189 = vector.load %arg10[%c0_95, %c0_96, %c0_97] : memref<4x1x16xf32, #tpu.memory_space<vmem>>, vector<1x1x16xf32>
      %190 = vector.shape_cast %189 : vector<1x1x16xf32> to vector<1x16xf32>
      %191 = vector.broadcast %190 : vector<1x16xf32> to vector<64x16xf32>
      %192 = arith.addf %188, %191 : vector<64x16xf32>
      %193 = arith.truncf %192 : vector<64x16xf32> to vector<64x16xbf16>
      %c0_98 = arith.constant 0 : index
      %c0_99 = arith.constant 0 : index
      %c0_100 = arith.constant 0 : index
      %194 = vector.load %arg16[%c0_98, %c0_99, %c0_100] : memref<4x64x16xbf16, #tpu.memory_space<vmem>>, vector<1x64x16xbf16>
      %195 = vector.shape_cast %194 : vector<1x64x16xbf16> to vector<64x16xbf16>
      %196 = vector.shape_cast %193 : vector<64x16xbf16> to vector<1x64x16xbf16>
      tpu.vector_store %arg16[%c0_98, %c0_99, %c0_100], %196 {strides = array<i32>} : memref<4x64x16xbf16, #tpu.memory_space<vmem>>, vector<1x64x16xbf16>,
      %c0_101 = arith.constant 0 : index
      %c0_102 = arith.constant 0 : index
      %c0_103 = arith.constant 0 : index
      %197 = vector.load %arg8[%c0_101, %c0_102, %c0_103] : memref<4x128x16xbf16, #tpu.memory_space<vmem>>, vector<1x128x16xbf16>
      %198 = vector.shape_cast %197 : vector<1x128x16xbf16> to vector<128x16xbf16>
      %cst_104 = arith.constant dense<0.000000e+00> : vector<64x16xf32>
      %199 = tpu.matmul %184, %198, %cst_104 {dimension_numbers = #tpu.dot_dimension_numbers<[1], [0], [0], [1], [0, 0, 1, 1], [], []>} : vector<64x128xbf16>, vector<128x16xbf16>, vector<64x16xf32> -> vector<64x16xf32>
      %c0_105 = arith.constant 0 : index
      %c0_106 = arith.constant 0 : index
      %c0_107 = arith.constant 0 : index
      %200 = vector.load %arg11[%c0_105, %c0_106, %c0_107] : memref<4x1x16xf32, #tpu.memory_space<vmem>>, vector<1x1x16xf32>
      %201 = vector.shape_cast %200 : vector<1x1x16xf32> to vector<1x16xf32>
      %202 = vector.broadcast %201 : vector<1x16xf32> to vector<64x16xf32>
      %203 = arith.addf %199, %202 : vector<64x16xf32>
      %204 = arith.truncf %203 : vector<64x16xf32> to vector<64x16xbf16>
      %c0_108 = arith.constant 0 : index
      %c0_109 = arith.constant 0 : index
      %c0_110 = arith.constant 0 : index
      %205 = vector.load %arg17[%c0_108, %c0_109, %c0_110] : memref<4x64x16xbf16, #tpu.memory_space<vmem>>, vector<1x64x16xbf16>
      %206 = vector.shape_cast %205 : vector<1x64x16xbf16> to vector<64x16xbf16>
      %207 = vector.shape_cast %204 : vector<64x16xbf16> to vector<1x64x16xbf16>
      tpu.vector_store %arg17[%c0_108, %c0_109, %c0_110], %207 {strides = array<i32>} : memref<4x64x16xbf16, #tpu.memory_space<vmem>>, vector<1x64x16xbf16>,
      %c1 = arith.constant 1 : index
      %c0_111 = arith.constant 0 : index
      %c0_112 = arith.constant 0 : index
      %208 = vector.load %arg7[%c1, %c0_111, %c0_112] : memref<4x128x16xbf16, #tpu.memory_space<vmem>>, vector<1x128x16xbf16>
      %209 = vector.shape_cast %208 : vector<1x128x16xbf16> to vector<128x16xbf16>
      %cst_113 = arith.constant dense<0.000000e+00> : vector<64x16xf32>
      %210 = tpu.matmul %184, %209, %cst_113 {dimension_numbers = #tpu.dot_dimension_numbers<[1], [0], [0], [1], [0, 0, 1, 1], [], []>} : vector<64x128xbf16>, vector<128x16xbf16>, vector<64x16xf32> -> vector<64x16xf32>
      %c1_114 = arith.constant 1 : index
      %c0_115 = arith.constant 0 : index
      %c0_116 = arith.constant 0 : index
      %211 = vector.load %arg10[%c1_114, %c0_115, %c0_116] : memref<4x1x16xf32, #tpu.memory_space<vmem>>, vector<1x1x16xf32>
      %212 = vector.shape_cast %211 : vector<1x1x16xf32> to vector<1x16xf32>
      %213 = vector.broadcast %212 : vector<1x16xf32> to vector<64x16xf32>
      %214 = arith.addf %210, %213 : vector<64x16xf32>
      %215 = arith.truncf %214 : vector<64x16xf32> to vector<64x16xbf16>
      %c1_117 = arith.constant 1 : index
      %c0_118 = arith.constant 0 : index
      %c0_119 = arith.constant 0 : index
      %216 = vector.load %arg16[%c1_117, %c0_118, %c0_119] : memref<4x64x16xbf16, #tpu.memory_space<vmem>>, vector<1x64x16xbf16>
      %217 = vector.shape_cast %216 : vector<1x64x16xbf16> to vector<64x16xbf16>
      %218 = vector.shape_cast %215 : vector<64x16xbf16> to vector<1x64x16xbf16>
      tpu.vector_store %arg16[%c1_117, %c0_118, %c0_119], %218 {strides = array<i32>} : memref<4x64x16xbf16, #tpu.memory_space<vmem>>, vector<1x64x16xbf16>,
      %c1_120 = arith.constant 1 : index
      %c0_121 = arith.constant 0 : index
      %c0_122 = arith.constant 0 : index
      %219 = vector.load %arg8[%c1_120, %c0_121, %c0_122] : memref<4x128x16xbf16, #tpu.memory_space<vmem>>, vector<1x128x16xbf16>
      %220 = vector.shape_cast %219 : vector<1x128x16xbf16> to vector<128x16xbf16>
      %cst_123 = arith.constant dense<0.000000e+00> : vector<64x16xf32>
      %221 = tpu.matmul %184, %220, %cst_123 {dimension_numbers = #tpu.dot_dimension_numbers<[1], [0], [0], [1], [0, 0, 1, 1], [], []>} : vector<64x128xbf16>, vector<128x16xbf16>, vector<64x16xf32> -> vector<64x16xf32>
      %c1_124 = arith.constant 1 : index
      %c0_125 = arith.constant 0 : index
      %c0_126 = arith.constant 0 : index
      %222 = vector.load %arg11[%c1_124, %c0_125, %c0_126] : memref<4x1x16xf32, #tpu.memory_space<vmem>>, vector<1x1x16xf32>
      %223 = vector.shape_cast %222 : vector<1x1x16xf32> to vector<1x16xf32>
      %224 = vector.broadcast %223 : vector<1x16xf32> to vector<64x16xf32>
      %225 = arith.addf %221, %224 : vector<64x16xf32>
      %226 = arith.truncf %225 : vector<64x16xf32> to vector<64x16xbf16>
      %c1_127 = arith.constant 1 : index
      %c0_128 = arith.constant 0 : index
      %c0_129 = arith.constant 0 : index
      %227 = vector.load %arg17[%c1_127, %c0_128, %c0_129] : memref<4x64x16xbf16, #tpu.memory_space<vmem>>, vector<1x64x16xbf16>
      %228 = vector.shape_cast %227 : vector<1x64x16xbf16> to vector<64x16xbf16>
      %229 = vector.shape_cast %226 : vector<64x16xbf16> to vector<1x64x16xbf16>
      tpu.vector_store %arg17[%c1_127, %c0_128, %c0_129], %229 {strides = array<i32>} : memref<4x64x16xbf16, #tpu.memory_space<vmem>>, vector<1x64x16xbf16>,
      %c2 = arith.constant 2 : index
      %c0_130 = arith.constant 0 : index
      %c0_131 = arith.constant 0 : index
      %230 = vector.load %arg7[%c2, %c0_130, %c0_131] : memref<4x128x16xbf16, #tpu.memory_space<vmem>>, vector<1x128x16xbf16>
      %231 = vector.shape_cast %230 : vector<1x128x16xbf16> to vector<128x16xbf16>
      %cst_132 = arith.constant dense<0.000000e+00> : vector<64x16xf32>
      %232 = tpu.matmul %184, %231, %cst_132 {dimension_numbers = #tpu.dot_dimension_numbers<[1], [0], [0], [1], [0, 0, 1, 1], [], []>} : vector<64x128xbf16>, vector<128x16xbf16>, vector<64x16xf32> -> vector<64x16xf32>
      %c2_133 = arith.constant 2 : index
      %c0_134 = arith.constant 0 : index
      %c0_135 = arith.constant 0 : index
      %233 = vector.load %arg10[%c2_133, %c0_134, %c0_135] : memref<4x1x16xf32, #tpu.memory_space<vmem>>, vector<1x1x16xf32>
      %234 = vector.shape_cast %233 : vector<1x1x16xf32> to vector<1x16xf32>
      %235 = vector.broadcast %234 : vector<1x16xf32> to vector<64x16xf32>
      %236 = arith.addf %232, %235 : vector<64x16xf32>
      %237 = arith.truncf %236 : vector<64x16xf32> to vector<64x16xbf16>
      %c2_136 = arith.constant 2 : index
      %c0_137 = arith.constant 0 : index
      %c0_138 = arith.constant 0 : index
      %238 = vector.load %arg16[%c2_136, %c0_137, %c0_138] : memref<4x64x16xbf16, #tpu.memory_space<vmem>>, vector<1x64x16xbf16>
      %239 = vector.shape_cast %238 : vector<1x64x16xbf16> to vector<64x16xbf16>
      %240 = vector.shape_cast %237 : vector<64x16xbf16> to vector<1x64x16xbf16>
      tpu.vector_store %arg16[%c2_136, %c0_137, %c0_138], %240 {strides = array<i32>} : memref<4x64x16xbf16, #tpu.memory_space<vmem>>, vector<1x64x16xbf16>,
      %c2_139 = arith.constant 2 : index
      %c0_140 = arith.constant 0 : index
      %c0_141 = arith.constant 0 : index
      %241 = vector.load %arg8[%c2_139, %c0_140, %c0_141] : memref<4x128x16xbf16, #tpu.memory_space<vmem>>, vector<1x128x16xbf16>
      %242 = vector.shape_cast %241 : vector<1x128x16xbf16> to vector<128x16xbf16>
      %cst_142 = arith.constant dense<0.000000e+00> : vector<64x16xf32>
      %243 = tpu.matmul %184, %242, %cst_142 {dimension_numbers = #tpu.dot_dimension_numbers<[1], [0], [0], [1], [0, 0, 1, 1], [], []>} : vector<64x128xbf16>, vector<128x16xbf16>, vector<64x16xf32> -> vector<64x16xf32>
      %c2_143 = arith.constant 2 : index
      %c0_144 = arith.constant 0 : index
      %c0_145 = arith.constant 0 : index
      %244 = vector.load %arg11[%c2_143, %c0_144, %c0_145] : memref<4x1x16xf32, #tpu.memory_space<vmem>>, vector<1x1x16xf32>
      %245 = vector.shape_cast %244 : vector<1x1x16xf32> to vector<1x16xf32>
      %246 = vector.broadcast %245 : vector<1x16xf32> to vector<64x16xf32>
      %247 = arith.addf %243, %246 : vector<64x16xf32>
      %248 = arith.truncf %247 : vector<64x16xf32> to vector<64x16xbf16>
      %c2_146 = arith.constant 2 : index
      %c0_147 = arith.constant 0 : index
      %c0_148 = arith.constant 0 : index
      %249 = vector.load %arg17[%c2_146, %c0_147, %c0_148] : memref<4x64x16xbf16, #tpu.memory_space<vmem>>, vector<1x64x16xbf16>
      %250 = vector.shape_cast %249 : vector<1x64x16xbf16> to vector<64x16xbf16>
      %251 = vector.shape_cast %248 : vector<64x16xbf16> to vector<1x64x16xbf16>
      tpu.vector_store %arg17[%c2_146, %c0_147, %c0_148], %251 {strides = array<i32>} : memref<4x64x16xbf16, #tpu.memory_space<vmem>>, vector<1x64x16xbf16>,
      %c3 = arith.constant 3 : index
      %c0_149 = arith.constant 0 : index
      %c0_150 = arith.constant 0 : index
      %252 = vector.load %arg7[%c3, %c0_149, %c0_150] : memref<4x128x16xbf16, #tpu.memory_space<vmem>>, vector<1x128x16xbf16>
      %253 = vector.shape_cast %252 : vector<1x128x16xbf16> to vector<128x16xbf16>
      %cst_151 = arith.constant dense<0.000000e+00> : vector<64x16xf32>
      %254 = tpu.matmul %184, %253, %cst_151 {dimension_numbers = #tpu.dot_dimension_numbers<[1], [0], [0], [1], [0, 0, 1, 1], [], []>} : vector<64x128xbf16>, vector<128x16xbf16>, vector<64x16xf32> -> vector<64x16xf32>
      %c3_152 = arith.constant 3 : index
      %c0_153 = arith.constant 0 : index
      %c0_154 = arith.constant 0 : index
      %255 = vector.load %arg10[%c3_152, %c0_153, %c0_154] : memref<4x1x16xf32, #tpu.memory_space<vmem>>, vector<1x1x16xf32>
      %256 = vector.shape_cast %255 : vector<1x1x16xf32> to vector<1x16xf32>
      %257 = vector.broadcast %256 : vector<1x16xf32> to vector<64x16xf32>
      %258 = arith.addf %254, %257 : vector<64x16xf32>
      %259 = arith.truncf %258 : vector<64x16xf32> to vector<64x16xbf16>
      %c3_155 = arith.constant 3 : index
      %c0_156 = arith.constant 0 : index
      %c0_157 = arith.constant 0 : index
      %260 = vector.load %arg16[%c3_155, %c0_156, %c0_157] : memref<4x64x16xbf16, #tpu.memory_space<vmem>>, vector<1x64x16xbf16>
      %261 = vector.shape_cast %260 : vector<1x64x16xbf16> to vector<64x16xbf16>
      %262 = vector.shape_cast %259 : vector<64x16xbf16> to vector<1x64x16xbf16>
      tpu.vector_store %arg16[%c3_155, %c0_156, %c0_157], %262 {strides = array<i32>} : memref<4x64x16xbf16, #tpu.memory_space<vmem>>, vector<1x64x16xbf16>,
      %c3_158 = arith.constant 3 : index
      %c0_159 = arith.constant 0 : index
      %c0_160 = arith.constant 0 : index
      %263 = vector.load %arg8[%c3_158, %c0_159, %c0_160] : memref<4x128x16xbf16, #tpu.memory_space<vmem>>, vector<1x128x16xbf16>
      %264 = vector.shape_cast %263 : vector<1x128x16xbf16> to vector<128x16xbf16>
      %cst_161 = arith.constant dense<0.000000e+00> : vector<64x16xf32>
      %265 = tpu.matmul %184, %264, %cst_161 {dimension_numbers = #tpu.dot_dimension_numbers<[1], [0], [0], [1], [0, 0, 1, 1], [], []>} : vector<64x128xbf16>, vector<128x16xbf16>, vector<64x16xf32> -> vector<64x16xf32>
      %c3_162 = arith.constant 3 : index
      %c0_163 = arith.constant 0 : index
      %c0_164 = arith.constant 0 : index
      %266 = vector.load %arg11[%c3_162, %c0_163, %c0_164] : memref<4x1x16xf32, #tpu.memory_space<vmem>>, vector<1x1x16xf32>
      %267 = vector.shape_cast %266 : vector<1x1x16xf32> to vector<1x16xf32>
      %268 = vector.broadcast %267 : vector<1x16xf32> to vector<64x16xf32>
      %269 = arith.addf %265, %268 : vector<64x16xf32>
      %270 = arith.truncf %269 : vector<64x16xf32> to vector<64x16xbf16>
      %c3_165 = arith.constant 3 : index
      %c0_166 = arith.constant 0 : index
      %c0_167 = arith.constant 0 : index
      %271 = vector.load %arg17[%c3_165, %c0_166, %c0_167] : memref<4x64x16xbf16, #tpu.memory_space<vmem>>, vector<1x64x16xbf16>
      %272 = vector.shape_cast %271 : vector<1x64x16xbf16> to vector<64x16xbf16>
      %273 = vector.shape_cast %270 : vector<64x16xbf16> to vector<1x64x16xbf16>
      tpu.vector_store %arg17[%c3_165, %c0_166, %c0_167], %273 {strides = array<i32>} : memref<4x64x16xbf16, #tpu.memory_space<vmem>>, vector<1x64x16xbf16>,
    } else {
    }
    %c64_i32 = arith.constant 64 : i32
    %3 = arith.muli %arg1, %c64_i32 : i32
    %4 = tpu.assume_multiple %3, 64 : i32
    %5 = arith.index_cast %4 : i32 to index
    %c0 = arith.constant 0 : index
    %6 = vector.load %arg15[%5, %c0] : memref<64x128xbf16, #tpu.memory_space<vmem>>, vector<64x128xbf16>
    %cst = arith.constant 0.000000e+00 : f32
    %7 = vector.broadcast %cst : f32 to vector<64x128xf32>
    %c0_i32_1 = arith.constant 0 : i32
    %8 = arith.index_cast %c0_i32_1 : i32 to index
    %c0_2 = arith.constant 0 : index
    %c0_3 = arith.constant 0 : index
    %9 = vector.load %arg6[%8, %c0_2, %c0_3] : memref<4x128x16xbf16, #tpu.memory_space<vmem>>, vector<1x128x16xbf16>
    %10 = vector.shape_cast %9 : vector<1x128x16xbf16> to vector<128x16xbf16>
    %cst_4 = arith.constant dense<0.000000e+00> : vector<64x16xf32>
    %11 = tpu.matmul %6, %10, %cst_4 {dimension_numbers = #tpu.dot_dimension_numbers<[1], [0], [0], [1], [0, 0, 1, 1], [], []>} : vector<64x128xbf16>, vector<128x16xbf16>, vector<64x16xf32> -> vector<64x16xf32>
    %12 = arith.index_cast %c0_i32_1 : i32 to index
    %c0_5 = arith.constant 0 : index
    %c0_6 = arith.constant 0 : index
    %13 = vector.load %arg9[%12, %c0_5, %c0_6] : memref<4x1x16xf32, #tpu.memory_space<vmem>>, vector<1x1x16xf32>
    %14 = vector.shape_cast %13 : vector<1x1x16xf32> to vector<1x16xf32>
    %15 = vector.broadcast %14 : vector<1x16xf32> to vector<64x16xf32>
    %16 = arith.addf %11, %15 : vector<64x16xf32>
    %17 = arith.truncf %16 : vector<64x16xf32> to vector<64x16xbf16>
    %18 = arith.index_cast %c0_i32_1 : i32 to index
    %c0_7 = arith.constant 0 : index
    %c0_8 = arith.constant 0 : index
    %19 = vector.load %arg16[%18, %c0_7, %c0_8] : memref<4x64x16xbf16, #tpu.memory_space<vmem>>, vector<1x64x16xbf16>
    %20 = vector.shape_cast %19 : vector<1x64x16xbf16> to vector<64x16xbf16>
    %cst_9 = arith.constant dense<0.000000e+00> : vector<64x64xf32>
    %21 = tpu.matmul %17, %20, %cst_9 {dimension_numbers = #tpu.dot_dimension_numbers<[1], [1], [0], [0], [0, 0, 1, 0], [], []>} : vector<64x16xbf16>, vector<64x16xbf16>, vector<64x64xf32> -> vector<64x64xf32>
    %cst_10 = arith.constant dense<0xFF800000> : vector<64xf32>
    %22 = vector.multi_reduction <maximumf>, %21, %cst_10 [1] : vector<64x64xf32> to vector<64xf32>
    %23 = vector.shape_cast %22 : vector<64xf32> to vector<64x1xf32>
    %24 = vector.broadcast %23 : vector<64x1xf32> to vector<64x64xf32>
    %25 = arith.subf %21, %24 : vector<64x64xf32>
    %26 = math.exp %25 : vector<64x64xf32>
    %cst_11 = arith.constant dense<0.000000e+00> : vector<64xf32>
    %27 = vector.multi_reduction <add>, %26, %cst_11 [1] : vector<64x64xf32> to vector<64xf32>
    %28 = vector.shape_cast %27 : vector<64xf32> to vector<64x1xf32>
    %29 = arith.truncf %26 : vector<64x64xf32> to vector<64x64xbf16>
    %30 = arith.index_cast %c0_i32_1 : i32 to index
    %c0_12 = arith.constant 0 : index
    %c0_13 = arith.constant 0 : index
    %31 = vector.load %arg17[%30, %c0_12, %c0_13] : memref<4x64x16xbf16, #tpu.memory_space<vmem>>, vector<1x64x16xbf16>
    %32 = vector.shape_cast %31 : vector<1x64x16xbf16> to vector<64x16xbf16>
    %cst_14 = arith.constant dense<0.000000e+00> : vector<64x16xf32>
    %33 = tpu.matmul %29, %32, %cst_14 {dimension_numbers = #tpu.dot_dimension_numbers<[1], [0], [0], [1], [0, 0, 1, 1], [], []>} : vector<64x64xbf16>, vector<64x16xbf16>, vector<64x16xf32> -> vector<64x16xf32>
    %34 = tpu.reciprocal %28 : vector<64x1xf32> -> vector<64x1xf32>
    %35 = vector.broadcast %34 : vector<64x1xf32> to vector<64x16xf32>
    %36 = arith.mulf %33, %35 : vector<64x16xf32>
    %37 = arith.truncf %36 : vector<64x16xf32> to vector<64x16xbf16>
    %38 = arith.index_cast %c0_i32_1 : i32 to index
    %c0_15 = arith.constant 0 : index
    %c0_16 = arith.constant 0 : index
    %39 = vector.load %arg12[%38, %c0_15, %c0_16] : memref<4x16x128xbf16, #tpu.memory_space<vmem>>, vector<1x16x128xbf16>
    %40 = vector.shape_cast %39 : vector<1x16x128xbf16> to vector<16x128xbf16>
    %cst_17 = arith.constant dense<0.000000e+00> : vector<64x128xf32>
    %41 = tpu.matmul %37, %40, %cst_17 {dimension_numbers = #tpu.dot_dimension_numbers<[1], [0], [0], [1], [0, 0, 1, 1], [], []>} : vector<64x16xbf16>, vector<16x128xbf16>, vector<64x128xf32> -> vector<64x128xf32>
    %42 = arith.addf %7, %41 : vector<64x128xf32>
    %c1_i32 = arith.constant 1 : i32
    %43 = arith.index_cast %c1_i32 : i32 to index
    %c0_18 = arith.constant 0 : index
    %c0_19 = arith.constant 0 : index
    %44 = vector.load %arg6[%43, %c0_18, %c0_19] : memref<4x128x16xbf16, #tpu.memory_space<vmem>>, vector<1x128x16xbf16>
    %45 = vector.shape_cast %44 : vector<1x128x16xbf16> to vector<128x16xbf16>
    %cst_20 = arith.constant dense<0.000000e+00> : vector<64x16xf32>
    %46 = tpu.matmul %6, %45, %cst_20 {dimension_numbers = #tpu.dot_dimension_numbers<[1], [0], [0], [1], [0, 0, 1, 1], [], []>} : vector<64x128xbf16>, vector<128x16xbf16>, vector<64x16xf32> -> vector<64x16xf32>
    %47 = arith.index_cast %c1_i32 : i32 to index
    %c0_21 = arith.constant 0 : index
    %c0_22 = arith.constant 0 : index
    %48 = vector.load %arg9[%47, %c0_21, %c0_22] : memref<4x1x16xf32, #tpu.memory_space<vmem>>, vector<1x1x16xf32>
    %49 = vector.shape_cast %48 : vector<1x1x16xf32> to vector<1x16xf32>
    %50 = vector.broadcast %49 : vector<1x16xf32> to vector<64x16xf32>
    %51 = arith.addf %46, %50 : vector<64x16xf32>
    %52 = arith.truncf %51 : vector<64x16xf32> to vector<64x16xbf16>
    %53 = arith.index_cast %c1_i32 : i32 to index
    %c0_23 = arith.constant 0 : index
    %c0_24 = arith.constant 0 : index
    %54 = vector.load %arg16[%53, %c0_23, %c0_24] : memref<4x64x16xbf16, #tpu.memory_space<vmem>>, vector<1x64x16xbf16>
    %55 = vector.shape_cast %54 : vector<1x64x16xbf16> to vector<64x16xbf16>
    %cst_25 = arith.constant dense<0.000000e+00> : vector<64x64xf32>
    %56 = tpu.matmul %52, %55, %cst_25 {dimension_numbers = #tpu.dot_dimension_numbers<[1], [1], [0], [0], [0, 0, 1, 0], [], []>} : vector<64x16xbf16>, vector<64x16xbf16>, vector<64x64xf32> -> vector<64x64xf32>
    %cst_26 = arith.constant dense<0xFF800000> : vector<64xf32>
    %57 = vector.multi_reduction <maximumf>, %56, %cst_26 [1] : vector<64x64xf32> to vector<64xf32>
    %58 = vector.shape_cast %57 : vector<64xf32> to vector<64x1xf32>
    %59 = vector.broadcast %58 : vector<64x1xf32> to vector<64x64xf32>
    %60 = arith.subf %56, %59 : vector<64x64xf32>
    %61 = math.exp %60 : vector<64x64xf32>
    %cst_27 = arith.constant dense<0.000000e+00> : vector<64xf32>
    %62 = vector.multi_reduction <add>, %61, %cst_27 [1] : vector<64x64xf32> to vector<64xf32>
    %63 = vector.shape_cast %62 : vector<64xf32> to vector<64x1xf32>
    %64 = arith.truncf %61 : vector<64x64xf32> to vector<64x64xbf16>
    %65 = arith.index_cast %c1_i32 : i32 to index
    %c0_28 = arith.constant 0 : index
    %c0_29 = arith.constant 0 : index
    %66 = vector.load %arg17[%65, %c0_28, %c0_29] : memref<4x64x16xbf16, #tpu.memory_space<vmem>>, vector<1x64x16xbf16>
    %67 = vector.shape_cast %66 : vector<1x64x16xbf16> to vector<64x16xbf16>
    %cst_30 = arith.constant dense<0.000000e+00> : vector<64x16xf32>
    %68 = tpu.matmul %64, %67, %cst_30 {dimension_numbers = #tpu.dot_dimension_numbers<[1], [0], [0], [1], [0, 0, 1, 1], [], []>} : vector<64x64xbf16>, vector<64x16xbf16>, vector<64x16xf32> -> vector<64x16xf32>
    %69 = tpu.reciprocal %63 : vector<64x1xf32> -> vector<64x1xf32>
    %70 = vector.broadcast %69 : vector<64x1xf32> to vector<64x16xf32>
    %71 = arith.mulf %68, %70 : vector<64x16xf32>
    %72 = arith.truncf %71 : vector<64x16xf32> to vector<64x16xbf16>
    %73 = arith.index_cast %c1_i32 : i32 to index
    %c0_31 = arith.constant 0 : index
    %c0_32 = arith.constant 0 : index
    %74 = vector.load %arg12[%73, %c0_31, %c0_32] : memref<4x16x128xbf16, #tpu.memory_space<vmem>>, vector<1x16x128xbf16>
    %75 = vector.shape_cast %74 : vector<1x16x128xbf16> to vector<16x128xbf16>
    %cst_33 = arith.constant dense<0.000000e+00> : vector<64x128xf32>
    %76 = tpu.matmul %72, %75, %cst_33 {dimension_numbers = #tpu.dot_dimension_numbers<[1], [0], [0], [1], [0, 0, 1, 1], [], []>} : vector<64x16xbf16>, vector<16x128xbf16>, vector<64x128xf32> -> vector<64x128xf32>
    %77 = arith.addf %42, %76 : vector<64x128xf32>
    %c2_i32 = arith.constant 2 : i32
    %78 = arith.index_cast %c2_i32 : i32 to index
    %c0_34 = arith.constant 0 : index
    %c0_35 = arith.constant 0 : index
    %79 = vector.load %arg6[%78, %c0_34, %c0_35] : memref<4x128x16xbf16, #tpu.memory_space<vmem>>, vector<1x128x16xbf16>
    %80 = vector.shape_cast %79 : vector<1x128x16xbf16> to vector<128x16xbf16>
    %cst_36 = arith.constant dense<0.000000e+00> : vector<64x16xf32>
    %81 = tpu.matmul %6, %80, %cst_36 {dimension_numbers = #tpu.dot_dimension_numbers<[1], [0], [0], [1], [0, 0, 1, 1], [], []>} : vector<64x128xbf16>, vector<128x16xbf16>, vector<64x16xf32> -> vector<64x16xf32>
    %82 = arith.index_cast %c2_i32 : i32 to index
    %c0_37 = arith.constant 0 : index
    %c0_38 = arith.constant 0 : index
    %83 = vector.load %arg9[%82, %c0_37, %c0_38] : memref<4x1x16xf32, #tpu.memory_space<vmem>>, vector<1x1x16xf32>
    %84 = vector.shape_cast %83 : vector<1x1x16xf32> to vector<1x16xf32>
    %85 = vector.broadcast %84 : vector<1x16xf32> to vector<64x16xf32>
    %86 = arith.addf %81, %85 : vector<64x16xf32>
    %87 = arith.truncf %86 : vector<64x16xf32> to vector<64x16xbf16>
    %88 = arith.index_cast %c2_i32 : i32 to index
    %c0_39 = arith.constant 0 : index
    %c0_40 = arith.constant 0 : index
    %89 = vector.load %arg16[%88, %c0_39, %c0_40] : memref<4x64x16xbf16, #tpu.memory_space<vmem>>, vector<1x64x16xbf16>
    %90 = vector.shape_cast %89 : vector<1x64x16xbf16> to vector<64x16xbf16>
    %cst_41 = arith.constant dense<0.000000e+00> : vector<64x64xf32>
    %91 = tpu.matmul %87, %90, %cst_41 {dimension_numbers = #tpu.dot_dimension_numbers<[1], [1], [0], [0], [0, 0, 1, 0], [], []>} : vector<64x16xbf16>, vector<64x16xbf16>, vector<64x64xf32> -> vector<64x64xf32>
    %cst_42 = arith.constant dense<0xFF800000> : vector<64xf32>
    %92 = vector.multi_reduction <maximumf>, %91, %cst_42 [1] : vector<64x64xf32> to vector<64xf32>
    %93 = vector.shape_cast %92 : vector<64xf32> to vector<64x1xf32>
    %94 = vector.broadcast %93 : vector<64x1xf32> to vector<64x64xf32>
    %95 = arith.subf %91, %94 : vector<64x64xf32>
    %96 = math.exp %95 : vector<64x64xf32>
    %cst_43 = arith.constant dense<0.000000e+00> : vector<64xf32>
    %97 = vector.multi_reduction <add>, %96, %cst_43 [1] : vector<64x64xf32> to vector<64xf32>
    %98 = vector.shape_cast %97 : vector<64xf32> to vector<64x1xf32>
    %99 = arith.truncf %96 : vector<64x64xf32> to vector<64x64xbf16>
    %100 = arith.index_cast %c2_i32 : i32 to index
    %c0_44 = arith.constant 0 : index
    %c0_45 = arith.constant 0 : index
    %101 = vector.load %arg17[%100, %c0_44, %c0_45] : memref<4x64x16xbf16, #tpu.memory_space<vmem>>, vector<1x64x16xbf16>
    %102 = vector.shape_cast %101 : vector<1x64x16xbf16> to vector<64x16xbf16>
    %cst_46 = arith.constant dense<0.000000e+00> : vector<64x16xf32>
    %103 = tpu.matmul %99, %102, %cst_46 {dimension_numbers = #tpu.dot_dimension_numbers<[1], [0], [0], [1], [0, 0, 1, 1], [], []>} : vector<64x64xbf16>, vector<64x16xbf16>, vector<64x16xf32> -> vector<64x16xf32>
    %104 = tpu.reciprocal %98 : vector<64x1xf32> -> vector<64x1xf32>
    %105 = vector.broadcast %104 : vector<64x1xf32> to vector<64x16xf32>
    %106 = arith.mulf %103, %105 : vector<64x16xf32>
    %107 = arith.truncf %106 : vector<64x16xf32> to vector<64x16xbf16>
    %108 = arith.index_cast %c2_i32 : i32 to index
    %c0_47 = arith.constant 0 : index
    %c0_48 = arith.constant 0 : index
    %109 = vector.load %arg12[%108, %c0_47, %c0_48] : memref<4x16x128xbf16, #tpu.memory_space<vmem>>, vector<1x16x128xbf16>
    %110 = vector.shape_cast %109 : vector<1x16x128xbf16> to vector<16x128xbf16>
    %cst_49 = arith.constant dense<0.000000e+00> : vector<64x128xf32>
    %111 = tpu.matmul %107, %110, %cst_49 {dimension_numbers = #tpu.dot_dimension_numbers<[1], [0], [0], [1], [0, 0, 1, 1], [], []>} : vector<64x16xbf16>, vector<16x128xbf16>, vector<64x128xf32> -> vector<64x128xf32>
    %112 = arith.addf %77, %111 : vector<64x128xf32>
    %c3_i32 = arith.constant 3 : i32
    %113 = arith.index_cast %c3_i32 : i32 to index
    %c0_50 = arith.constant 0 : index
    %c0_51 = arith.constant 0 : index
    %114 = vector.load %arg6[%113, %c0_50, %c0_51] : memref<4x128x16xbf16, #tpu.memory_space<vmem>>, vector<1x128x16xbf16>
    %115 = vector.shape_cast %114 : vector<1x128x16xbf16> to vector<128x16xbf16>
    %cst_52 = arith.constant dense<0.000000e+00> : vector<64x16xf32>
    %116 = tpu.matmul %6, %115, %cst_52 {dimension_numbers = #tpu.dot_dimension_numbers<[1], [0], [0], [1], [0, 0, 1, 1], [], []>} : vector<64x128xbf16>, vector<128x16xbf16>, vector<64x16xf32> -> vector<64x16xf32>
    %117 = arith.index_cast %c3_i32 : i32 to index
    %c0_53 = arith.constant 0 : index
    %c0_54 = arith.constant 0 : index
    %118 = vector.load %arg9[%117, %c0_53, %c0_54] : memref<4x1x16xf32, #tpu.memory_space<vmem>>, vector<1x1x16xf32>
    %119 = vector.shape_cast %118 : vector<1x1x16xf32> to vector<1x16xf32>
    %120 = vector.broadcast %119 : vector<1x16xf32> to vector<64x16xf32>
    %121 = arith.addf %116, %120 : vector<64x16xf32>
    %122 = arith.truncf %121 : vector<64x16xf32> to vector<64x16xbf16>
    %123 = arith.index_cast %c3_i32 : i32 to index
    %c0_55 = arith.constant 0 : index
    %c0_56 = arith.constant 0 : index
    %124 = vector.load %arg16[%123, %c0_55, %c0_56] : memref<4x64x16xbf16, #tpu.memory_space<vmem>>, vector<1x64x16xbf16>
    %125 = vector.shape_cast %124 : vector<1x64x16xbf16> to vector<64x16xbf16>
    %cst_57 = arith.constant dense<0.000000e+00> : vector<64x64xf32>
    %126 = tpu.matmul %122, %125, %cst_57 {dimension_numbers = #tpu.dot_dimension_numbers<[1], [1], [0], [0], [0, 0, 1, 0], [], []>} : vector<64x16xbf16>, vector<64x16xbf16>, vector<64x64xf32> -> vector<64x64xf32>
    %cst_58 = arith.constant dense<0xFF800000> : vector<64xf32>
    %127 = vector.multi_reduction <maximumf>, %126, %cst_58 [1] : vector<64x64xf32> to vector<64xf32>
    %128 = vector.shape_cast %127 : vector<64xf32> to vector<64x1xf32>
    %129 = vector.broadcast %128 : vector<64x1xf32> to vector<64x64xf32>
    %130 = arith.subf %126, %129 : vector<64x64xf32>
    %131 = math.exp %130 : vector<64x64xf32>
    %cst_59 = arith.constant dense<0.000000e+00> : vector<64xf32>
    %132 = vector.multi_reduction <add>, %131, %cst_59 [1] : vector<64x64xf32> to vector<64xf32>
    %133 = vector.shape_cast %132 : vector<64xf32> to vector<64x1xf32>
    %134 = arith.truncf %131 : vector<64x64xf32> to vector<64x64xbf16>
    %135 = arith.index_cast %c3_i32 : i32 to index
    %c0_60 = arith.constant 0 : index
    %c0_61 = arith.constant 0 : index
    %136 = vector.load %arg17[%135, %c0_60, %c0_61] : memref<4x64x16xbf16, #tpu.memory_space<vmem>>, vector<1x64x16xbf16>
    %137 = vector.shape_cast %136 : vector<1x64x16xbf16> to vector<64x16xbf16>
    %cst_62 = arith.constant dense<0.000000e+00> : vector<64x16xf32>
    %138 = tpu.matmul %134, %137, %cst_62 {dimension_numbers = #tpu.dot_dimension_numbers<[1], [0], [0], [1], [0, 0, 1, 1], [], []>} : vector<64x64xbf16>, vector<64x16xbf16>, vector<64x16xf32> -> vector<64x16xf32>
    %139 = tpu.reciprocal %133 : vector<64x1xf32> -> vector<64x1xf32>
    %140 = vector.broadcast %139 : vector<64x1xf32> to vector<64x16xf32>
    %141 = arith.mulf %138, %140 : vector<64x16xf32>
    %142 = arith.truncf %141 : vector<64x16xf32> to vector<64x16xbf16>
    %143 = arith.index_cast %c3_i32 : i32 to index
    %c0_63 = arith.constant 0 : index
    %c0_64 = arith.constant 0 : index
    %144 = vector.load %arg12[%143, %c0_63, %c0_64] : memref<4x16x128xbf16, #tpu.memory_space<vmem>>, vector<1x16x128xbf16>
    %145 = vector.shape_cast %144 : vector<1x16x128xbf16> to vector<16x128xbf16>
    %cst_65 = arith.constant dense<0.000000e+00> : vector<64x128xf32>
    %146 = tpu.matmul %142, %145, %cst_65 {dimension_numbers = #tpu.dot_dimension_numbers<[1], [0], [0], [1], [0, 0, 1, 1], [], []>} : vector<64x16xbf16>, vector<16x128xbf16>, vector<64x128xf32> -> vector<64x128xf32>
    %147 = arith.addf %112, %146 : vector<64x128xf32>
    %c4_i32 = arith.constant 4 : i32
    %c0_66 = arith.constant 0 : index
    %148 = arith.index_cast %4 : i32 to index
    %c0_67 = arith.constant 0 : index
    %149 = vector.load %arg2[%c0_66, %148, %c0_67] : memref<1x64x128xf32, #tpu.memory_space<vmem>>, vector<1x64x128xf32>
    %150 = vector.shape_cast %149 : vector<1x64x128xf32> to vector<64x128xf32>
    %c0_68 = arith.constant 0 : index
    %c0_69 = arith.constant 0 : index
    %151 = vector.load %arg13[%c0_68, %c0_69] : memref<1x128xf32, #tpu.memory_space<vmem>>, vector<1x128xf32>
    %152 = vector.broadcast %151 : vector<1x128xf32> to vector<64x128xf32>
    %153 = arith.addf %147, %152 : vector<64x128xf32>
    %154 = arith.addf %153, %150 : vector<64x128xf32>
    %c0_70 = arith.constant 0 : index
    %c0_71 = arith.constant 0 : index
    %c0_72 = arith.constant 0 : index
    %155 = vector.load %arg14[%c0_70, %c0_71, %c0_72] : memref<1x64x128xf32, #tpu.memory_space<vmem>>, vector<1x64x128xf32>
    %156 = vector.shape_cast %155 : vector<1x64x128xf32> to vector<64x128xf32>
    %157 = vector.shape_cast %154 : vector<64x128xf32> to vector<1x64x128xf32>
    tpu.vector_store %arg14[%c0_70, %c0_71, %c0_72], %157 {strides = array<i32>} : memref<1x64x128xf32, #tpu.memory_space<vmem>>, vector<1x64x128xf32>,
    return
  }
  func.func @transform_0(%arg0: i32, %arg1: i32) -> (i32, i32, i32) {
    %c0_i32 = arith.constant 0 : i32
    %c0_i32_0 = arith.constant 0 : i32
    %c0_i32_1 = arith.constant 0 : i32
    return %arg0, %c0_i32, %c0_i32_0 : i32, i32, i32
  }
  func.func @transform_1(%arg0: i32, %arg1: i32) -> (i32, i32) {
    %c0_i32 = arith.constant 0 : i32
    %c0_i32_0 = arith.constant 0 : i32
    %c0_i32_1 = arith.constant 0 : i32
    return %c0_i32, %c0_i32_0 : i32, i32
  }
  func.func @transform_2(%arg0: i32, %arg1: i32) -> (i32, i32) {
    %c0_i32 = arith.constant 0 : i32
    %c0_i32_0 = arith.constant 0 : i32
    %c0_i32_1 = arith.constant 0 : i32
    return %c0_i32, %c0_i32_0 : i32, i32
  }
  func.func @transform_3(%arg0: i32, %arg1: i32) -> (i32, i32) {
    %c0_i32 = arith.constant 0 : i32
    %c0_i32_0 = arith.constant 0 : i32
    %c0_i32_1 = arith.constant 0 : i32
    return %c0_i32, %c0_i32_0 : i32, i32
  }
  func.func @transform_4(%arg0: i32, %arg1: i32) -> (i32, i32, i32) {
    %c0_i32 = arith.constant 0 : i32
    %c0_i32_0 = arith.constant 0 : i32
    %c0_i32_1 = arith.constant 0 : i32
    %c0_i32_2 = arith.constant 0 : i32
    return %c0_i32, %c0_i32_0, %c0_i32_1 : i32, i32, i32
  }
  func.func @transform_5(%arg0: i32, %arg1: i32) -> (i32, i32, i32) {
    %c0_i32 = arith.constant 0 : i32
    %c0_i32_0 = arith.constant 0 : i32
    %c0_i32_1 = arith.constant 0 : i32
    %c0_i32_2 = arith.constant 0 : i32
    return %c0_i32, %c0_i32_0, %c0_i32_1 : i32, i32, i32
  }
  func.func @transform_6(%arg0: i32, %arg1: i32) -> (i32, i32, i32) {
    %c0_i32 = arith.constant 0 : i32
    %c0_i32_0 = arith.constant 0 : i32
    %c0_i32_1 = arith.constant 0 : i32
    %c0_i32_2 = arith.constant 0 : i32
    return %c0_i32, %c0_i32_0, %c0_i32_1 : i32, i32, i32
  }
  func.func @transform_7(%arg0: i32, %arg1: i32) -> (i32, i32, i32) {
    %c0_i32 = arith.constant 0 : i32
    %c0_i32_0 = arith.constant 0 : i32
    %c0_i32_1 = arith.constant 0 : i32
    %c0_i32_2 = arith.constant 0 : i32
    return %c0_i32, %c0_i32_0, %c0_i32_1 : i32, i32, i32
  }
  func.func @transform_8(%arg0: i32, %arg1: i32) -> (i32, i32, i32) {
    %c0_i32 = arith.constant 0 : i32
    %c0_i32_0 = arith.constant 0 : i32
    %c0_i32_1 = arith.constant 0 : i32
    %c0_i32_2 = arith.constant 0 : i32
    return %c0_i32, %c0_i32_0, %c0_i32_1 : i32, i32, i32
  }
  func.func @transform_9(%arg0: i32, %arg1: i32) -> (i32, i32, i32) {
    %c0_i32 = arith.constant 0 : i32
    %c0_i32_0 = arith.constant 0 : i32
    %c0_i32_1 = arith.constant 0 : i32
    %c0_i32_2 = arith.constant 0 : i32
    return %c0_i32, %c0_i32_0, %c0_i32_1 : i32, i32, i32
  }
  func.func @transform_10(%arg0: i32, %arg1: i32) -> (i32, i32, i32) {
    %c0_i32 = arith.constant 0 : i32
    %c0_i32_0 = arith.constant 0 : i32
    %c0_i32_1 = arith.constant 0 : i32
    %c0_i32_2 = arith.constant 0 : i32
    return %c0_i32, %c0_i32_0, %c0_i32_1 : i32, i32, i32
  }
  func.func @transform_11(%arg0: i32, %arg1: i32) -> (i32, i32) {
    %c0_i32 = arith.constant 0 : i32
    %c0_i32_0 = arith.constant 0 : i32
    %c0_i32_1 = arith.constant 0 : i32
    return %c0_i32, %c0_i32_0 : i32, i32
  }
  func.func @transform_12(%arg0: i32, %arg1: i32) -> (i32, i32, i32) {
    %c0_i32 = arith.constant 0 : i32
    %c0_i32_0 = arith.constant 0 : i32
    return %arg0, %arg1, %c0_i32 : i32, i32, i32
  }
}

</mosaic_0001>

<bundles_post_ra>
// kernel: tpu_custom_call.1
= control target key start
LH: loop header
LB: loop body
LE: loop exit
PB: predicated region body
PF: predicated region fallthrough
CT: control target
= control target key end

     0   :  { %s7439_s0 = inlined_call_operand.vmem [shape: f32[2,64,128], index: 0, kind: input, shape index: {}]   ;;  %s7440_s1 = inlined_call_operand.vmem [shape: f32[128,128], index: 1, kind: input, shape index: {}]   ;;  %s7441_s2 = inlined_call_operand.vmem [shape: f32[1,128], index: 2, kind: input, shape index: {}]   ;;  %s7442_s3 = inlined_call_operand.vmem [shape: f32[1,128], index: 3, kind: input, shape index: {}]   ;;  %s7443_s4 = inlined_call_operand.vmem [shape: bf16[4,128,16], index: 4, kind: input, shape index: {}]   ;;  %s7444_s5 = inlined_call_operand.vmem [shape: bf16[4,128,16], index: 5, kind: input, shape index: {}]   ;;  %s7445_s6 = inlined_call_operand.vmem [shape: bf16[4,128,16], index: 6, kind: input, shape index: {}]   ;;  %s7446_s7 = inlined_call_operand.vmem [shape: f32[4,1,16], index: 7, kind: input, shape index: {}]   ;;  %s7447_s8 = inlined_call_operand.vmem [shape: f32[4,1,16], index: 8, kind: input, shape index: {}]   ;;  %s7448_s9 = inlined_call_operand.vmem [shape: f32[4,1,16], index: 9, kind: input, shape index: {}]   ;;  %s7449_s10 = inlined_call_operand.vmem [shape: bf16[4,16,128], index: 10, kind: input, shape index: {}]   ;;  %s7450_s11 = inlined_call_operand.vmem [shape: f32[1,128], index: 11, kind: input, shape index: {}]   ;;  %s7451_s12 = inlined_call_operand.hbm [shape: f32[2,64,128], index: 12, kind: output, shape index: {}]  }
   0x1   :  { %7453 = sst [smem:[#allocation9_spill]] %s7439_s0 }
   0x2   :  { %7454 = sst [smem:[#allocation10_spill]] %s7440_s1 }
   0x3   :  { %17 = vsyncpa [#allocation6], 0 }
   0x4   :  { %19 = vsyncpa [#allocation6 + $0x1], 0  ;;  %s6353_s21 = smov 0   ;;  %s6355_s22 = smov 0  }
   0x5   :  { %s6357_s23 = smov 0   ;;  %s6359_s24 = smov 0  }
   0x6   :  { %s6361_s25 = smov 0   ;;  %s6363_s26 = smov 0  }
   0x7 LB: > { %s4533_s27 = sadd.s32 4294967295, %s6281_s26   ;;  %s4534_s28 = sadd.s32 4294967294, %s6281_s26   ;;  %s6281_s26 = sphi %s6363_s26, %s25_s26   ;;  %s6277_s25 = sphi %s6361_s25, %s7465_s25   ;;  %s6273_s24 = sphi %s6359_s24, %s7464_s24   ;;  %s6269_s23 = sphi %s6357_s23, %s7463_s23   ;;  %s6265_s22 = sphi %s6355_s22, %s7462_s22   ;;  %s6261_s21 = sphi %s6353_s21, %s7461_s21  }
   0x8   : > { %s37_s29 = sadd.s32 1, %s6277_s25  ;;  %s303_s30 = sadd.s32 1, %s6269_s23 }
   0x9   : > { %p39_p0 = scmp.ge.s32.totalorder %s37_s29, 2  ;;  %p313_p1 = scmp.ne.s32.totalorder %s6269_s23, %s6265_s22 }
   0xa   : > { %p314_p2 = scmp.eq.s32.totalorder %s4533_s27, 1  ;;  %p319_p3 = scmp.ne.s32.totalorder %s6265_s22, %s6261_s21 }
   0xb   : > { %s7467_s29 = smov (%p39_p0, %s37_s29), 0  ;;  %p320_p5 = scmp.eq.s32.totalorder %s4534_s28, 1 }
   0xc   : > { %7455 = sst [smem:[#allocation8_spill]] %s7467_s29  ;;  %p6393_p4 = por %p314_p2, %p313_p1 }
   0xd   : > { %s298_s14 = ssub.s32 %s6277_s25, %s7467_s29  ;;  %p4537_p6 = scmp.ge.s32.totalorder %s6281_s26, 1 }
   0xe   : > { %p301_p7 = scmp.eq.s32.totalorder %s298_s14, 0  ;;  %p6400_p8 = por %p320_p5, %p319_p3 }
   0xf   : > { %p379_p9 = scmp.lt.s32.totalorder %s6281_s26, 3 }
  0x10   : > { %s6406_s16 = scalar_select %p301_p7, %s6269_s23, %s303_s30  }
  0x11   : > { %p380_p10 = pnand %p4537_p6, %p379_p9 }
  0x12   : > { %s7458_s1 = sld [smem:[#allocation10_spill]] (!%p380_p10)  ;;  %p421_p11 = scmp.lt.s32.totalorder (!%p380_p10), %s6273_s24, 1 }
  0x13   : > { %383 = sbr.rel (%p380_p10) target bundleno = 3427 (0xd63), region = 68  ;;  %s7459_s0 = sld [smem:[#allocation9_spill]] (!%p380_p10) }
  0x14   : > { %s418_s30 = sand.u32 (!%p380_p10), 1, %s6265_s22   ;;  %s5048_s20 = sshll.u32 (!%p380_p10), %s6273_s24, 10 }
  0x15   : > { %s4538_s18 = sshll.u32 (!%p380_p10), %s418_s30, 6 }
  0x16   : > { %s7363_s19 = scalar_lea.vmem (!%p380_p10), [#allocation5], %s4538_s18 }
  0x18   : > { %v455_v0 = vld [vmem:[%s7458_s1 + $0x78] sm:$0xff]  ;;  %v6283_v1 = vmov 0.0   ;;  %v454_v2 = vld [vmem:[%s7458_s1 + $0x70] sm:$0xff]  ;;  %vm6284_vm0 = vmmov 0   ;;  %s422_s27 = scalar_select %p421_p11, %s6273_s24, 1  ;;  %v453_v3 = vld [vmem:[%s7458_s1 + $0x68] sm:$0xff]  ;;  %v541_v42 = vlaneseq }
  0x19   : > { %5334 = vmatprep.subr.mxu0 %v6283_v1  ;;  %5366 = vmatprep.mubr.msk.f32.mxu0 %vm6284_vm0, %v6283_v1  ;;  %v452_v4 = vld [vmem:[%s7458_s1 + $0x60] sm:$0xff]  ;;  %v451_v8 = vld [vmem:[%s7458_s1 + $0x58] sm:$0xff]  ;;  %v450_v9 = vld [vmem:[%s7458_s1 + $0x50] sm:$0xff]  ;;  %vm883_vm1 = vcmask 125952   ;;  %vm2347_vm2 = vcmask 130048   ;;  %vm2437_vm3 = vcmask 523264  }
  0x1a   : > { %5335 = vmatpush3.msra.mxu0 %v455_v0  ;;  %5369 = vmatprep.subr.mxu1 %v6283_v1  ;;  %s4975_s14 = sshll.u32 %s422_s27, 6  ;;  %v449_v13 = vld [vmem:[%s7458_s1 + $0x48] sm:$0xff]  ;;  %v448_v16 = vld [vmem:[%s7458_s1 + $0x40] sm:$0xff]  ;;  %v447_v19 = vld [vmem:[%s7458_s1 + $0x38] sm:$0xff]  ;;  %v6540_v43 = vshrl.u32 %v541_v42, 7  ;;  %s4456_s27 = sshll.u32 %s7363_s19, 4  ;;  %s7388_s27 = int_to_ptr.vmem [resolvable:$true] %s4456_s27 }
  0x1b   : > { %5336 = vmatprep.subr.mxu0 %v6283_v1  ;;  %5370 = vmatpush3.msra.mxu1 %v455_v0  ;;  %s6432_s29 = scalar_lea.vmem %s7459_s0, %s4975_s14  ;;  %v446_v22 = vld [vmem:[%s7458_s1 + $0x30] sm:$0xff]  ;;  %v445_v24 = vld [vmem:[%s7458_s1 + $0x28] sm:$0xff]  ;;  %v444_v26 = vld [vmem:[%s7458_s1 + $0x20] sm:$0xff]  ;;  %s7394_s24 = scalar_lea.sflag [#allocation6], %s418_s30 }
  0x1c   : > { %5337 = vmatpush3.msra.mxu0 %v454_v2  ;;  %5371 = vmatprep.subr.mxu1 %v6283_v1  ;;  %v6435_v5 = vld [vmem:[%s6432_s29] sm:$0xff]  ;;  %v6438_v6 = vld [vmem:[%s6432_s29 + $0x8] sm:$0xff]  ;;  %v6441_v7 = vld [vmem:[%s6432_s29 + $0x10] sm:$0xff]  ;;  %v543_v44 = vsub.s32 0, %v6540_v43  ;;  %s6285_s14 = smov [#allocation5]  }
  0x1d   : > { %5338 = vmatprep.subr.mxu0 %v6283_v1  ;;  %5372 = vmatpush3.msra.mxu1 %v454_v2  ;;  %v456_v10 = vadd.f32 %v6438_v6, %v6435_v5  ;;  %v6454_v11 = vld [vmem:[%s6432_s29 + $0x18] sm:$0xff]  ;;  %v6457_v12 = vld [vmem:[%s6432_s29 + $0x20] sm:$0xff]  ;;  %v6466_v15 = vld [vmem:[%s6432_s29 + $0x28] sm:$0xff]  ;;  %s6209_s17 = sshll.u32 %s6285_s14, 4  ;;  %s6210_s17 = int_to_ptr.vmem [resolvable:$false] %s6209_s17 }
  0x1e   : > { %5339 = vmatpush3.msra.mxu0 %v453_v3  ;;  %5373 = vmatprep.subr.mxu1 %v6283_v1  ;;  %v6475_v18 = vld [vmem:[%s6432_s29 + $0x30] sm:$0xff]  ;;  %v6484_v21 = vld [vmem:[%s6432_s29 + $0x38] sm:$0xff]  ;;  %v441_v32 = vld [vmem:[%s7458_s1 + $0x8] sm:$0xff]  ;;  %s6211_s18 = scalar_lea.vmem %s6210_s17, 2048  ;;  %p6212_p1 = scmp.lt.s32.totalorder %s7388_s27, %s6210_s17 }
  0x1f   : > { %5340 = vmatprep.subr.mxu0 %v6283_v1  ;;  %5374 = vmatpush3.msra.mxu1 %v453_v3  ;;  %v457_v14 = vadd.f32 %v456_v10, %v6441_v7  ;;  %v443_v28 = vld [vmem:[%s7458_s1 + $0x18] sm:$0xff]  ;;  %v442_v30 = vld [vmem:[%s7458_s1 + $0x10] sm:$0xff]  ;;  %v440_v35 = vld [vmem:[%s7458_s1] sm:$0xff]  ;;  %s7386_s1 = scalar_lea.hbm %s7451_s12, %s5048_s20 }
  0x20   : > { %5341 = vmatpush3.msra.mxu0 %v452_v4  ;;  %5375 = vmatprep.subr.mxu1 %v6283_v1  ;;  %v5935_v39 = vld [vmem:[%s7444_s5 + $0x38] sm:$0xff]   ;;  %v5937_v41 = vld [vmem:[%s7444_s5 + $0x30] sm:$0xff]  }
  0x21   : > { %5342 = vmatprep.subr.mxu0 %v6283_v1  ;;  %5376 = vmatpush3.msra.mxu1 %v452_v4  ;;  %v458_v17 = vadd.f32 %v457_v14, %v6454_v11  ;;  %v5936_v40 = vld [vmem:[%s7445_s6 + $0x38] sm:$0xff]   ;;  %v5938_v14 = vld [vmem:[%s7445_s6 + $0x30] sm:$0xff]  }
  0x22   : > { %5343 = vmatpush3.msra.mxu0 %v451_v8  ;;  %5377 = vmatprep.subr.mxu1 %v6283_v1 }
  0x23   : > { %5344 = vmatprep.subr.mxu0 %v6283_v1  ;;  %5378 = vmatpush3.msra.mxu1 %v451_v8  ;;  %v459_v20 = vadd.f32 %v458_v17, %v6457_v12  ;;  %v5941_v17 = vld [vmem:[%s7444_s5 + $0x20] sm:$0xff]  }
  0x24   : > { %5345 = vmatpush3.msra.mxu0 %v450_v9  ;;  %5379 = vmatprep.subr.mxu1 %v6283_v1 }
  0x25   : > { %5346 = vmatprep.subr.mxu0 %v6283_v1  ;;  %5380 = vmatpush3.msra.mxu1 %v450_v9  ;;  %v460_v23 = vadd.f32 %v459_v20, %v6466_v15  ;;  %v5944_v20 = vld [vmem:[%s7445_s6 + $0x18] sm:$0xff]  }
  0x26   : > { %5347 = vmatpush3.msra.mxu0 %v449_v13  ;;  %5381 = vmatprep.subr.mxu1 %v6283_v1 }
  0x27   : > { %5348 = vmatprep.subr.mxu0 %v6283_v1  ;;  %5382 = vmatpush3.msra.mxu1 %v449_v13  ;;  %v461_v25 = vadd.f32 %v460_v23, %v6475_v18  ;;  %v5947_v23 = vld [vmem:[%s7444_s5 + $0x8] sm:$0xff]  }
  0x28   : > { %5349 = vmatpush3.msra.mxu0 %v448_v16  ;;  %5383 = vmatprep.subr.mxu1 %v6283_v1 }
  0x29   : > { %5350 = vmatprep.subr.mxu0 %v6283_v1  ;;  %5384 = vmatpush3.msra.mxu1 %v448_v16  ;;  %v462_v27 = vadd.f32 %v461_v25, %v6484_v21  ;;  %v5940_v16 = vld [vmem:[%s7445_s6 + $0x28] sm:$0xff]   ;;  %v5949_v25 = vld [vmem:[%s7444_s5] sm:$0xff]  }
  0x2a   : > { %5351 = vmatpush3.msra.mxu0 %v447_v19  ;;  %5385 = vmatprep.subr.mxu1 %v6283_v1 }
  0x2b   : > { %5352 = vmatprep.subr.mxu0 %v6283_v1  ;;  %5386 = vmatpush3.msra.mxu1 %v447_v19  ;;  %v463_v29 = vrot.slane %v462_v27, 4  ;;  %v5943_v19 = vld [vmem:[%s7444_s5 + $0x18] sm:$0xff]  }
  0x2c   : > { %5353 = vmatpush3.msra.mxu0 %v446_v22  ;;  %5387 = vmatprep.subr.mxu1 %v6283_v1 }
  0x2d   : > { %5354 = vmatprep.subr.mxu0 %v6283_v1  ;;  %5388 = vmatpush3.msra.mxu1 %v446_v22  ;;  %v464_v31 = vadd.f32 %v463_v29, %v462_v27  ;;  %v5946_v22 = vld [vmem:[%s7445_s6 + $0x10] sm:$0xff]   ;;  %v5951_v27 = vld [vmem:[%s7444_s5 + $0x78] sm:$0xff]  }
  0x2e   : > { %5355 = vmatpush3.msra.mxu0 %v445_v24  ;;  %5389 = vmatprep.subr.mxu1 %v6283_v1 }
  0x2f   : > { %5356 = vmatprep.subr.mxu0 %v6283_v1  ;;  %5390 = vmatpush3.msra.mxu1 %v445_v24  ;;  %v465_v33 = vrot.slane %v464_v31, 2  ;;  %v5948_v24 = vld [vmem:[%s7445_s6 + $0x8] sm:$0xff]  }
  0x30   : > { %5357 = vmatpush3.msra.mxu0 %v444_v26  ;;  %5391 = vmatprep.subr.mxu1 %v6283_v1 }
  0x31   : > { %5358 = vmatprep.subr.mxu0 %v6283_v1  ;;  %5392 = vmatpush3.msra.mxu1 %v444_v26  ;;  %v466_v34 = vadd.f32 %v465_v33, %v464_v31  ;;  %v5950_v26 = vld [vmem:[%s7445_s6] sm:$0xff]  }
  0x32   : > { %5359 = vmatpush3.msra.mxu0 %v443_v28  ;;  %5393 = vmatprep.subr.mxu1 %v6283_v1 }
  0x33   : > { %5360 = vmatprep.subr.mxu0 %v6283_v1  ;;  %5394 = vmatpush3.msra.mxu1 %v443_v28  ;;  %v467_v36 = vrot.slane %v466_v34, 1  ;;  %v5952_v28 = vld [vmem:[%s7445_s6 + $0x78] sm:$0xff]  }
  0x34   : > { %5361 = vmatpush3.msra.mxu0 %v442_v30  ;;  %5395 = vmatprep.subr.mxu1 %v6283_v1 }
  0x35   : > { %5362 = vmatprep.subr.mxu0 %v6283_v1  ;;  %5396 = vmatpush3.msra.mxu1 %v442_v30  ;;  %v468_v37 = vadd.f32 %v467_v36, %v466_v34  ;;  %v4541_v36 = vld [vmem:[%s7442_s3] ss:$0 sm:$0xff] }
  0x36   : > { %5363 = vmatpush3.msra.mxu0 %v441_v32  ;;  %5397 = vmatprep.subr.mxu1 %v6283_v1 }
  0x37   : > { %5364 = vmatprep.subr.mxu0 %v6283_v1  ;;  %5398 = vmatpush3.msra.mxu1 %v441_v32  ;;  %v470_v38 = vmul.f32 0.015625, %v468_v37  ;;  %v646_v32 = vld [vmem:[%s7441_s2] sm:$0x1] }
  0x38   : > { %5365 = vmatpush3.msra.mxu0 %v440_v35  ;;  %5399 = vmatprep.subr.mxu1 %v6283_v1 }
  0x39   : > { %5400 = vmatpush3.msra.mxu1 %v440_v35  ;;  %5401 = vmatprep.mubr.msk.f32.mxu1 %vm6284_vm0, %v6283_v1 }
  0x3a   : > { %5367 = vmatmul.mubr.f32.vlgmr.msra.gmra.mxu0 %v470_v38  ;;  %5404 = vmatprep.subr.bf16.mxu0 %v5935_v39 }
  0x3b   : > { %5428 = vmatprep.subr.bf16.mxu1 %v5936_v40  ;;  %5405 = vmatpush3.bf16.msra.mxu0 %v5935_v39 }
  0x3c   : > { %5406 = vmatprep.subr.bf16.mxu0 %v5937_v41 }
  0x3f   : > { %5407 = vmatpush3.bf16.msra.mxu0 %v5937_v41 }
  0xfa   : > { %v537_v45 = vpop.f32.mrf.mxu0 }
  0xfb   : > { %v544_v46 = vrot.slane %v537_v45, %v543_v44 }
  0xfc   : > { %v5368_v47 = vpop.f32.mrf.mxu0 }
  0xfd   : > { %v6546_v48 = vsub.f32 %v6435_v5, %v544_v46  ;;  %v6549_v49 = vsub.f32 %v6438_v6, %v544_v46  ;;  %v6552_v50 = vsub.f32 %v6441_v7, %v544_v46  ;;  %v6555_v51 = vsub.f32 %v6454_v11, %v544_v46 }
  0xfe   : > { %v6562_v54 = vsub.f32 %v6457_v12, %v544_v46  ;;  %v6567_v57 = vsub.f32 %v6466_v15, %v544_v46  ;;  %v6572_v60 = vsub.f32 %v6475_v18, %v544_v46  ;;  %v6577_v63 = vsub.f32 %v6484_v21, %v544_v46  ;;  %v5939_v15 = vld [vmem:[%s7444_s5 + $0x28] sm:$0xff]   ;;  %v5942_v18 = vld [vmem:[%s7445_s6 + $0x20] sm:$0xff]   ;;  %v5945_v21 = vld [vmem:[%s7444_s5 + $0x10] sm:$0xff]  }
  0xff   : > { %v553_v52 = vmul.f32 %v6546_v48, %v6546_v48  ;;  %v554_v53 = vmul.f32 %v6549_v49, %v6549_v49  ;;  %v555_v55 = vmul.f32 %v6552_v50, %v6552_v50  ;;  %v556_v58 = vmul.f32 %v6555_v51, %v6555_v51  ;;  %5408 = vmatprep.subr.bf16.mxu0 %v5939_v15 }
 0x100   : > { %v557_v61 = vmul.f32 %v6562_v54, %v6562_v54  ;;  %v558_v0 = vmul.f32 %v6567_v57, %v6567_v57  ;;  %v559_v2 = vmul.f32 %v6572_v60, %v6572_v60  ;;  %v560_v4 = vmul.f32 %v6577_v63, %v6577_v63  ;;  %5409 = vmatpush3.bf16.msra.mxu0 %v5939_v15  ;;  %v5975_v15 = vld [vmem:[%s7444_s5 + $0x98] sm:$0xff]  }
 0x101   : > { %v561_v56 = vadd.f32 %v554_v53, %v553_v52  ;;  %5410 = vmatprep.subr.bf16.mxu0 %v5941_v17 }
 0x103   : > { %v562_v59 = vadd.f32 %v561_v56, %v555_v55 }
 0x104   : > { %5411 = vmatpush3.bf16.msra.mxu0 %v5941_v17  ;;  %v5977_v17 = vld [vmem:[%s7444_s5 + $0x90] sm:$0xff]  }
 0x105   : > { %v563_v62 = vadd.f32 %v562_v59, %v556_v58  ;;  %5412 = vmatprep.subr.bf16.mxu0 %v5943_v19  ;;  %v5954_v58 = vld [vmem:[%s7445_s6 + $0x70] sm:$0xff]   ;;  %v5955_v59 = vld [vmem:[%s7444_s5 + $0x68] sm:$0xff]  }
 0x107   : > { %v564_v1 = vadd.f32 %v563_v62, %v557_v61  ;;  %v5957_v61 = vld [vmem:[%s7444_s5 + $0x60] sm:$0xff]  }
 0x108   : > { %5413 = vmatpush3.bf16.msra.mxu0 %v5943_v19  ;;  %v5958_v62 = vld [vmem:[%s7445_s6 + $0x60] sm:$0xff]   ;;  %v5979_v19 = vld [vmem:[%s7444_s5 + $0x88] sm:$0xff]  }
 0x109   : > { %v565_v3 = vadd.f32 %v564_v1, %v558_v0  ;;  %5414 = vmatprep.subr.bf16.mxu0 %v5945_v21  ;;  %v5960_v0 = vld [vmem:[%s7445_s6 + $0x58] sm:$0xff]   ;;  %v5961_v1 = vld [vmem:[%s7444_s5 + $0x50] sm:$0xff]  }
 0x10b   : > { %v566_v5 = vadd.f32 %v565_v3, %v559_v2  ;;  %v5962_v2 = vld [vmem:[%s7445_s6 + $0x50] sm:$0xff]   ;;  %v5963_v3 = vld [vmem:[%s7444_s5 + $0x48] sm:$0xff]  }
 0x10c   : > { %5415 = vmatpush3.bf16.msra.mxu0 %v5945_v21  ;;  %v5981_v21 = vld [vmem:[%s7444_s5 + $0x80] sm:$0xff]  }
 0x10d   : > { %v567_v6 = vadd.f32 %v566_v5, %v560_v4  ;;  %5416 = vmatprep.subr.bf16.mxu0 %v5947_v23  ;;  %v5964_v4 = vld [vmem:[%s7445_s6 + $0x48] sm:$0xff]   ;;  %v5965_v5 = vld [vmem:[%s7444_s5 + $0x40] sm:$0xff]  }
 0x10f   : > { %v568_v7 = vrot.slane %v567_v6, 4 }
 0x110   : > { %5417 = vmatpush3.bf16.msra.mxu0 %v5947_v23  ;;  %v5983_v23 = vld [vmem:[%s7444_s5 + $0xf8] sm:$0xff]  }
 0x111   : > { %v569_v8 = vadd.f32 %v568_v7, %v567_v6  ;;  %5418 = vmatprep.subr.bf16.mxu0 %v5949_v25  ;;  %v5966_v6 = vld [vmem:[%s7445_s6 + $0x40] sm:$0xff]   ;;  %v5967_v7 = vld [vmem:[%s7444_s5 + $0xb8] sm:$0xff]  }
 0x113   : > { %v570_v9 = vrot.slane %v569_v8, 2 }
 0x114   : > { %5419 = vmatpush3.bf16.msra.mxu0 %v5949_v25  ;;  %v5985_v25 = vld [vmem:[%s7444_s5 + $0xf0] sm:$0xff]  }
 0x115   : > { %v571_v10 = vadd.f32 %v570_v9, %v569_v8  ;;  %5452 = vmatprep.subr.bf16.mxu0 %v5951_v27  ;;  %v5968_v8 = vld [vmem:[%s7445_s6 + $0xb8] sm:$0xff]   ;;  %v5969_v9 = vld [vmem:[%s7444_s5 + $0xb0] sm:$0xff]  }
 0x117   : > { %v572_v11 = vrot.slane %v571_v10, 1 }
 0x119   : > { %v573_v12 = vadd.f32 %v572_v11, %v571_v10  ;;  %v5970_v10 = vld [vmem:[%s7445_s6 + $0xb0] sm:$0xff]   ;;  %v5971_v11 = vld [vmem:[%s7444_s5 + $0xa8] sm:$0xff]  }
 0x11b   : > { %v574_v13 = vmul.f32 0.015625, %v573_v12  ;;  %v5972_v12 = vld [vmem:[%s7445_s6 + $0xa8] sm:$0xff]  }
 0x11d   : > { %5402 = vmatmul.mubr.f32.vlgmr.msra.gmra.mxu1 %v574_v13  ;;  %v5973_v13 = vld [vmem:[%s7444_s5 + $0xa0] sm:$0xff]  }
 0x11e   : > { %5429 = vmatpush3.bf16.msra.mxu1 %v5936_v40 }
 0x11f   : > { %5430 = vmatprep.subr.bf16.mxu1 %v5938_v14 }
 0x122   : > { %5431 = vmatpush3.bf16.msra.mxu1 %v5938_v14  ;;  %v5974_v14 = vld [vmem:[%s7445_s6 + $0xa0] sm:$0xff]  }
 0x123   : > { %5432 = vmatprep.subr.bf16.mxu1 %v5940_v16 }
 0x126   : > { %5433 = vmatpush3.bf16.msra.mxu1 %v5940_v16  ;;  %v5976_v16 = vld [vmem:[%s7445_s6 + $0x98] sm:$0xff]  }
 0x127   : > { %5434 = vmatprep.subr.bf16.mxu1 %v5942_v18 }
 0x12a   : > { %5435 = vmatpush3.bf16.msra.mxu1 %v5942_v18  ;;  %v5978_v18 = vld [vmem:[%s7445_s6 + $0x90] sm:$0xff]  }
 0x12b   : > { %5436 = vmatprep.subr.bf16.mxu1 %v5944_v20 }
 0x12e   : > { %5437 = vmatpush3.bf16.msra.mxu1 %v5944_v20  ;;  %v5980_v20 = vld [vmem:[%s7445_s6 + $0x88] sm:$0xff]  }
 0x12f   : > { %5438 = vmatprep.subr.bf16.mxu1 %v5946_v22 }
 0x132   : > { %5439 = vmatpush3.bf16.msra.mxu1 %v5946_v22  ;;  %v5982_v22 = vld [vmem:[%s7445_s6 + $0x80] sm:$0xff]  }
 0x133   : > { %5440 = vmatprep.subr.bf16.mxu1 %v5948_v24 }
 0x136   : > { %5441 = vmatpush3.bf16.msra.mxu1 %v5948_v24  ;;  %v5984_v24 = vld [vmem:[%s7445_s6 + $0xf8] sm:$0xff]  }
 0x137   : > { %5442 = vmatprep.subr.bf16.mxu1 %v5950_v26 }
 0x13a   : > { %5443 = vmatpush3.bf16.msra.mxu1 %v5950_v26  ;;  %v5986_v26 = vld [vmem:[%s7445_s6 + $0xf0] sm:$0xff]  }
 0x13b   : > { %5476 = vmatprep.subr.bf16.mxu1 %v5952_v28 }
 0x1dd   : > { %v641_v29 = vpop.f32.mrf.mxu1 }
 0x1de   : > { %v642_v30 = vadd.f32 1e-06, %v641_v29  ;;  %v5989_v29 = vld [vmem:[%s7444_s5 + $0xe0] sm:$0xff]  }
 0x1df   : > { %v5403_v31 = vpop.f32.mrf.mxu1 }
 0x1e0   : > { %6071 = vrsqrt.f32 %v642_v30  ;;  %v5990_v30 = vld [vmem:[%s7445_s6 + $0xe0] sm:$0xff]   ;;  %v5991_v31 = vld [vmem:[%s7444_s5 + $0xd8] sm:$0xff]  }
 0x1ed   : > { %v6072_v33 = vpop.eup %6071 }
 0x1ee   : > { %v647_v34 = vmul.f32 %v6072_v33, %v646_v32  ;;  %v5992_v32 = vld [vmem:[%s7445_s6 + $0xd8] sm:$0xff]   ;;  %v5993_v33 = vld [vmem:[%s7444_s5 + $0xd0] sm:$0xff]  }
 0x1f0   : > { %v651_v35 = vrot.slane %v647_v34, %v543_v44  ;;  %v5994_v34 = vld [vmem:[%s7445_s6 + $0xd0] sm:$0xff]  }
 0x1f2   : > { %v652_v37 = vmul.f32 %v651_v35, %v6546_v48  ;;  %v653_v38 = vmul.f32 %v651_v35, %v6549_v49  ;;  %v654_v39 = vmul.f32 %v651_v35, %v6552_v50  ;;  %v655_v40 = vmul.f32 %v651_v35, %v6555_v51 }
 0x1f3   : > { %v656_v41 = vmul.f32 %v651_v35, %v6562_v54  ;;  %v657_v42 = vmul.f32 %v651_v35, %v6567_v57  ;;  %v658_v45 = vmul.f32 %v651_v35, %v6572_v60  ;;  %v659_v43 = vmul.f32 %v651_v35, %v6577_v63  ;;  %v5953_v57 = vld [vmem:[%s7444_s5 + $0x70] sm:$0xff]   ;;  %v5956_v60 = vld [vmem:[%s7445_s6 + $0x68] sm:$0xff]   ;;  %v5959_v63 = vld [vmem:[%s7444_s5 + $0x58] sm:$0xff]  }
 0x1f4   : > { %v667_v44 = vadd.f32 %v4541_v36, %v652_v37  ;;  %v668_v46 = vadd.f32 %v4541_v36, %v653_v38  ;;  %v669_v47 = vadd.f32 %v4541_v36, %v654_v39  ;;  %v670_v52 = vadd.f32 %v4541_v36, %v655_v40  ;;  %v5995_v35 = vld [vmem:[%s7444_s5 + $0xc8] sm:$0xff]   ;;  %v5997_v37 = vld [vmem:[%s7444_s5 + $0xc0] sm:$0xff]   ;;  %v5999_v39 = vld [vmem:[%s7443_s4 + $0x38] sm:$0xff]  }
 0x1f5   : > { %v671_v53 = vadd.f32 %v4541_v36, %v656_v41  ;;  %v672_v48 = vadd.f32 %v4541_v36, %v657_v42  ;;  %v673_v55 = vadd.f32 %v4541_v36, %v658_v45  ;;  %v674_v49 = vadd.f32 %v4541_v36, %v659_v43  ;;  %v5996_v36 = vld [vmem:[%s7445_s6 + $0xc8] sm:$0xff]   ;;  %v5998_v38 = vld [vmem:[%s7445_s6 + $0xc0] sm:$0xff]   ;;  %v6000_v40 = vld [vmem:[%s7443_s4 + $0x30] sm:$0xff]  }
 0x1f6   : > { %v6646_v56 = vpack.c.bf16 %v668_v46, %v667_v44  ;;  %v6648_v50 = vpack.c.bf16 %v670_v52, %v669_v47  ;;  %v6001_v41 = vld [vmem:[%s7443_s4 + $0x28] sm:$0xff]   ;;  %v6003_v45 = vld [vmem:[%s7443_s4 + $0x20] sm:$0xff]   ;;  %v6004_v43 = vld [vmem:[%s7443_s4 + $0x18] sm:$0xff]  }
 0x1f7   : > { %v6650_v51 = vpack.c.bf16 %v672_v48, %v671_v53  ;;  %v6652_v54 = vpack.c.bf16 %v674_v49, %v673_v55  ;;  %v6005_v44 = vld [vmem:[%s7443_s4 + $0x10] sm:$0xff]   ;;  %v6006_v46 = vld [vmem:[%s7443_s4 + $0x8] sm:$0xff]   ;;  %v6007_v47 = vld [vmem:[%s7443_s4] sm:$0xff]  }
 0x1f8   : > { %5420 = vmatprep.mubr.bf16.mxu0 %v6646_v56  ;;  %5053 = vst [vmem:[#allocation2] sm:$0xff] %v6646_v56   ;;  %5444 = vmatprep.mubr.bf16.mxu1 %v6646_v56  ;;  %5069 = vst [vmem:[#allocation2 + $0x8] sm:$0xff] %v6648_v50   ;;  %v4550_v55 = vld [vmem:[%s7447_s8] ss:$0 sm:$0xff] }
 0x1f9   : > { %5421 = vmatmul.mubr.bf16.vlgmr.msra.gmra.mxu0 %v6648_v50  ;;  %5445 = vmatmul.mubr.bf16.vlgmr.msra.gmra.mxu1 %v6648_v50  ;;  %5070 = vst [vmem:[#allocation2 + $0x10] sm:$0xff] %v6650_v51   ;;  %5071 = vst [vmem:[#allocation2 + $0x18] sm:$0xff] %v6652_v54   ;;  %v4567_v49 = vld [vmem:[%s7448_s9] ss:$0 sm:$0xff] }
 0x1fa   : > { %5453 = vmatpush3.bf16.msra.mxu0 %v5951_v27  ;;  %5477 = vmatpush3.bf16.msra.mxu1 %v5952_v28  ;;  %v5987_v27 = vld [vmem:[%s7444_s5 + $0xe8] sm:$0xff]  }
 0x1fb   : > { %5424 = vmatprep.mubr.bf16.mxu0 %v6650_v51  ;;  %5448 = vmatprep.mubr.bf16.mxu1 %v6650_v51  ;;  %v5988_v28 = vld [vmem:[%s7445_s6 + $0xe8] sm:$0xff]  }
 0x1fc   : > { %5454 = vmatprep.subr.bf16.mxu0 %v5953_v57  ;;  %5478 = vmatprep.subr.bf16.mxu1 %v5954_v58 }
 0x1fe   : > { %5455 = vmatpush3.bf16.msra.mxu0 %v5953_v57  ;;  %5479 = vmatpush3.bf16.msra.mxu1 %v5954_v58 }
 0x1ff   : > { %5456 = vmatprep.subr.bf16.mxu0 %v5955_v59  ;;  %5480 = vmatprep.subr.bf16.mxu1 %v5956_v60  ;;  %v6835_v42 = vld [vmem:[#allocation2] sm:$0xff]   ;;  %v6855_v52 = vld [vmem:[#allocation2 + $0x8] sm:$0xff]  }
 0x200   : > { %v6857_v53 = vld [vmem:[#allocation2 + $0x10] sm:$0xff]   ;;  %v6861_v48 = vld [vmem:[#allocation2 + $0x18] sm:$0xff]  }
 0x201   : > { %5425 = vmatmul.mubr.bf16.gmra.mxu0 %v6652_v54  ;;  %5449 = vmatmul.mubr.bf16.gmra.mxu1 %v6652_v54 }
 0x202   : > { %5457 = vmatpush3.bf16.msra.mxu0 %v5955_v59  ;;  %5481 = vmatpush3.bf16.msra.mxu1 %v5956_v60 }
 0x203   : > { %5468 = vmatprep.mubr.bf16.mxu0 %v6646_v56  ;;  %5492 = vmatprep.mubr.bf16.mxu1 %v6646_v56 }
 0x204   : > { %5458 = vmatprep.subr.bf16.mxu0 %v5957_v61  ;;  %5482 = vmatprep.subr.bf16.mxu1 %v5958_v62 }
 0x206   : > { %5459 = vmatpush3.bf16.msra.mxu0 %v5957_v61  ;;  %5483 = vmatpush3.bf16.msra.mxu1 %v5958_v62 }
 0x207   : > { %5460 = vmatprep.subr.bf16.mxu0 %v5959_v63  ;;  %5484 = vmatprep.subr.bf16.mxu1 %v5960_v0 }
 0x20a   : > { %5461 = vmatpush3.bf16.msra.mxu0 %v5959_v63  ;;  %5485 = vmatpush3.bf16.msra.mxu1 %v5960_v0 }
 0x20b   : > { %5462 = vmatprep.subr.bf16.mxu0 %v5961_v1  ;;  %5486 = vmatprep.subr.bf16.mxu1 %v5962_v2 }
 0x20e   : > { %5463 = vmatpush3.bf16.msra.mxu0 %v5961_v1  ;;  %5487 = vmatpush3.bf16.msra.mxu1 %v5962_v2 }
 0x20f   : > { %5464 = vmatprep.subr.bf16.mxu0 %v5963_v3  ;;  %5488 = vmatprep.subr.bf16.mxu1 %v5964_v4 }
 0x212   : > { %5465 = vmatpush3.bf16.msra.mxu0 %v5963_v3  ;;  %5489 = vmatpush3.bf16.msra.mxu1 %v5964_v4 }
 0x213   : > { %5466 = vmatprep.subr.bf16.mxu0 %v5965_v5  ;;  %5490 = vmatprep.subr.bf16.mxu1 %v5966_v6 }
 0x216   : > { %5467 = vmatpush3.bf16.msra.mxu0 %v5965_v5  ;;  %5491 = vmatpush3.bf16.msra.mxu1 %v5966_v6 }
 0x217   : > { %5500 = vmatprep.subr.bf16.mxu0 %v5967_v7  ;;  %5524 = vmatprep.subr.bf16.mxu1 %v5968_v8 }
 0x219   : > { %5469 = vmatmul.mubr.bf16.vlgmr.msra.gmra.mxu0 %v6648_v50  ;;  %5493 = vmatmul.mubr.bf16.vlgmr.msra.gmra.mxu1 %v6648_v50 }
 0x21a   : > { %5472 = vmatprep.mubr.bf16.mxu0 %v6650_v51  ;;  %5496 = vmatprep.mubr.bf16.mxu1 %v6650_v51 }
 0x21b   : > { %5501 = vmatpush3.bf16.msra.mxu0 %v5967_v7  ;;  %5525 = vmatpush3.bf16.msra.mxu1 %v5968_v8 }
 0x21c   : > { %5502 = vmatprep.subr.bf16.mxu0 %v5969_v9  ;;  %5526 = vmatprep.subr.bf16.mxu1 %v5970_v10 }
 0x21f   : > { %5503 = vmatpush3.bf16.msra.mxu0 %v5969_v9  ;;  %5527 = vmatpush3.bf16.msra.mxu1 %v5970_v10 }
 0x220   : > { %5504 = vmatprep.subr.bf16.mxu0 %v5971_v11  ;;  %5528 = vmatprep.subr.bf16.mxu1 %v5972_v12 }
 0x221   : > { %5473 = vmatmul.mubr.bf16.gmra.mxu0 %v6652_v54  ;;  %5497 = vmatmul.mubr.bf16.gmra.mxu1 %v6652_v54 }
 0x222   : > { %5516 = vmatprep.mubr.bf16.mxu0 %v6646_v56  ;;  %5540 = vmatprep.mubr.bf16.mxu1 %v6646_v56 }
 0x223   : > { %5505 = vmatpush3.bf16.msra.mxu0 %v5971_v11  ;;  %5529 = vmatpush3.bf16.msra.mxu1 %v5972_v12 }
 0x224   : > { %5506 = vmatprep.subr.bf16.mxu0 %v5973_v13  ;;  %5530 = vmatprep.subr.bf16.mxu1 %v5974_v14 }
 0x227   : > { %5507 = vmatpush3.bf16.msra.mxu0 %v5973_v13  ;;  %5531 = vmatpush3.bf16.msra.mxu1 %v5974_v14 }
 0x228   : > { %5508 = vmatprep.subr.bf16.mxu0 %v5975_v15  ;;  %5532 = vmatprep.subr.bf16.mxu1 %v5976_v16 }
 0x22b   : > { %5509 = vmatpush3.bf16.msra.mxu0 %v5975_v15  ;;  %5533 = vmatpush3.bf16.msra.mxu1 %v5976_v16 }
 0x22c   : > { %5510 = vmatprep.subr.bf16.mxu0 %v5977_v17  ;;  %5534 = vmatprep.subr.bf16.mxu1 %v5978_v18 }
 0x22f   : > { %5511 = vmatpush3.bf16.msra.mxu0 %v5977_v17  ;;  %5535 = vmatpush3.bf16.msra.mxu1 %v5978_v18 }
 0x230   : > { %5512 = vmatprep.subr.bf16.mxu0 %v5979_v19  ;;  %5536 = vmatprep.subr.bf16.mxu1 %v5980_v20 }
 0x233   : > { %5513 = vmatpush3.bf16.msra.mxu0 %v5979_v19  ;;  %5537 = vmatpush3.bf16.msra.mxu1 %v5980_v20 }
 0x234   : > { %5514 = vmatprep.subr.bf16.mxu0 %v5981_v21  ;;  %5538 = vmatprep.subr.bf16.mxu1 %v5982_v22 }
 0x237   : > { %5515 = vmatpush3.bf16.msra.mxu0 %v5981_v21  ;;  %5539 = vmatpush3.bf16.msra.mxu1 %v5982_v22 }
 0x238   : > { %5548 = vmatprep.subr.bf16.mxu0 %v5983_v23  ;;  %5572 = vmatprep.subr.bf16.mxu1 %v5984_v24 }
 0x23a   : > { %5517 = vmatmul.mubr.bf16.vlgmr.msra.gmra.mxu0 %v6648_v50  ;;  %5541 = vmatmul.mubr.bf16.vlgmr.msra.gmra.mxu1 %v6648_v50 }
 0x23b   : > { %5520 = vmatprep.mubr.bf16.mxu0 %v6650_v51  ;;  %5544 = vmatprep.mubr.bf16.mxu1 %v6650_v51 }
 0x23c   : > { %5549 = vmatpush3.bf16.msra.mxu0 %v5983_v23  ;;  %5573 = vmatpush3.bf16.msra.mxu1 %v5984_v24 }
 0x23d   : > { %5550 = vmatprep.subr.bf16.mxu0 %v5985_v25  ;;  %5574 = vmatprep.subr.bf16.mxu1 %v5986_v26 }
 0x240   : > { %5551 = vmatpush3.bf16.msra.mxu0 %v5985_v25  ;;  %5575 = vmatpush3.bf16.msra.mxu1 %v5986_v26 }
 0x241   : > { %5552 = vmatprep.subr.bf16.mxu0 %v5987_v27  ;;  %5576 = vmatprep.subr.bf16.mxu1 %v5988_v28 }
 0x242   : > { %5521 = vmatmul.mubr.bf16.gmra.mxu0 %v6652_v54  ;;  %5545 = vmatmul.mubr.bf16.gmra.mxu1 %v6652_v54 }
 0x243   : > { %5564 = vmatprep.mubr.bf16.mxu0 %v6646_v56  ;;  %5588 = vmatprep.mubr.bf16.mxu1 %v6646_v56 }
 0x244   : > { %5553 = vmatpush3.bf16.msra.mxu0 %v5987_v27  ;;  %5577 = vmatpush3.bf16.msra.mxu1 %v5988_v28 }
 0x245   : > { %5554 = vmatprep.subr.bf16.mxu0 %v5989_v29  ;;  %5578 = vmatprep.subr.bf16.mxu1 %v5990_v30 }
 0x248   : > { %5555 = vmatpush3.bf16.msra.mxu0 %v5989_v29  ;;  %5579 = vmatpush3.bf16.msra.mxu1 %v5990_v30 }
 0x249   : > { %5556 = vmatprep.subr.bf16.mxu0 %v5991_v31  ;;  %5580 = vmatprep.subr.bf16.mxu1 %v5992_v32 }
 0x24c   : > { %5557 = vmatpush3.bf16.msra.mxu0 %v5991_v31  ;;  %5581 = vmatpush3.bf16.msra.mxu1 %v5992_v32 }
 0x24d   : > { %5558 = vmatprep.subr.bf16.mxu0 %v5993_v33  ;;  %5582 = vmatprep.subr.bf16.mxu1 %v5994_v34 }
 0x250   : > { %5559 = vmatpush3.bf16.msra.mxu0 %v5993_v33  ;;  %5583 = vmatpush3.bf16.msra.mxu1 %v5994_v34 }
 0x251   : > { %5560 = vmatprep.subr.bf16.mxu0 %v5995_v35  ;;  %5584 = vmatprep.subr.bf16.mxu1 %v5996_v36 }
 0x254   : > { %5561 = vmatpush3.bf16.msra.mxu0 %v5995_v35  ;;  %5585 = vmatpush3.bf16.msra.mxu1 %v5996_v36 }
 0x255   : > { %5562 = vmatprep.subr.bf16.mxu0 %v5997_v37  ;;  %5586 = vmatprep.subr.bf16.mxu1 %v5998_v38 }
 0x258   : > { %5563 = vmatpush3.bf16.msra.mxu0 %v5997_v37  ;;  %5587 = vmatpush3.bf16.msra.mxu1 %v5998_v38 }
 0x259   : > { %5596 = vmatprep.subr.bf16.mxu0 %v5999_v39 }
 0x25b   : > { %5565 = vmatmul.mubr.bf16.vlgmr.msra.gmra.mxu0 %v6648_v50  ;;  %5589 = vmatmul.mubr.bf16.vlgmr.msra.gmra.mxu1 %v6648_v50 }
 0x25c   : > { %5568 = vmatprep.mubr.bf16.mxu0 %v6650_v51  ;;  %5592 = vmatprep.mubr.bf16.mxu1 %v6650_v51 }
 0x25d   : > { %5597 = vmatpush3.bf16.msra.mxu0 %v5999_v39 }
 0x25e   : > { %5598 = vmatprep.subr.bf16.mxu0 %v6000_v40 }
 0x261   : > { %5599 = vmatpush3.bf16.msra.mxu0 %v6000_v40 }
 0x262   : > { %5600 = vmatprep.subr.bf16.mxu0 %v6001_v41 }
 0x263   : > { %5569 = vmatmul.mubr.bf16.gmra.mxu0 %v6652_v54  ;;  %5593 = vmatmul.mubr.bf16.gmra.mxu1 %v6652_v54 }
 0x264   : > { %5612 = vmatprep.mubr.bf16.mxu0 %v6835_v42 }
 0x265   : > { %5601 = vmatpush3.bf16.msra.mxu0 %v6001_v41 }
 0x266   : > { %5602 = vmatprep.subr.bf16.mxu0 %v6003_v45 }
 0x269   : > { %5603 = vmatpush3.bf16.msra.mxu0 %v6003_v45  ;;  %v6892_v45 = vld [vmem:[%s7447_s8 + $0x1] ss:$0 sm:$0xff] }
 0x26a   : > { %5604 = vmatprep.subr.bf16.mxu0 %v6004_v43 }
 0x26d   : > { %5605 = vmatpush3.bf16.msra.mxu0 %v6004_v43  ;;  %v6897_v43 = vld [vmem:[%s7448_s9 + $0x1] ss:$0 sm:$0xff] }
 0x26e   : > { %5606 = vmatprep.subr.bf16.mxu0 %v6005_v44 }
 0x271   : > { %5607 = vmatpush3.bf16.msra.mxu0 %v6005_v44 }
 0x272   : > { %5608 = vmatprep.subr.bf16.mxu0 %v6006_v46 }
 0x275   : > { %5609 = vmatpush3.bf16.msra.mxu0 %v6006_v46 }
 0x276   : > { %5610 = vmatprep.subr.bf16.mxu0 %v6007_v47 }
 0x279   : > { %5611 = vmatpush3.bf16.msra.mxu0 %v6007_v47 }
 0x27c   : > { %5613 = vmatmul.mubr.bf16.vlgmr.msra.gmra.mxu0 %v6855_v52 }
 0x27d   : > { %5616 = vmatprep.mubr.bf16.mxu0 %v6857_v53 }
 0x284   : > { %5617 = vmatmul.mubr.bf16.gmra.mxu0 %v6861_v48 }
 0x2b9   : > { %v5422_v56 = vpop.f32.mrf.mxu0  ;;  %v5446_v50 = vpop.f32.mrf.mxu1 }
 0x2ba   : > { %v829_v51 = vadd.f32 %v5422_v56, %v4550_v55  ;;  %v1006_v54 = vadd.f32 %v5446_v50, %v4567_v49 }
 0x2bb   : > { %v820_v57 = vpop.f32.mrf.mxu0  ;;  %v997_v58 = vpop.f32.mrf.mxu1 }
 0x2bc   : > { %v4986_v59 = vpack.c.bf16 %v829_v51, %v829_v51  ;;  %v4994_v60 = vpack.c.bf16 %v1006_v54, %v1006_v54  ;;  %v821_v61 = vadd.f32 %v4550_v55, %v820_v57  ;;  %v998_v62 = vadd.f32 %v4567_v49, %v997_v58 }
 0x2bd   : > { %v5423_v63 = vpop.f32.mrf.mxu0  ;;  %v5447_v0 = vpop.f32.mrf.mxu1 }
 0x2be   : > { %886 = vst.msk [vmem:[#allocation3 + $0x8] sm:$0xf] %vm883_vm1, %v4986_v59  ;;  %1062 = vst.msk [vmem:[#allocation4 + $0x8] sm:$0xf] %vm883_vm1, %v4994_v60  ;;  %v4984_v1 = vpack.c.bf16 %v821_v61, %v821_v61  ;;  %v4992_v2 = vpack.c.bf16 %v998_v62, %v998_v62  ;;  %v832_v3 = vadd.f32 %v5423_v63, %v4550_v55 }
 0x2bf   : > { %v1009_v4 = vadd.f32 %v5447_v0, %v4567_v49  ;;  %v823_v5 = vpop.f32.mrf.mxu0  ;;  %v1000_v6 = vpop.f32.mrf.mxu1 }
 0x2c0   : > { %884 = vst.msk [vmem:[#allocation3] sm:$0xf] %vm883_vm1, %v4984_v1  ;;  %1060 = vst.msk [vmem:[#allocation4] sm:$0xf] %vm883_vm1, %v4992_v2  ;;  %v4987_v7 = vpack.c.bf16 %v832_v3, %v832_v3  ;;  %v824_v9 = vadd.f32 %v4550_v55, %v823_v5  ;;  %v1001_v10 = vadd.f32 %v4567_v49, %v1000_v6 }
 0x2c1   : > { %v4995_v8 = vpack.c.bf16 %v1009_v4, %v1009_v4  ;;  %v5426_v11 = vpop.f32.mrf.mxu0  ;;  %v5450_v12 = vpop.f32.mrf.mxu1 }
 0x2c2   : > { %887 = vst.msk [vmem:[#allocation3 + $0xc] sm:$0xf] %vm883_vm1, %v4987_v7  ;;  %v4985_v13 = vpack.c.bf16 %v824_v9, %v824_v9  ;;  %v4993_v14 = vpack.c.bf16 %v1001_v10, %v1001_v10  ;;  %v845_v15 = vadd.f32 %v5426_v11, %v4550_v55  ;;  %v1022_v16 = vadd.f32 %v5450_v12, %v4567_v49 }
 0x2c3   : > { %1063 = vst.msk [vmem:[#allocation4 + $0xc] sm:$0xf] %vm883_vm1, %v4995_v8  ;;  %v836_v17 = vpop.f32.mrf.mxu0  ;;  %v1013_v18 = vpop.f32.mrf.mxu1 }
 0x2c4   : > { %885 = vst.msk [vmem:[#allocation3 + $0x4] sm:$0xf] %vm883_vm1, %v4985_v13  ;;  %1061 = vst.msk [vmem:[#allocation4 + $0x4] sm:$0xf] %vm883_vm1, %v4993_v14  ;;  %v4990_v19 = vpack.c.bf16 %v845_v15, %v845_v15  ;;  %v4998_v20 = vpack.c.bf16 %v1022_v16, %v1022_v16  ;;  %v837_v21 = vadd.f32 %v4550_v55, %v836_v17 }
 0x2c5   : > { %v1014_v22 = vadd.f32 %v4567_v49, %v1013_v18  ;;  %v5427_v23 = vpop.f32.mrf.mxu0  ;;  %v5451_v24 = vpop.f32.mrf.mxu1 }
 0x2c6   : > { %890 = vst.msk [vmem:[#allocation3 + $0x18] sm:$0xf] %vm883_vm1, %v4990_v19  ;;  %1066 = vst.msk [vmem:[#allocation4 + $0x18] sm:$0xf] %vm883_vm1, %v4998_v20  ;;  %v4988_v25 = vpack.c.bf16 %v837_v21, %v837_v21  ;;  %v848_v27 = vadd.f32 %v5427_v23, %v4550_v55  ;;  %v1025_v28 = vadd.f32 %v5451_v24, %v4567_v49 }
 0x2c7   : > { %v4996_v26 = vpack.c.bf16 %v1014_v22, %v1014_v22  ;;  %v839_v29 = vpop.f32.mrf.mxu0  ;;  %v1016_v30 = vpop.f32.mrf.mxu1 }
 0x2c8   : > { %888 = vst.msk [vmem:[#allocation3 + $0x10] sm:$0xf] %vm883_vm1, %v4988_v25  ;;  %v4991_v31 = vpack.c.bf16 %v848_v27, %v848_v27  ;;  %v4999_v32 = vpack.c.bf16 %v1025_v28, %v1025_v28  ;;  %v840_v33 = vadd.f32 %v4550_v55, %v839_v29  ;;  %v1017_v34 = vadd.f32 %v4567_v49, %v1016_v30 }
 0x2c9   : > { %1064 = vst.msk [vmem:[#allocation4 + $0x10] sm:$0xf] %vm883_vm1, %v4996_v26  ;;  %v6016_v54 = vld [vmem:[#allocation3 + $0x8] sm:$0xff]  }
 0x2ca   : > { %891 = vst.msk [vmem:[#allocation3 + $0x1c] sm:$0xf] %vm883_vm1, %v4991_v31  ;;  %1067 = vst.msk [vmem:[#allocation4 + $0x1c] sm:$0xf] %vm883_vm1, %v4999_v32  ;;  %v4989_v35 = vpack.c.bf16 %v840_v33, %v840_v33  ;;  %v4997_v36 = vpack.c.bf16 %v1017_v34, %v1017_v34  ;;  %v6015_v44 = vld [vmem:[#allocation4 + $0x8] sm:$0xff]   ;;  %v2364_v18 = vsel %vm2347_vm2, %v6016_v54, 0 }
 0x2cb   : > { %v6017_v61 = vld [vmem:[#allocation4] sm:$0xff]  }
 0x2cc   : > { %889 = vst.msk [vmem:[#allocation3 + $0x14] sm:$0xf] %vm883_vm1, %v4989_v35  ;;  %1065 = vst.msk [vmem:[#allocation4 + $0x14] sm:$0xf] %vm883_vm1, %v4997_v36  ;;  %v6018_v19 = vld [vmem:[#allocation3] sm:$0xff]   ;;  %v6934_v36 = vld [vmem:[%s7443_s4 + $0x78] sm:$0xff]  }
 0x2d1   : > { %v6011_v37 = vld [vmem:[#allocation3 + $0x18] sm:$0xff]  }
 0x2d2   : > { %v6012_v38 = vld [vmem:[#allocation4 + $0x18] sm:$0xff]   ;;  %5860 = vmatprep.subr.msk.bf16.mxu1 %vm2347_vm2, %v6011_v37  ;;  %v2370_v39 = vsel %vm2347_vm2, %v6011_v37, 0 }
 0x2d3   : > { %v6013_v40 = vld [vmem:[#allocation3 + $0x10] sm:$0xff]   ;;  %5636 = vmatprep.subr.bf16.mxu0 %v6012_v38  ;;  %5621 = vmatpush3.bf16.xpose.msra.mxu1 %v2370_v39  ;;  %v2361_v39 = vsel %vm2347_vm2, %v6018_v19, 0 }
 0x2d4   : > { %v6014_v41 = vld [vmem:[#allocation4 + $0x10] sm:$0xff]   ;;  %5637 = vmatpush3.bf16.msra.mxu0 %v6012_v38  ;;  %5861 = vmatprep.subr.msk.bf16.mxu1 %vm2347_vm2, %v6013_v40  ;;  %v2367_v51 = vsel %vm2347_vm2, %v6013_v40, 0 }
 0x2d5   : > { %5638 = vmatprep.subr.bf16.mxu0 %v6014_v41 }
 0x2d8   : > { %5639 = vmatpush3.bf16.msra.mxu0 %v6014_v41  ;;  %v4669_v41 = vld [vmem:[%s7447_s8 + $0x2] ss:$0 sm:$0xff] }
 0x2d9   : > { %v5470_v46 = vpop.f32.mrf.mxu0  ;;  %v5494_v47 = vpop.f32.mrf.mxu1  ;;  %5640 = vmatprep.subr.bf16.mxu0 %v6015_v44 }
 0x2da   : > { %v1184_v55 = vadd.f32 %v5470_v46, %v6892_v45  ;;  %v1363_v49 = vadd.f32 %v5494_v47, %v6897_v43 }
 0x2db   : > { %v1175_v56 = vpop.f32.mrf.mxu0  ;;  %v1354_v50 = vpop.f32.mrf.mxu1  ;;  %5623 = vmatpush3.bf16.xpose.msra.mxu1 %v2367_v51 }
 0x2dc   : > { %v5002_v57 = vpack.c.bf16 %v1184_v55, %v1184_v55  ;;  %v5010_v58 = vpack.c.bf16 %v1363_v49, %v1363_v49  ;;  %v1176_v59 = vadd.f32 %v6892_v45, %v1175_v56  ;;  %v1355_v60 = vadd.f32 %v6897_v43, %v1354_v50  ;;  %5641 = vmatpush3.bf16.msra.mxu0 %v6015_v44 }
 0x2dd   : > { %v5471_v62 = vpop.f32.mrf.mxu0  ;;  %v5495_v63 = vpop.f32.mrf.mxu1  ;;  %5862 = vmatprep.subr.msk.bf16.mxu1 %vm2347_vm2, %v6016_v54  ;;  %5642 = vmatprep.subr.bf16.mxu0 %v6017_v61 }
 0x2de   : > { %1241 = vst.msk [vmem:[#allocation3 + $0x28] sm:$0xf] %vm883_vm1, %v5002_v57  ;;  %1420 = vst.msk [vmem:[#allocation4 + $0x28] sm:$0xf] %vm883_vm1, %v5010_v58  ;;  %v5000_v0 = vpack.c.bf16 %v1176_v59, %v1176_v59  ;;  %v5008_v1 = vpack.c.bf16 %v1355_v60, %v1355_v60  ;;  %v1187_v2 = vadd.f32 %v5471_v62, %v6892_v45 }
 0x2df   : > { %v1366_v3 = vadd.f32 %v5495_v63, %v6897_v43  ;;  %v1178_v4 = vpop.f32.mrf.mxu0  ;;  %v1357_v5 = vpop.f32.mrf.mxu1 }
 0x2e0   : > { %1239 = vst.msk [vmem:[#allocation3 + $0x20] sm:$0xf] %vm883_vm1, %v5000_v0  ;;  %1418 = vst.msk [vmem:[#allocation4 + $0x20] sm:$0xf] %vm883_vm1, %v5008_v1  ;;  %v5003_v6 = vpack.c.bf16 %v1187_v2, %v1187_v2  ;;  %v1179_v8 = vadd.f32 %v6892_v45, %v1178_v4  ;;  %v1358_v9 = vadd.f32 %v6897_v43, %v1357_v5  ;;  %5643 = vmatpush3.bf16.msra.mxu0 %v6017_v61 }
 0x2e1   : > { %v5011_v7 = vpack.c.bf16 %v1366_v3, %v1366_v3  ;;  %v5474_v10 = vpop.f32.mrf.mxu0  ;;  %v5498_v11 = vpop.f32.mrf.mxu1 }
 0x2e2   : > { %1242 = vst.msk [vmem:[#allocation3 + $0x2c] sm:$0xf] %vm883_vm1, %v5003_v6  ;;  %v5001_v12 = vpack.c.bf16 %v1179_v8, %v1179_v8  ;;  %v5009_v13 = vpack.c.bf16 %v1358_v9, %v1358_v9  ;;  %v1200_v14 = vadd.f32 %v5474_v10, %v6892_v45  ;;  %v1379_v15 = vadd.f32 %v5498_v11, %v6897_v43 }
 0x2e3   : > { %1421 = vst.msk [vmem:[#allocation4 + $0x2c] sm:$0xf] %vm883_vm1, %v5011_v7  ;;  %v1191_v16 = vpop.f32.mrf.mxu0  ;;  %v1370_v17 = vpop.f32.mrf.mxu1  ;;  %5625 = vmatpush3.bf16.xpose.msra.mxu1 %v2364_v18 }
 0x2e4   : > { %1240 = vst.msk [vmem:[#allocation3 + $0x24] sm:$0xf] %vm883_vm1, %v5001_v12  ;;  %1419 = vst.msk [vmem:[#allocation4 + $0x24] sm:$0xf] %vm883_vm1, %v5009_v13  ;;  %v5006_v20 = vpack.c.bf16 %v1200_v14, %v1200_v14  ;;  %v5014_v21 = vpack.c.bf16 %v1379_v15, %v1379_v15  ;;  %v1192_v22 = vadd.f32 %v6892_v45, %v1191_v16  ;;  %5863 = vmatprep.subr.msk.bf16.mxu1 %vm2347_vm2, %v6018_v19 }
 0x2e5   : > { %v1371_v23 = vadd.f32 %v6897_v43, %v1370_v17  ;;  %v5475_v24 = vpop.f32.mrf.mxu0  ;;  %v5499_v25 = vpop.f32.mrf.mxu1 }
 0x2e6   : > { %1245 = vst.msk [vmem:[#allocation3 + $0x38] sm:$0xf] %vm883_vm1, %v5006_v20  ;;  %1424 = vst.msk [vmem:[#allocation4 + $0x38] sm:$0xf] %vm883_vm1, %v5014_v21  ;;  %v5004_v26 = vpack.c.bf16 %v1192_v22, %v1192_v22  ;;  %v1203_v28 = vadd.f32 %v5475_v24, %v6892_v45  ;;  %v1382_v29 = vadd.f32 %v5499_v25, %v6897_v43 }
 0x2e7   : > { %v5012_v27 = vpack.c.bf16 %v1371_v23, %v1371_v23  ;;  %v1194_v30 = vpop.f32.mrf.mxu0  ;;  %v1373_v31 = vpop.f32.mrf.mxu1 }
 0x2e8   : > { %1243 = vst.msk [vmem:[#allocation3 + $0x30] sm:$0xf] %vm883_vm1, %v5004_v26  ;;  %v5007_v32 = vpack.c.bf16 %v1203_v28, %v1203_v28  ;;  %v5015_v33 = vpack.c.bf16 %v1382_v29, %v1382_v29  ;;  %v1195_v34 = vadd.f32 %v6892_v45, %v1194_v30  ;;  %v1374_v35 = vadd.f32 %v6897_v43, %v1373_v31  ;;  %v4703_v45 = vld [vmem:[%s7448_s9 + $0x2] ss:$0 sm:$0xff]  ;;  %v4737_v31 = vld [vmem:[%s7447_s8 + $0x3] ss:$0 sm:$0xff] }
 0x2e9   : > { %1422 = vst.msk [vmem:[#allocation4 + $0x30] sm:$0xf] %vm883_vm1, %v5012_v27 }
 0x2ea   : > { %1246 = vst.msk [vmem:[#allocation3 + $0x3c] sm:$0xf] %vm883_vm1, %v5007_v32  ;;  %1425 = vst.msk [vmem:[#allocation4 + $0x3c] sm:$0xf] %vm883_vm1, %v5015_v33  ;;  %v5005_v37 = vpack.c.bf16 %v1195_v34, %v1195_v34  ;;  %v5013_v38 = vpack.c.bf16 %v1374_v35, %v1374_v35  ;;  %v4771_v32 = vld [vmem:[%s7448_s9 + $0x3] ss:$0 sm:$0xff] }
 0x2eb   : > { %5627 = vmatpush3.bf16.xpose.msra.mxu1 %v2361_v39 }
 0x2ec   : > { %1244 = vst.msk [vmem:[#allocation3 + $0x34] sm:$0xf] %vm883_vm1, %v5005_v37  ;;  %1423 = vst.msk [vmem:[#allocation4 + $0x34] sm:$0xf] %vm883_vm1, %v5013_v38  ;;  %5652 = vmatprep.subr.bf16.mxu1 %v6934_v36 }
 0x2f1   : > { %v6942_v40 = vld [vmem:[#allocation3 + $0x38] sm:$0xff]  }
 0x2f2   : > { %5864 = vmatprep.subr.msk.bf16.mxu0 %vm2347_vm2, %v6942_v40 }
 0x2fa   : > { %v5518_v43 = vpop.f32.mrf.mxu0  ;;  %v5542_v44 = vpop.f32.mrf.mxu1 }
 0x2fb   : > { %v1542_v46 = vadd.f32 %v5518_v43, %v4669_v41  ;;  %v1721_v47 = vadd.f32 %v5542_v44, %v4703_v45 }
 0x2fc   : > { %v1533_v55 = vpop.f32.mrf.mxu0  ;;  %v1712_v49 = vpop.f32.mrf.mxu1 }
 0x2fd   : > { %v5018_v56 = vpack.c.bf16 %v1542_v46, %v1542_v46  ;;  %v5026_v50 = vpack.c.bf16 %v1721_v47, %v1721_v47  ;;  %v1534_v51 = vadd.f32 %v4669_v41, %v1533_v55  ;;  %v1713_v54 = vadd.f32 %v4703_v45, %v1712_v49 }
 0x2fe   : > { %v5519_v57 = vpop.f32.mrf.mxu0  ;;  %v5543_v58 = vpop.f32.mrf.mxu1 }
 0x2ff   : > { %1599 = vst.msk [vmem:[#allocation3 + $0x48] sm:$0xf] %vm883_vm1, %v5018_v56  ;;  %1778 = vst.msk [vmem:[#allocation4 + $0x48] sm:$0xf] %vm883_vm1, %v5026_v50  ;;  %v5016_v59 = vpack.c.bf16 %v1534_v51, %v1534_v51  ;;  %v5024_v60 = vpack.c.bf16 %v1713_v54, %v1713_v54  ;;  %v1545_v61 = vadd.f32 %v5519_v57, %v4669_v41 }
 0x300   : > { %v1724_v62 = vadd.f32 %v5543_v58, %v4703_v45  ;;  %v1536_v63 = vpop.f32.mrf.mxu0  ;;  %v1715_v0 = vpop.f32.mrf.mxu1 }
 0x301   : > { %1597 = vst.msk [vmem:[#allocation3 + $0x40] sm:$0xf] %vm883_vm1, %v5016_v59  ;;  %1776 = vst.msk [vmem:[#allocation4 + $0x40] sm:$0xf] %vm883_vm1, %v5024_v60  ;;  %v5019_v1 = vpack.c.bf16 %v1545_v61, %v1545_v61  ;;  %v1537_v3 = vadd.f32 %v4669_v41, %v1536_v63  ;;  %v1716_v4 = vadd.f32 %v4703_v45, %v1715_v0 }
 0x302   : > { %v5027_v2 = vpack.c.bf16 %v1724_v62, %v1724_v62  ;;  %v5522_v5 = vpop.f32.mrf.mxu0  ;;  %v5546_v6 = vpop.f32.mrf.mxu1 }
 0x303   : > { %1600 = vst.msk [vmem:[#allocation3 + $0x4c] sm:$0xf] %vm883_vm1, %v5019_v1  ;;  %v5017_v7 = vpack.c.bf16 %v1537_v3, %v1537_v3  ;;  %v5025_v8 = vpack.c.bf16 %v1716_v4, %v1716_v4  ;;  %v1558_v9 = vadd.f32 %v5522_v5, %v4669_v41  ;;  %v1737_v10 = vadd.f32 %v5546_v6, %v4703_v45 }
 0x304   : > { %1779 = vst.msk [vmem:[#allocation4 + $0x4c] sm:$0xf] %vm883_vm1, %v5027_v2  ;;  %v1549_v11 = vpop.f32.mrf.mxu0  ;;  %v1728_v12 = vpop.f32.mrf.mxu1 }
 0x305   : > { %1598 = vst.msk [vmem:[#allocation3 + $0x44] sm:$0xf] %vm883_vm1, %v5017_v7  ;;  %1777 = vst.msk [vmem:[#allocation4 + $0x44] sm:$0xf] %vm883_vm1, %v5025_v8  ;;  %v5022_v13 = vpack.c.bf16 %v1558_v9, %v1558_v9  ;;  %v5030_v14 = vpack.c.bf16 %v1737_v10, %v1737_v10  ;;  %v1550_v15 = vadd.f32 %v4669_v41, %v1549_v11 }
 0x306   : > { %v1729_v16 = vadd.f32 %v4703_v45, %v1728_v12  ;;  %v5523_v17 = vpop.f32.mrf.mxu0  ;;  %v5547_v18 = vpop.f32.mrf.mxu1 }
 0x307   : > { %1603 = vst.msk [vmem:[#allocation3 + $0x58] sm:$0xf] %vm883_vm1, %v5022_v13  ;;  %1782 = vst.msk [vmem:[#allocation4 + $0x58] sm:$0xf] %vm883_vm1, %v5030_v14  ;;  %v5020_v19 = vpack.c.bf16 %v1550_v15, %v1550_v15  ;;  %v1561_v21 = vadd.f32 %v5523_v17, %v4669_v41  ;;  %v1740_v22 = vadd.f32 %v5547_v18, %v4703_v45 }
 0x308   : > { %v5028_v20 = vpack.c.bf16 %v1729_v16, %v1729_v16  ;;  %v1552_v23 = vpop.f32.mrf.mxu0  ;;  %v1731_v24 = vpop.f32.mrf.mxu1 }
 0x309   : > { %1601 = vst.msk [vmem:[#allocation3 + $0x50] sm:$0xf] %vm883_vm1, %v5020_v19  ;;  %v5023_v25 = vpack.c.bf16 %v1561_v21, %v1561_v21  ;;  %v5031_v26 = vpack.c.bf16 %v1740_v22, %v1740_v22  ;;  %v1553_v27 = vadd.f32 %v4669_v41, %v1552_v23  ;;  %v1732_v28 = vadd.f32 %v4703_v45, %v1731_v24 }
 0x30a   : > { %1780 = vst.msk [vmem:[#allocation4 + $0x50] sm:$0xf] %vm883_vm1, %v5028_v20 }
 0x30b   : > { %1604 = vst.msk [vmem:[#allocation3 + $0x5c] sm:$0xf] %vm883_vm1, %v5023_v25  ;;  %1783 = vst.msk [vmem:[#allocation4 + $0x5c] sm:$0xf] %vm883_vm1, %v5031_v26  ;;  %v5021_v29 = vpack.c.bf16 %v1553_v27, %v1553_v27  ;;  %v5029_v30 = vpack.c.bf16 %v1732_v28, %v1732_v28  ;;  %v4788_v26 = vld [vmem:[%s7446_s7] ss:$0 sm:$0xff] }
 0x30d   : > { %1602 = vst.msk [vmem:[#allocation3 + $0x54] sm:$0xf] %vm883_vm1, %v5021_v29  ;;  %1781 = vst.msk [vmem:[#allocation4 + $0x54] sm:$0xf] %vm883_vm1, %v5029_v30 }
 0x31b   : > { %v5566_v33 = vpop.f32.mrf.mxu0  ;;  %v5590_v34 = vpop.f32.mrf.mxu1 }
 0x31c   : > { %v1900_v35 = vadd.f32 %v5566_v33, %v4737_v31  ;;  %v2079_v37 = vadd.f32 %v5590_v34, %v4771_v32 }
 0x31d   : > { %v1891_v38 = vpop.f32.mrf.mxu0  ;;  %v2070_v39 = vpop.f32.mrf.mxu1 }
 0x31e   : > { %v5034_v41 = vpack.c.bf16 %v1900_v35, %v1900_v35  ;;  %v5042_v45 = vpack.c.bf16 %v2079_v37, %v2079_v37  ;;  %v1892_v43 = vadd.f32 %v4737_v31, %v1891_v38  ;;  %v2071_v44 = vadd.f32 %v4771_v32, %v2070_v39  ;;  %v6021_v37 = vld [vmem:[%s7443_s4 + $0x70] sm:$0xff]  }
 0x31f   : > { %v5567_v46 = vpop.f32.mrf.mxu0  ;;  %v5591_v47 = vpop.f32.mrf.mxu1 }
 0x320   : > { %1957 = vst.msk [vmem:[#allocation3 + $0x68] sm:$0xf] %vm883_vm1, %v5034_v41  ;;  %2136 = vst.msk [vmem:[#allocation4 + $0x68] sm:$0xf] %vm883_vm1, %v5042_v45  ;;  %v5032_v55 = vpack.c.bf16 %v1892_v43, %v1892_v43  ;;  %v5040_v49 = vpack.c.bf16 %v2071_v44, %v2071_v44  ;;  %v1903_v56 = vadd.f32 %v5567_v46, %v4737_v31  ;;  %v6022_v45 = vld [vmem:[%s7443_s4 + $0x68] sm:$0xff]  }
 0x321   : > { %v2082_v50 = vadd.f32 %v5591_v47, %v4771_v32  ;;  %v1894_v51 = vpop.f32.mrf.mxu0  ;;  %v2073_v54 = vpop.f32.mrf.mxu1 }
 0x322   : > { %1955 = vst.msk [vmem:[#allocation3 + $0x60] sm:$0xf] %vm883_vm1, %v5032_v55  ;;  %2134 = vst.msk [vmem:[#allocation4 + $0x60] sm:$0xf] %vm883_vm1, %v5040_v49  ;;  %v5035_v57 = vpack.c.bf16 %v1903_v56, %v1903_v56  ;;  %v1895_v59 = vadd.f32 %v4737_v31, %v1894_v51  ;;  %v2074_v60 = vadd.f32 %v4771_v32, %v2073_v54  ;;  %v6023_v49 = vld [vmem:[%s7443_s4 + $0x60] sm:$0xff]   ;;  %v6025_v56 = vld [vmem:[%s7443_s4 + $0x50] sm:$0xff]  }
 0x323   : > { %v5043_v58 = vpack.c.bf16 %v2082_v50, %v2082_v50  ;;  %v5570_v61 = vpop.f32.mrf.mxu0  ;;  %v5594_v62 = vpop.f32.mrf.mxu1  ;;  %v6026_v50 = vld [vmem:[%s7443_s4 + $0x48] sm:$0xff]   ;;  %v6028_v51 = vld [vmem:[#allocation4 + $0x38] sm:$0xff]   ;;  %v6029_v54 = vld [vmem:[#allocation4 + $0x30] sm:$0xff]  }
 0x324   : > { %1958 = vst.msk [vmem:[#allocation3 + $0x6c] sm:$0xf] %vm883_vm1, %v5035_v57  ;;  %v5033_v63 = vpack.c.bf16 %v1895_v59, %v1895_v59  ;;  %v5041_v0 = vpack.c.bf16 %v2074_v60, %v2074_v60  ;;  %v1916_v1 = vadd.f32 %v5570_v61, %v4737_v31  ;;  %v2095_v2 = vadd.f32 %v5594_v62, %v4771_v32  ;;  %v6030_v57 = vld [vmem:[#allocation4 + $0x28] sm:$0xff]  }
 0x325   : > { %2137 = vst.msk [vmem:[#allocation4 + $0x6c] sm:$0xf] %vm883_vm1, %v5043_v58  ;;  %v1907_v3 = vpop.f32.mrf.mxu0  ;;  %v2086_v4 = vpop.f32.mrf.mxu1  ;;  %v6031_v58 = vld [vmem:[#allocation4 + $0x20] sm:$0xff]  }
 0x326   : > { %1956 = vst.msk [vmem:[#allocation3 + $0x64] sm:$0xf] %vm883_vm1, %v5033_v63  ;;  %2135 = vst.msk [vmem:[#allocation4 + $0x64] sm:$0xf] %vm883_vm1, %v5041_v0  ;;  %v5038_v5 = vpack.c.bf16 %v1916_v1, %v1916_v1  ;;  %v5046_v6 = vpack.c.bf16 %v2095_v2, %v2095_v2  ;;  %v1908_v7 = vadd.f32 %v4737_v31, %v1907_v3 }
 0x327   : > { %v2087_v8 = vadd.f32 %v4771_v32, %v2086_v4  ;;  %v5571_v9 = vpop.f32.mrf.mxu0  ;;  %v5595_v10 = vpop.f32.mrf.mxu1 }
 0x328   : > { %1961 = vst.msk [vmem:[#allocation3 + $0x78] sm:$0xf] %vm883_vm1, %v5038_v5  ;;  %2140 = vst.msk [vmem:[#allocation4 + $0x78] sm:$0xf] %vm883_vm1, %v5046_v6  ;;  %v5036_v11 = vpack.c.bf16 %v1908_v7, %v1908_v7  ;;  %v1919_v13 = vadd.f32 %v5571_v9, %v4737_v31  ;;  %v2098_v14 = vadd.f32 %v5595_v10, %v4771_v32 }
 0x329   : > { %v5044_v12 = vpack.c.bf16 %v2087_v8, %v2087_v8  ;;  %v1910_v15 = vpop.f32.mrf.mxu0  ;;  %v2089_v16 = vpop.f32.mrf.mxu1 }
 0x32a   : > { %1959 = vst.msk [vmem:[#allocation3 + $0x70] sm:$0xf] %vm883_vm1, %v5036_v11  ;;  %v5039_v17 = vpack.c.bf16 %v1919_v13, %v1919_v13  ;;  %v5047_v18 = vpack.c.bf16 %v2098_v14, %v2098_v14  ;;  %v1911_v19 = vadd.f32 %v4737_v31, %v1910_v15  ;;  %v2090_v20 = vadd.f32 %v4771_v32, %v2089_v16 }
 0x32b   : > { %2138 = vst.msk [vmem:[#allocation4 + $0x70] sm:$0xf] %vm883_vm1, %v5044_v12 }
 0x32c   : > { %1962 = vst.msk [vmem:[#allocation3 + $0x7c] sm:$0xf] %vm883_vm1, %v5039_v17  ;;  %2141 = vst.msk [vmem:[#allocation4 + $0x7c] sm:$0xf] %vm883_vm1, %v5047_v18  ;;  %v5037_v21 = vpack.c.bf16 %v1911_v19, %v1911_v19  ;;  %v5045_v22 = vpack.c.bf16 %v2090_v20, %v2090_v20 }
 0x32e   : > { %1960 = vst.msk [vmem:[#allocation3 + $0x74] sm:$0xf] %vm883_vm1, %v5037_v21  ;;  %2139 = vst.msk [vmem:[#allocation4 + $0x74] sm:$0xf] %vm883_vm1, %v5045_v22 }
 0x33c   : > { %v5614_v23 = vpop.f32.mrf.mxu0 }
 0x33d   : > { %v2293_v31 = vadd.f32 %v5614_v23, %v4788_v26 }
 0x33e   : > { %v2284_v24 = vpop.f32.mrf.mxu0 }
 0x33f   : > { %v2285_v29 = vadd.f32 %v4788_v26, %v2284_v24 }
 0x340   : > { %v5615_v25 = vpop.f32.mrf.mxu0 }
 0x341   : > { %v2296_v27 = vadd.f32 %v5615_v25, %v4788_v26 }
 0x342   : > { %v2287_v28 = vpop.f32.mrf.mxu0 }
 0x343   : > { %v2288_v30 = vadd.f32 %v4788_v26, %v2287_v28  ;;  %v2316_v34 = vpack.c.bf16 %v2296_v27, %v2293_v31 }
 0x344   : > { %v5618_v32 = vpop.f32.mrf.mxu0 }
 0x345   : > { %v2315_v33 = vpack.c.bf16 %v2288_v30, %v2285_v29  ;;  %v2309_v46 = vadd.f32 %v5618_v32, %v4788_v26 }
 0x346   : > { %v2300_v35 = vpop.f32.mrf.mxu0 }
 0x347   : > { %5628 = vmatprep.mubr.msk.bf16.mxu1 %vm2347_vm2, %v2315_v33  ;;  %v2301_v43 = vadd.f32 %v4788_v26, %v2300_v35 }
 0x348   : > { %v5619_v38 = vpop.f32.mrf.mxu0  ;;  %5629 = vmatmul.mubr.msk.bf16.vlgmr.msra.gmra.mxu1 %vm2347_vm2, %v2316_v34 }
 0x349   : > { %5653 = vmatpush3.bf16.msra.mxu1 %v6934_v36  ;;  %v2312_v39 = vadd.f32 %v5619_v38, %v4788_v26  ;;  %v6024_v36 = vld [vmem:[%s7443_s4 + $0x58] sm:$0xff]  }
 0x34a   : > { %v2303_v41 = vpop.f32.mrf.mxu0  ;;  %5654 = vmatprep.subr.bf16.mxu1 %v6021_v37 }
 0x34b   : > { %v2304_v44 = vadd.f32 %v4788_v26, %v2303_v41  ;;  %v2318_v55 = vpack.c.bf16 %v2312_v39, %v2309_v46 }
 0x34d   : > { %v2317_v47 = vpack.c.bf16 %v2304_v44, %v2301_v43  ;;  %5655 = vmatpush3.bf16.msra.mxu1 %v6021_v37  ;;  %v2838_v43 = vsel %vm2347_vm2, %v6942_v40, 0  ;;  %v6032_v44 = vld [vmem:[#allocation3 + $0x30] sm:$0xff]  }
 0x34e   : > { %5656 = vmatprep.subr.bf16.mxu1 %v6022_v45 }
 0x34f   : > { %5632 = vmatprep.mubr.msk.bf16.mxu1 %vm2347_vm2, %v2317_v47 }
 0x350   : > { %5633 = vmatmul.mubr.msk.bf16.gmra.mxu1 %vm2347_vm2, %v2318_v55 }
 0x351   : > { %5657 = vmatpush3.bf16.msra.mxu1 %v6022_v45  ;;  %5668 = vmatprep.mubr.bf16.mxu1 %v6835_v42  ;;  %v6027_v42 = vld [vmem:[%s7443_s4 + $0x40] sm:$0xff]  }
 0x352   : > { %5658 = vmatprep.subr.bf16.mxu1 %v6023_v49 }
 0x355   : > { %5659 = vmatpush3.bf16.msra.mxu1 %v6023_v49  ;;  %v4834_v49 = vld [vmem:[%s7446_s7 + $0x1] ss:$0 sm:$0xff] }
 0x356   : > { %5660 = vmatprep.subr.bf16.mxu1 %v6024_v36 }
 0x359   : > { %5661 = vmatpush3.bf16.msra.mxu1 %v6024_v36 }
 0x35a   : > { %5662 = vmatprep.subr.bf16.mxu1 %v6025_v56 }
 0x35d   : > { %5663 = vmatpush3.bf16.msra.mxu1 %v6025_v56 }
 0x35e   : > { %5664 = vmatprep.subr.bf16.mxu1 %v6026_v50 }
 0x361   : > { %5665 = vmatpush3.bf16.msra.mxu1 %v6026_v50 }
 0x362   : > { %5666 = vmatprep.subr.bf16.mxu1 %v6027_v42 }
 0x365   : > { %5667 = vmatpush3.bf16.msra.mxu1 %v6027_v42 }
 0x366   : > { %5692 = vmatprep.subr.bf16.mxu1 %v6028_v51 }
 0x368   : > { %5669 = vmatmul.mubr.bf16.vlgmr.msra.gmra.mxu1 %v6855_v52 }
 0x369   : > { %5672 = vmatprep.mubr.bf16.mxu1 %v6857_v53  ;;  %5693 = vmatpush3.bf16.msra.mxu1 %v6028_v51  ;;  %v2835_v51 = vsel %vm2347_vm2, %v6032_v44, 0 }
 0x36a   : > { %5694 = vmatprep.subr.bf16.mxu1 %v6029_v54 }
 0x36d   : > { %5695 = vmatpush3.bf16.msra.mxu1 %v6029_v54  ;;  %v6033_v54 = vld [vmem:[#allocation3 + $0x28] sm:$0xff]  }
 0x36e   : > { %5696 = vmatprep.subr.bf16.mxu1 %v6030_v57 }
 0x370   : > { %5673 = vmatmul.mubr.bf16.gmra.mxu1 %v6861_v48 }
 0x371   : > { %5697 = vmatpush3.bf16.msra.mxu1 %v6030_v57 }
 0x372   : > { %5698 = vmatprep.subr.bf16.mxu1 %v6031_v58 }
 0x375   : > { %5699 = vmatpush3.bf16.msra.mxu1 %v6031_v58 }
 0x408   : > { %v5630_v59 = vpop.f32.mrf.mxu1 }
 0x409   : > { %v2444_v60 = vsel %vm2437_vm3, %v5630_v59, -inf }
 0x40a   : > { %2445 = vmax.xlane.f32.xlu1 %v2444_v60  ;;  %v2406_v52 = vpop.f32.mrf.mxu1 }
 0x40b   : > { %v2438_v61 = vsel %vm2437_vm3, %v2406_v52, -inf }
 0x40c   : > { %2439 = vmax.xlane.f32.xlu0 %v2438_v61  ;;  %v5631_v53 = vpop.f32.mrf.mxu1  ;;  %v6034_v61 = vld [vmem:[#allocation3 + $0x20] sm:$0xff]  }
 0x40d   : > { %v2447_v62 = vsel %vm2437_vm3, %v5631_v53, -inf }
 0x40e   : > { %2448 = vmax.xlane.f32.xlu1 %v2447_v62  ;;  %v2409_v63 = vpop.f32.mrf.mxu1 }
 0x40f   : > { %v2441_v48 = vsel %vm2437_vm3, %v2409_v63, -inf }
 0x410   : > { %2442 = vmax.xlane.f32.xlu0 %v2441_v48  ;;  %v5634_v0 = vpop.f32.mrf.mxu1 }
 0x411   : > { %v2456_v5 = vsel %vm2437_vm3, %v5634_v0, -inf }
 0x412   : > { %v2422_v1 = vpop.f32.mrf.mxu1 }
 0x413   : > { %v2450_v2 = vsel %vm2437_vm3, %v2422_v1, -inf }
 0x414   : > { %2451 = vmax.xlane.f32.xlu0 %v2450_v2  ;;  %v5635_v3 = vpop.f32.mrf.mxu1 }
 0x415   : > { %v2459_v7 = vsel %vm2437_vm3, %v5635_v3, -inf }
 0x416   : > { %v2425_v4 = vpop.f32.mrf.mxu1 }
 0x417   : > { %v2453_v6 = vsel %vm2437_vm3, %v2425_v4, -inf }
 0x418   : > { %2457 = vmax.xlane.f32.xlu0 %v2456_v5  ;;  %2454 = vmax.xlane.f32.xlu1 %v2453_v6 }
 0x41c   : > { %2460 = vmax.xlane.f32.xlu1 %v2459_v7 }
 0x428   : > { %v5670_v30 = vpop.f32.mrf.mxu1 }
 0x42a   : > { %v2752_v35 = vpop.f32.mrf.mxu1 }
 0x42b   : > { %v2753_v42 = vadd.f32 %v4834_v49, %v2752_v35 }
 0x42c   : > { %v5671_v45 = vpop.f32.mrf.mxu1 }
 0x42d   : > { %v2764_v48 = vadd.f32 %v5671_v45, %v4834_v49 }
 0x42e   : > { %v2755_v46 = vpop.f32.mrf.mxu1 }
 0x42f   : > { %v2756_v36 = vadd.f32 %v4834_v49, %v2755_v46 }
 0x431   : > { %v2783_v58 = vpack.c.bf16 %v2756_v36, %v2753_v42 }
 0x493   : > { %v2446_v8 = vpop.xlane.xlu1 %2445 }
 0x494   : > { %v2464_v11 = vsub.f32 %v5630_v59, %v2446_v8  ;;  %v5674_v59 = vpop.f32.mrf.mxu1 }
 0x495   : > { %v2440_v9 = vpop.xlane.xlu0 %2439  ;;  %v2777_v6 = vadd.f32 %v5674_v59, %v4834_v49 }
 0x496   : > { %v2462_v10 = vsub.f32 %v2406_v52, %v2440_v9  ;;  %v2474_v18 = vmul.f32 1.442695, %v2464_v11  ;;  %v2768_v60 = vpop.f32.mrf.mxu1  ;;  %v2832_v52 = vsel %vm2347_vm2, %v6033_v54, 0 }
 0x497   : > { %v2449_v12 = vpop.xlane.xlu1 %2448  ;;  %v2769_v2 = vadd.f32 %v4834_v49, %v2768_v60 }
 0x498   : > { %v2470_v13 = vmul.f32 1.442695, %v2462_v10  ;;  %v2465_v14 = vsub.f32 %v5631_v53, %v2449_v12  ;;  %v5675_v53 = vpop.f32.mrf.mxu1 }
 0x499   : > { %v2443_v15 = vpop.xlane.xlu0 %2442  ;;  %v2780_v5 = vadd.f32 %v5675_v53, %v4834_v49 }
 0x49a   : > { %v2476_v16 = vmul.f32 1.442695, %v2465_v14  ;;  %v2463_v17 = vsub.f32 %v2409_v63, %v2443_v15  ;;  %6073 = vpow2.f32 %v2470_v13  ;;  %v2771_v62 = vpop.f32.mrf.mxu1  ;;  %v2829_v63 = vsel %vm2347_vm2, %v6034_v61, 0 }
 0x49b   : > { %v2786_v7 = vpack.c.bf16 %v2780_v5, %v2777_v6 }
 0x49c   : > { %v2472_v19 = vmul.f32 1.442695, %v2463_v17  ;;  %6075 = vpow2.f32 %v2476_v16 }
 0x49d   : > { %v2452_v20 = vpop.xlane.xlu0 %2451 }
 0x49e   : > { %6077 = vpow2.f32 %v2472_v19  ;;  %v2466_v21 = vsub.f32 %v2422_v1, %v2452_v20  ;;  %v2761_v1 = vadd.f32 %v5670_v30, %v4834_v49 }
 0x49f   : > { %6079 = vpow2.f32 %v2474_v18 }
 0x4a0   : > { %v2478_v24 = vmul.f32 1.442695, %v2466_v21 }
 0x4a1   : > { %v2458_v22 = vpop.xlane.xlu0 %2457  ;;  %v2455_v23 = vpop.xlane.xlu1 %2454 }
 0x4a2   : > { %v2468_v25 = vsub.f32 %v5634_v0, %v2458_v22  ;;  %v2467_v26 = vsub.f32 %v2425_v4, %v2455_v23  ;;  %6081 = vpow2.f32 %v2478_v24  ;;  %v2772_v0 = vadd.f32 %v4834_v49, %v2771_v62 }
 0x4a4   : > { %v2480_v27 = vmul.f32 1.442695, %v2467_v26  ;;  %v2482_v28 = vmul.f32 1.442695, %v2468_v25  ;;  %v2785_v4 = vpack.c.bf16 %v2772_v0, %v2769_v2 }
 0x4a5   : > { %v2461_v29 = vpop.xlane.xlu1 %2460 }
 0x4a6   : > { %v2469_v31 = vsub.f32 %v5635_v3, %v2461_v29  ;;  %6083 = vpow2.f32 %v2480_v27  ;;  %v2784_v3 = vpack.c.bf16 %v2764_v48, %v2761_v1 }
 0x4a7   : > { %v7031_v33 = vpop.eup %6073  ;;  %6085 = vpow2.f32 %v2482_v28 }
 0x4a8   : > { %v2484_v32 = vmul.f32 1.442695, %v2469_v31 }
 0x4a9   : > { %v7033_v34 = vpop.eup %6075 }
 0x4aa   : > { %6087 = vpow2.f32 %v2484_v32  ;;  %v6035_v32 = vld [vmem:[%s7449_s10] sm:$0xff]  }
 0x4ab   : > { %v7035_v37 = vpop.eup %6077  ;;  %5718 = vmatprep.subr.bf16.mxu1 %v6035_v32 }
 0x4ac   : > { %v7037_v38 = vpop.eup %6079  ;;  %v2510_v39 = vpack.c.bf16 %v7035_v37, %v7031_v33 }
 0x4ad   : > { %v2511_v41 = vpack.c.bf16 %v7033_v34, %v7037_v38 }
 0x4ae   : > { %5644 = vmatprep.mubr.msk.bf16.mxu0 %vm2437_vm3, %v2510_v39 }
 0x4af   : > { %5645 = vmatmul.mubr.msk.bf16.vlgmr.msra.gmra.mxu0 %vm2437_vm3, %v2511_v41  ;;  %v7048_v47 = vpop.eup %6081 }
 0x4b0   : > { %5677 = vmatpush3.bf16.xpose.msra.mxu0 %v2838_v43 }
 0x4b1   : > { %5865 = vmatprep.subr.msk.bf16.mxu0 %vm2347_vm2, %v6032_v44 }
 0x4b3   : > { %v7050_v55 = vpop.eup %6083 }
 0x4b4   : > { %v2512_v56 = vpack.c.bf16 %v7050_v55, %v7048_v47  ;;  %v7057_v50 = vpop.eup %6085 }
 0x4b6   : > { %5648 = vmatprep.mubr.msk.bf16.mxu0 %vm2437_vm3, %v2512_v56 }
 0x4b7   : > { %v7059_v40 = vpop.eup %6087 }
 0x4b8   : > { %5679 = vmatpush3.bf16.xpose.msra.mxu0 %v2835_v51  ;;  %v2513_v57 = vpack.c.bf16 %v7059_v40, %v7057_v50 }
 0x4b9   : > { %5866 = vmatprep.subr.msk.bf16.mxu0 %vm2347_vm2, %v6033_v54 }
 0x4ba   : > { %5649 = vmatmul.mubr.msk.bf16.gmra.mxu0 %vm2437_vm3, %v2513_v57 }
 0x4bb   : > { %5684 = vmatprep.mubr.msk.bf16.mxu0 %vm2347_vm2, %v2783_v58 }
 0x4c0   : > { %5681 = vmatpush3.bf16.xpose.msra.mxu0 %v2832_v52 }
 0x4c1   : > { %5867 = vmatprep.subr.msk.bf16.mxu0 %vm2347_vm2, %v6034_v61 }
 0x4c8   : > { %5683 = vmatpush3.bf16.xpose.msra.mxu0 %v2829_v63 }
 0x4cf   : > { %5685 = vmatmul.mubr.msk.bf16.vlgmr.msra.gmra.mxu0 %vm2347_vm2, %v2784_v3 }
 0x4d0   : > { %5688 = vmatprep.mubr.msk.bf16.mxu0 %vm2347_vm2, %v2785_v4 }
 0x4d7   : > { %5689 = vmatmul.mubr.msk.bf16.gmra.mxu0 %vm2347_vm2, %v2786_v7 }
 0x56f   : > { %v7074_v8 = vpop.f32.mrf.mxu0 }
 0x571   : > { %v7076_v9 = vpop.f32.mrf.mxu0 }
 0x573   : > { %v7078_v10 = vpop.f32.mrf.mxu0 }
 0x575   : > { %v7080_v11 = vpop.f32.mrf.mxu0 }
 0x57a   : > { %v7082_v12 = vpop.f32.mrf.mxu0 }
 0x57c   : > { %v7084_v13 = vpop.f32.mrf.mxu0 }
 0x57e   : > { %v7086_v14 = vpop.f32.mrf.mxu0 }
 0x580   : > { %v7088_v15 = vpop.f32.mrf.mxu0 }
 0x58f   : > { %v5686_v16 = vpop.f32.mrf.mxu0 }
 0x590   : > { %v2911_v21 = vsel %vm2437_vm3, %v5686_v16, -inf }
 0x591   : > { %v2874_v17 = vpop.f32.mrf.mxu0 }
 0x592   : > { %v2905_v18 = vsel %vm2437_vm3, %v2874_v17, -inf }
 0x593   : > { %2906 = vmax.xlane.f32.xlu0 %v2905_v18  ;;  %v5687_v19 = vpop.f32.mrf.mxu0 }
 0x594   : > { %v2914_v25 = vsel %vm2437_vm3, %v5687_v19, -inf }
 0x595   : > { %v2877_v20 = vpop.f32.mrf.mxu0 }
 0x596   : > { %v2908_v22 = vsel %vm2437_vm3, %v2877_v20, -inf }
 0x597   : > { %2912 = vmax.xlane.f32.xlu0 %v2911_v21  ;;  %2909 = vmax.xlane.f32.xlu1 %v2908_v22  ;;  %v5690_v23 = vpop.f32.mrf.mxu0  ;;  %v7108_v22 = vld [vmem:[#allocation3 + $0x58] sm:$0xff]  }
 0x598   : > { %v2923_v29 = vsel %vm2437_vm3, %v5690_v23, -inf }
 0x599   : > { %v2890_v24 = vpop.f32.mrf.mxu0 }
 0x59a   : > { %v2917_v26 = vsel %vm2437_vm3, %v2890_v24, -inf }
 0x59b   : > { %2915 = vmax.xlane.f32.xlu1 %v2914_v25  ;;  %2918 = vmax.xlane.f32.xlu0 %v2917_v26  ;;  %v5691_v27 = vpop.f32.mrf.mxu0 }
 0x59c   : > { %v2926_v31 = vsel %vm2437_vm3, %v5691_v27, -inf }
 0x59d   : > { %v2893_v28 = vpop.f32.mrf.mxu0 }
 0x59e   : > { %v2920_v30 = vsel %vm2437_vm3, %v2893_v28, -inf }
 0x59f   : > { %2924 = vmax.xlane.f32.xlu0 %v2923_v29  ;;  %2921 = vmax.xlane.f32.xlu1 %v2920_v30  ;;  %v2486_v30 = vsel %vm2437_vm3, %v7031_v33, 0.0  ;;  %v2504_v33 = vsel %vm2437_vm3, %v7057_v50, 0.0 }
 0x5a3   : > { %2927 = vmax.xlane.f32.xlu1 %v2926_v31  ;;  %v2492_v31 = vsel %vm2437_vm3, %v7037_v38, 0.0  ;;  %v6039_v38 = vld [vmem:[%s7449_s10 + $0x8] sm:$0xff]  }
 0x5a4   : > { %5708 = vmatprep.subr.bf16.mxu0 %v6039_v38 }
 0x5a5   : > { %5709 = vmatpush3.bf16.msra.mxu0 %v6039_v38 }
 0x61c   : > { %v2907_v35 = vpop.xlane.xlu0 %2906 }
 0x61d   : > { %v2929_v39 = vsub.f32 %v2874_v17, %v2907_v35  ;;  %v2498_v35 = vsel %vm2437_vm3, %v7048_v47, 0.0 }
 0x61f   : > { %v2937_v41 = vmul.f32 1.442695, %v2929_v39  ;;  %v2495_v39 = vsel %vm2437_vm3, %v7033_v34, 0.0  ;;  %v7139_v34 = vld [vmem:[%s7443_s4 + $0xb8] sm:$0xff]  }
 0x620   : > { %v2913_v45 = vpop.xlane.xlu0 %2912  ;;  %v2910_v43 = vpop.xlane.xlu1 %2909  ;;  %5728 = vmatprep.subr.bf16.mxu0 %v7139_v34 }
 0x621   : > { %6089 = vpow2.f32 %v2937_v41  ;;  %v2931_v44 = vsub.f32 %v5686_v16, %v2913_v45  ;;  %v2930_v46 = vsub.f32 %v2877_v20, %v2910_v43  ;;  %v2501_v41 = vsel %vm2437_vm3, %v7050_v55, 0.0 }
 0x623   : > { %v2941_v49 = vmul.f32 1.442695, %v2931_v44  ;;  %v2939_v36 = vmul.f32 1.442695, %v2930_v46 }
 0x624   : > { %v2916_v56 = vpop.xlane.xlu1 %2915  ;;  %v2919_v42 = vpop.xlane.xlu0 %2918 }
 0x625   : > { %6091 = vpow2.f32 %v2941_v49  ;;  %v2932_v51 = vsub.f32 %v5687_v19, %v2916_v56  ;;  %v2933_v54 = vsub.f32 %v2890_v24, %v2919_v42 }
 0x626   : > { %6093 = vpow2.f32 %v2939_v36 }
 0x627   : > { %v2943_v57 = vmul.f32 1.442695, %v2932_v51  ;;  %v2945_v58 = vmul.f32 1.442695, %v2933_v54 }
 0x628   : > { %v2925_v59 = vpop.xlane.xlu0 %2924  ;;  %v2922_v60 = vpop.xlane.xlu1 %2921 }
 0x629   : > { %6095 = vpow2.f32 %v2943_v57  ;;  %v2935_v52 = vsub.f32 %v5690_v23, %v2925_v59  ;;  %v2934_v61 = vsub.f32 %v2893_v28, %v2922_v60 }
 0x62a   : > { %6097 = vpow2.f32 %v2945_v58 }
 0x62b   : > { %v2949_v53 = vmul.f32 1.442695, %v2935_v52  ;;  %v2947_v62 = vmul.f32 1.442695, %v2934_v61 }
 0x62c   : > { %v2928_v63 = vpop.xlane.xlu1 %2927 }
 0x62d   : > { %6099 = vpow2.f32 %v2949_v53  ;;  %v2936_v48 = vsub.f32 %v5691_v27, %v2928_v63 }
 0x62e   : > { %v6090_v0 = vpop.eup %6089  ;;  %6101 = vpow2.f32 %v2947_v62 }
 0x62f   : > { %v2951_v1 = vmul.f32 1.442695, %v2936_v48  ;;  %v2953_v2 = vsel %vm2437_vm3, %v6090_v0, 0.0 }
 0x630   : > { %2954 = vadd.xlane.f32.xlu0 %v2953_v2 }
 0x631   : > { %6103 = vpow2.f32 %v2951_v1 }
 0x632   : > { %v6092_v3 = vpop.eup %6091 }
 0x633   : > { %v6094_v4 = vpop.eup %6093  ;;  %v2959_v5 = vsel %vm2437_vm3, %v6092_v3, 0.0 }
 0x634   : > { %2960 = vadd.xlane.f32.xlu0 %v2959_v5  ;;  %v2956_v6 = vsel %vm2437_vm3, %v6094_v4, 0.0  ;;  %v2977_v7 = vpack.c.bf16 %v6094_v4, %v6090_v0  ;;  %v6037_v5 = vld [vmem:[#allocation3 + $0x50] sm:$0xff]  }
 0x635   : > { %2957 = vadd.xlane.f32.xlu1 %v2956_v6 }
 0x636   : > { %v6096_v16 = vpop.eup %6095  ;;  %5700 = vmatprep.mubr.msk.bf16.mxu1 %vm2437_vm3, %v2977_v7 }
 0x637   : > { %v6098_v17 = vpop.eup %6097  ;;  %v2978_v18 = vpack.c.bf16 %v6096_v16, %v6092_v3  ;;  %v2962_v19 = vsel %vm2437_vm3, %v6096_v16, 0.0 }
 0x638   : > { %v2965_v20 = vsel %vm2437_vm3, %v6098_v17, 0.0 }
 0x639   : > { %2966 = vadd.xlane.f32.xlu0 %v2965_v20  ;;  %2963 = vadd.xlane.f32.xlu1 %v2962_v19  ;;  %v6038_v19 = vld [vmem:[#allocation3 + $0x48] sm:$0xff]  }
 0x63a   : > { %v6100_v21 = vpop.eup %6099  ;;  %5701 = vmatmul.mubr.msk.bf16.vlgmr.msra.gmra.mxu1 %vm2437_vm3, %v2978_v18  ;;  %v3470_v18 = vsel %vm2347_vm2, %v6037_v5, 0 }
 0x63b   : > { %v6102_v23 = vpop.eup %6101  ;;  %5719 = vmatpush3.bf16.msra.mxu1 %v6035_v32  ;;  %v2971_v24 = vsel %vm2437_vm3, %v6100_v21, 0.0  ;;  %v2489_v32 = vsel %vm2437_vm3, %v7035_v37, 0.0  ;;  %v2507_v37 = vsel %vm2437_vm3, %v7059_v40, 0.0 }
 0x63c   : > { %5868 = vmatprep.subr.msk.bf16.mxu1 %vm2347_vm2, %v7108_v22  ;;  %v2968_v25 = vsel %vm2437_vm3, %v6102_v23, 0.0  ;;  %v2979_v26 = vpack.c.bf16 %v6102_v23, %v6098_v17 }
 0x63d   : > { %2972 = vadd.xlane.f32.xlu0 %v2971_v24  ;;  %2969 = vadd.xlane.f32.xlu1 %v2968_v25 }
 0x63e   : > { %v6104_v27 = vpop.eup %6103  ;;  %5704 = vmatprep.mubr.msk.bf16.mxu1 %vm2437_vm3, %v2979_v26 }
 0x63f   : > { %v2974_v28 = vsel %vm2437_vm3, %v6104_v27, 0.0  ;;  %v2980_v29 = vpack.c.bf16 %v6104_v27, %v6100_v21 }
 0x641   : > { %2487 = vadd.xlane.f32.xlu0 %v2486_v30  ;;  %2975 = vadd.xlane.f32.xlu1 %v2974_v28 }
 0x642   : > { %5705 = vmatmul.mubr.msk.bf16.gmra.mxu1 %vm2437_vm3, %v2980_v29 }
 0x645   : > { %2493 = vadd.xlane.f32.xlu0 %v2492_v31  ;;  %2490 = vadd.xlane.f32.xlu1 %v2489_v32 }
 0x649   : > { %2499 = vadd.xlane.f32.xlu0 %v2498_v35  ;;  %2496 = vadd.xlane.f32.xlu1 %v2495_v39 }
 0x64d   : > { %2505 = vadd.xlane.f32.xlu0 %v2504_v33  ;;  %2502 = vadd.xlane.f32.xlu1 %v2501_v41  ;;  %v6042_v33 = vld [vmem:[%s7443_s4 + $0xb0] sm:$0xff]  }
 0x651   : > { %2508 = vadd.xlane.f32.xlu1 %v2507_v37 }
 0x6b9   : > { %v2955_v47 = vpop.xlane.xlu0 %2954 }
 0x6bd   : > { %v2961_v55 = vpop.xlane.xlu0 %2960 }
 0x6be   : > { %v2958_v50 = vpop.xlane.xlu1 %2957 }
 0x6c2   : > { %v2967_v45 = vpop.xlane.xlu0 %2966  ;;  %v2964_v43 = vpop.xlane.xlu1 %2963 }
 0x6c6   : > { %v2973_v40 = vpop.xlane.xlu0 %2972  ;;  %v2970_v44 = vpop.xlane.xlu1 %2969 }
 0x6ca   : > { %v2488_v46 = vpop.xlane.xlu0 %2487  ;;  %v2976_v49 = vpop.xlane.xlu1 %2975 }
 0x6cb   : > { %6105 = vrcp.f32 %v2488_v46 }
 0x6ce   : > { %v2494_v36 = vpop.xlane.xlu0 %2493  ;;  %v2491_v56 = vpop.xlane.xlu1 %2490 }
 0x6cf   : > { %6107 = vrcp.f32 %v2491_v56  ;;  %v7176_v56 = vld [vmem:[#allocation2] sm:$0xff]  }
 0x6d0   : > { %6109 = vrcp.f32 %v2494_v36 }
 0x6d2   : > { %v2500_v42 = vpop.xlane.xlu0 %2499  ;;  %v2497_v51 = vpop.xlane.xlu1 %2496 }
 0x6d3   : > { %6111 = vrcp.f32 %v2497_v51  ;;  %v6046_v51 = vld [vmem:[%s7443_s4 + $0x90] sm:$0xff]  }
 0x6d4   : > { %6113 = vrcp.f32 %v2500_v42  ;;  %v6045_v42 = vld [vmem:[%s7443_s4 + $0x98] sm:$0xff]  }
 0x6d6   : > { %v2506_v54 = vpop.xlane.xlu0 %2505  ;;  %v2503_v57 = vpop.xlane.xlu1 %2502 }
 0x6d7   : > { %6115 = vrcp.f32 %v2503_v57  ;;  %v6048_v57 = vld [vmem:[%s7443_s4 + $0x80] sm:$0xff]  }
 0x6d8   : > { %6117 = vrcp.f32 %v2506_v54  ;;  %v6106_v59 = vpop.eup %6105  ;;  %v6047_v54 = vld [vmem:[%s7443_s4 + $0x88] sm:$0xff]  }
 0x6d9   : > { %v2631_v52 = vmul.f32 %v6106_v59, %v7076_v9  ;;  %v3473_v9 = vsel %vm2347_vm2, %v7108_v22, 0  ;;  %v7191_v59 = vld [vmem:[#allocation2 + $0x8] sm:$0xff]  }
 0x6da   : > { %v2509_v58 = vpop.xlane.xlu1 %2508 }
 0x6db   : > { %6119 = vrcp.f32 %v2509_v58  ;;  %v6049_v58 = vld [vmem:[#allocation4 + $0x58] sm:$0xff]  }
 0x6dc   : > { %v6108_v60 = vpop.eup %6107  ;;  %6121 = vrcp.f32 %v2955_v47 }
 0x6dd   : > { %v2632_v61 = vmul.f32 %v6108_v60, %v7080_v11  ;;  %v6110_v53 = vpop.eup %6109  ;;  %6123 = vrcp.f32 %v2964_v43  ;;  %v6050_v60 = vld [vmem:[#allocation4 + $0x50] sm:$0xff]  }
 0x6de   : > { %v2633_v48 = vmul.f32 %v6110_v53, %v7074_v8  ;;  %6125 = vrcp.f32 %v2958_v50  ;;  %v7197_v53 = vld [vmem:[#allocation2 + $0x18] sm:$0xff]  }
 0x6df   : > { %v2639_v62 = vpack.c.bf16 %v2632_v61, %v2631_v52  ;;  %6127 = vrcp.f32 %v2961_v55  ;;  %v7194_v52 = vld [vmem:[#allocation2 + $0x10] sm:$0xff]   ;;  %v6051_v61 = vld [vmem:[#allocation4 + $0x48] sm:$0xff]  }
 0x6e0   : > { %v6112_v63 = vpop.eup %6111  ;;  %6129 = vrcp.f32 %v2967_v45  ;;  %v6043_v45 = vld [vmem:[%s7443_s4 + $0xa8] sm:$0xff]  }
 0x6e1   : > { %v2634_v0 = vmul.f32 %v6112_v63, %v7078_v10  ;;  %5720 = vmatprep.mubr.msk.bf16.mxu1 %vm2347_vm2, %v2639_v62  ;;  %v6114_v1 = vpop.eup %6113  ;;  %6131 = vrcp.f32 %v2976_v49  ;;  %v6052_v62 = vld [vmem:[#allocation4 + $0x40] sm:$0xff]   ;;  %v6053_v63 = vld [vmem:[%s7449_s10 + $0x10] sm:$0xff]  }
 0x6e2   : > { %v2635_v11 = vmul.f32 %v6114_v1, %v7084_v13  ;;  %v3467_v13 = vsel %vm2347_vm2, %v6038_v19, 0  ;;  %6133 = vrcp.f32 %v2970_v44 }
 0x6e3   : > { %v2640_v2 = vpack.c.bf16 %v2634_v0, %v2633_v48  ;;  %6135 = vrcp.f32 %v2973_v40 }
 0x6e4   : > { %v6116_v3 = vpop.eup %6115 }
 0x6e5   : > { %v6118_v4 = vpop.eup %6117  ;;  %5721 = vmatmul.mubr.msk.bf16.vlgmr.msra.gmra.mxu1 %vm2347_vm2, %v2640_v2  ;;  %v2636_v6 = vmul.f32 %v6116_v3, %v7088_v15 }
 0x6e6   : > { %5753 = vmatpush3.bf16.xpose.msra.mxu1 %v3473_v9  ;;  %v2637_v7 = vmul.f32 %v6118_v4, %v7082_v12  ;;  %v6040_v12 = vld [vmem:[#allocation3 + $0x40] sm:$0xff]  }
 0x6e7   : > { %5869 = vmatprep.subr.msk.bf16.mxu1 %vm2347_vm2, %v6037_v5  ;;  %v2641_v10 = vpack.c.bf16 %v2636_v6, %v2635_v11  ;;  %v3464_v21 = vsel %vm2347_vm2, %v6040_v12, 0 }
 0x6e8   : > { %v6120_v8 = vpop.eup %6119 }
 0x6e9   : > { %v2638_v16 = vmul.f32 %v6120_v8, %v7086_v14  ;;  %5724 = vmatprep.mubr.msk.bf16.mxu1 %vm2347_vm2, %v2641_v10  ;;  %v6122_v20 = vpop.eup %6121 }
 0x6ea   : > { %v6124_v23 = vpop.eup %6123 }
 0x6eb   : > { %v2642_v17 = vpack.c.bf16 %v2638_v16, %v2637_v7  ;;  %v6126_v24 = vpop.eup %6125 }
 0x6ec   : > { %v6128_v27 = vpop.eup %6127 }
 0x6ed   : > { %5725 = vmatmul.mubr.msk.bf16.gmra.mxu1 %vm2347_vm2, %v2642_v17  ;;  %v6130_v41 = vpop.eup %6129 }
 0x6ee   : > { %5755 = vmatpush3.bf16.xpose.msra.mxu1 %v3470_v18  ;;  %v6132_v38 = vpop.eup %6131 }
 0x6ef   : > { %5870 = vmatprep.subr.msk.bf16.mxu1 %vm2347_vm2, %v6038_v19  ;;  %v6134_v47 = vpop.eup %6133 }
 0x6f0   : > { %v6136_v43 = vpop.eup %6135 }
 0x6f6   : > { %5757 = vmatpush3.bf16.xpose.msra.mxu1 %v3467_v13 }
 0x6f7   : > { %5871 = vmatprep.subr.msk.bf16.mxu1 %vm2347_vm2, %v6040_v12 }
 0x6fa   : > { %v5702_v14 = vpop.f32.mrf.mxu1 }
 0x6fb   : > { %v3101_v30 = vmul.f32 %v6128_v27, %v5702_v14 }
 0x6fc   : > { %v3060_v15 = vpop.f32.mrf.mxu1 }
 0x6fd   : > { %v3099_v28 = vmul.f32 %v6122_v20, %v3060_v15 }
 0x6fe   : > { %v5703_v22 = vpop.f32.mrf.mxu1  ;;  %5759 = vmatpush3.bf16.xpose.msra.mxu1 %v3464_v21 }
 0x6ff   : > { %v3102_v25 = vmul.f32 %v6124_v23, %v5703_v22  ;;  %5784 = vmatprep.subr.bf16.mxu1 %v6053_v63 }
 0x700   : > { %v3063_v26 = vpop.f32.mrf.mxu1 }
 0x701   : > { %v3100_v29 = vmul.f32 %v6126_v24, %v3063_v26  ;;  %v3108_v35 = vpack.c.bf16 %v3102_v25, %v3101_v30  ;;  %v4888_v24 = vld [vmem:[%s7446_s7 + $0x2] ss:$0 sm:$0xff] }
 0x702   : > { %v5706_v31 = vpop.f32.mrf.mxu1 }
 0x703   : > { %v3107_v32 = vpack.c.bf16 %v3100_v29, %v3099_v28  ;;  %v3105_v46 = vmul.f32 %v6136_v43, %v5706_v31 }
 0x704   : > { %v3076_v39 = vpop.f32.mrf.mxu1 }
 0x705   : > { %5710 = vmatprep.mubr.msk.bf16.mxu0 %vm2347_vm2, %v3107_v32  ;;  %v3103_v40 = vmul.f32 %v6130_v41, %v3076_v39 }
 0x706   : > { %v5707_v37 = vpop.f32.mrf.mxu1  ;;  %5711 = vmatmul.mubr.msk.bf16.vlgmr.msra.gmra.mxu0 %vm2347_vm2, %v3108_v35 }
 0x707   : > { %5729 = vmatpush3.bf16.msra.mxu0 %v7139_v34  ;;  %v3106_v55 = vmul.f32 %v6132_v38, %v5707_v37  ;;  %v6044_v34 = vld [vmem:[%s7443_s4 + $0xa0] sm:$0xff]  }
 0x708   : > { %v3079_v50 = vpop.f32.mrf.mxu1  ;;  %5730 = vmatprep.subr.bf16.mxu0 %v6042_v33 }
 0x709   : > { %v3104_v44 = vmul.f32 %v6134_v47, %v3079_v50  ;;  %v3110_v36 = vpack.c.bf16 %v3106_v55, %v3105_v46 }
 0x70b   : > { %v3109_v49 = vpack.c.bf16 %v3104_v44, %v3103_v40  ;;  %5731 = vmatpush3.bf16.msra.mxu0 %v6042_v33  ;;  %v7224_v33 = vld [vmem:[#allocation3 + $0x78] sm:$0xff]  }
 0x70c   : > { %5732 = vmatprep.subr.bf16.mxu0 %v6043_v45 }
 0x70d   : > { %5714 = vmatprep.mubr.msk.bf16.mxu0 %vm2347_vm2, %v3109_v49 }
 0x70e   : > { %5715 = vmatmul.mubr.msk.bf16.gmra.mxu0 %vm2347_vm2, %v3110_v36 }
 0x70f   : > { %5733 = vmatpush3.bf16.msra.mxu0 %v6043_v45  ;;  %5744 = vmatprep.mubr.bf16.mxu0 %v7176_v56 }
 0x710   : > { %5734 = vmatprep.subr.bf16.mxu0 %v6044_v34 }
 0x713   : > { %5735 = vmatpush3.bf16.msra.mxu0 %v6044_v34 }
 0x714   : > { %5736 = vmatprep.subr.bf16.mxu0 %v6045_v42 }
 0x717   : > { %5737 = vmatpush3.bf16.msra.mxu0 %v6045_v42 }
 0x718   : > { %5738 = vmatprep.subr.bf16.mxu0 %v6046_v51 }
 0x71b   : > { %5739 = vmatpush3.bf16.msra.mxu0 %v6046_v51 }
 0x71c   : > { %5740 = vmatprep.subr.bf16.mxu0 %v6047_v54 }
 0x71f   : > { %5741 = vmatpush3.bf16.msra.mxu0 %v6047_v54 }
 0x720   : > { %5742 = vmatprep.subr.bf16.mxu0 %v6048_v57 }
 0x723   : > { %5743 = vmatpush3.bf16.msra.mxu0 %v6048_v57 }
 0x724   : > { %5768 = vmatprep.subr.bf16.mxu0 %v6049_v58 }
 0x726   : > { %5745 = vmatmul.mubr.bf16.vlgmr.msra.gmra.mxu0 %v7191_v59 }
 0x727   : > { %5748 = vmatprep.mubr.bf16.mxu0 %v7194_v52  ;;  %5769 = vmatpush3.bf16.msra.mxu0 %v6049_v58 }
 0x728   : > { %5770 = vmatprep.subr.bf16.mxu0 %v6050_v60 }
 0x72b   : > { %5771 = vmatpush3.bf16.msra.mxu0 %v6050_v60 }
 0x72c   : > { %5772 = vmatprep.subr.bf16.mxu0 %v6051_v61 }
 0x72e   : > { %5749 = vmatmul.mubr.bf16.gmra.mxu0 %v7197_v53 }
 0x72f   : > { %5773 = vmatpush3.bf16.msra.mxu0 %v6051_v61 }
 0x730   : > { %5774 = vmatprep.subr.bf16.mxu0 %v6052_v62 }
 0x733   : > { %5775 = vmatpush3.bf16.msra.mxu0 %v6052_v62 }
 0x7a5   : > { %v5722_v48 = vpop.f32.mrf.mxu1 }
 0x7a7   : > { %v3249_v0 = vpop.f32.mrf.mxu1 }
 0x7a9   : > { %v5723_v1 = vpop.f32.mrf.mxu1 }
 0x7ab   : > { %v3252_v2 = vpop.f32.mrf.mxu1 }
 0x7ad   : > { %v5726_v11 = vpop.f32.mrf.mxu1 }
 0x7af   : > { %v3265_v16 = vpop.f32.mrf.mxu1 }
 0x7b1   : > { %v5727_v12 = vpop.f32.mrf.mxu1 }
 0x7b3   : > { %v7230_v43 = vpop.f32.mrf.mxu1 }
 0x7c6   : > { %v5712_v3 = vpop.f32.mrf.mxu0 }
 0x7c7   : > { %v7203_v4 = vadd.f32 %v5722_v48, %v5712_v3 }
 0x7c8   : > { %v3166_v9 = vpop.f32.mrf.mxu0 }
 0x7c9   : > { %v7205_v5 = vadd.f32 %v3249_v0, %v3166_v9  ;;  %v6055_v0 = vld [vmem:[%s7443_s4 + $0xf8] sm:$0xff]  }
 0x7ca   : > { %v5713_v6 = vpop.f32.mrf.mxu0  ;;  %5794 = vmatprep.subr.bf16.mxu0 %v6055_v0 }
 0x7cb   : > { %v7207_v8 = vadd.f32 %v5723_v1, %v5713_v6 }
 0x7cc   : > { %v3169_v10 = vpop.f32.mrf.mxu0 }
 0x7cd   : > { %v7209_v7 = vadd.f32 %v3252_v2, %v3169_v10 }
 0x7ce   : > { %v5716_v17 = vpop.f32.mrf.mxu0 }
 0x7cf   : > { %v7211_v18 = vadd.f32 %v5726_v11, %v5716_v17 }
 0x7d0   : > { %v3182_v19 = vpop.f32.mrf.mxu0 }
 0x7d1   : > { %v7213_v13 = vadd.f32 %v3265_v16, %v3182_v19 }
 0x7d2   : > { %v5717_v14 = vpop.f32.mrf.mxu0 }
 0x7d3   : > { %v7215_v15 = vadd.f32 %v5727_v12, %v5717_v14 }
 0x7d4   : > { %v7217_v20 = vpop.f32.mrf.mxu0 }
 0x7e6   : > { %v5746_v21 = vpop.f32.mrf.mxu0 }
 0x7e7   : > { %v3396_v29 = vadd.f32 %v5746_v21, %v4888_v24 }
 0x7e8   : > { %v3387_v22 = vpop.f32.mrf.mxu0 }
 0x7e9   : > { %v3388_v27 = vadd.f32 %v4888_v24, %v3387_v22 }
 0x7ea   : > { %v5747_v23 = vpop.f32.mrf.mxu0 }
 0x7eb   : > { %v3399_v25 = vadd.f32 %v5747_v23, %v4888_v24 }
 0x7ec   : > { %v3390_v26 = vpop.f32.mrf.mxu0 }
 0x7ed   : > { %v3391_v28 = vadd.f32 %v4888_v24, %v3390_v26  ;;  %v3419_v32 = vpack.c.bf16 %v3399_v25, %v3396_v29 }
 0x7ee   : > { %v5750_v30 = vpop.f32.mrf.mxu0 }
 0x7ef   : > { %v3418_v31 = vpack.c.bf16 %v3391_v28, %v3388_v27  ;;  %v3412_v55 = vadd.f32 %v5750_v30, %v4888_v24 }
 0x7f0   : > { %v3403_v35 = vpop.f32.mrf.mxu0 }
 0x7f1   : > { %5760 = vmatprep.mubr.msk.bf16.mxu1 %vm2347_vm2, %v3418_v31  ;;  %v3404_v38 = vadd.f32 %v4888_v24, %v3403_v35 }
 0x7f2   : > { %v5751_v39 = vpop.f32.mrf.mxu0  ;;  %5761 = vmatmul.mubr.msk.bf16.vlgmr.msra.gmra.mxu1 %vm2347_vm2, %v3419_v32 }
 0x7f3   : > { %5785 = vmatpush3.bf16.msra.mxu1 %v6053_v63  ;;  %v3415_v41 = vadd.f32 %v5751_v39, %v4888_v24 }
 0x7f4   : > { %5872 = vmatprep.subr.msk.bf16.mxu1 %vm2347_vm2, %v7224_v33  ;;  %v3406_v37 = vpop.f32.mrf.mxu0 }
 0x7f5   : > { %v3407_v47 = vadd.f32 %v4888_v24, %v3406_v37  ;;  %v3421_v45 = vpack.c.bf16 %v3415_v41, %v3412_v55 }
 0x7f7   : > { %v3420_v50 = vpack.c.bf16 %v3407_v47, %v3404_v38 }
 0x7f9   : > { %5764 = vmatprep.mubr.msk.bf16.mxu1 %vm2347_vm2, %v3420_v50 }
 0x7fa   : > { %5765 = vmatmul.mubr.msk.bf16.gmra.mxu1 %vm2347_vm2, %v3421_v45 }
 0x8b2   : > { %v5762_v40 = vpop.f32.mrf.mxu1 }
 0x8b3   : > { %v3546_v34 = vsel %vm2437_vm3, %v5762_v40, -inf }
 0x8b4   : > { %v3509_v44 = vpop.f32.mrf.mxu1 }
 0x8b5   : > { %v3540_v46 = vsel %vm2437_vm3, %v3509_v44, -inf }
 0x8b6   : > { %3541 = vmax.xlane.f32.xlu0 %v3540_v46  ;;  %v5763_v49 = vpop.f32.mrf.mxu1 }
 0x8b7   : > { %v3549_v57 = vsel %vm2437_vm3, %v5763_v49, -inf }
 0x8b8   : > { %v3512_v36 = vpop.f32.mrf.mxu1 }
 0x8b9   : > { %v3543_v42 = vsel %vm2437_vm3, %v3512_v36, -inf }
 0x8ba   : > { %3547 = vmax.xlane.f32.xlu0 %v3546_v34  ;;  %3544 = vmax.xlane.f32.xlu1 %v3543_v42  ;;  %v5766_v51 = vpop.f32.mrf.mxu1 }
 0x8bb   : > { %v3558_v62 = vsel %vm2437_vm3, %v5766_v51, -inf }
 0x8bc   : > { %v3525_v54 = vpop.f32.mrf.mxu1 }
 0x8bd   : > { %v3552_v58 = vsel %vm2437_vm3, %v3525_v54, -inf }
 0x8be   : > { %3550 = vmax.xlane.f32.xlu1 %v3549_v57  ;;  %3553 = vmax.xlane.f32.xlu0 %v3552_v58  ;;  %v5767_v60 = vpop.f32.mrf.mxu1  ;;  %v6057_v57 = vld [vmem:[%s7443_s4 + $0xe8] sm:$0xff]  }
 0x8bf   : > { %v3561_v48 = vsel %vm2437_vm3, %v5767_v60, -inf }
 0x8c0   : > { %v3528_v61 = vpop.f32.mrf.mxu1 }
 0x8c1   : > { %v3555_v63 = vsel %vm2437_vm3, %v3528_v61, -inf }
 0x8c2   : > { %3559 = vmax.xlane.f32.xlu0 %v3558_v62  ;;  %3556 = vmax.xlane.f32.xlu1 %v3555_v63  ;;  %v6058_v62 = vld [vmem:[%s7443_s4 + $0xe0] sm:$0xff]   ;;  %v6059_v63 = vld [vmem:[%s7443_s4 + $0xd8] sm:$0xff]  }
 0x8c6   : > { %3562 = vmax.xlane.f32.xlu1 %v3561_v48  ;;  %v6060_v48 = vld [vmem:[%s7443_s4 + $0xd0] sm:$0xff]  }
 0x93f   : > { %v3542_v1 = vpop.xlane.xlu0 %3541 }
 0x940   : > { %v3564_v2 = vsub.f32 %v3509_v44, %v3542_v1  ;;  %v6063_v1 = vld [vmem:[#allocation4 + $0x78] sm:$0xff]  }
 0x942   : > { %v3572_v3 = vmul.f32 1.442695, %v3564_v2  ;;  %v6064_v2 = vld [vmem:[#allocation4 + $0x70] sm:$0xff]  }
 0x943   : > { %v3548_v9 = vpop.xlane.xlu0 %3547  ;;  %v3545_v11 = vpop.xlane.xlu1 %3544 }
 0x944   : > { %6137 = vpow2.f32 %v3572_v3  ;;  %v3566_v6 = vsub.f32 %v5762_v40, %v3548_v9  ;;  %v3565_v10 = vsub.f32 %v3512_v36, %v3545_v11  ;;  %v6065_v3 = vld [vmem:[#allocation4 + $0x68] sm:$0xff]   ;;  %v6066_v9 = vld [vmem:[#allocation4 + $0x60] sm:$0xff]  }
 0x946   : > { %v3576_v16 = vmul.f32 1.442695, %v3566_v6  ;;  %v3574_v17 = vmul.f32 1.442695, %v3565_v10 }
 0x947   : > { %v3551_v19 = vpop.xlane.xlu1 %3550  ;;  %v3554_v12 = vpop.xlane.xlu0 %3553 }
 0x948   : > { %6139 = vpow2.f32 %v3576_v16  ;;  %v3567_v14 = vsub.f32 %v5763_v49, %v3551_v19  ;;  %v3568_v21 = vsub.f32 %v3525_v54, %v3554_v12  ;;  %v6056_v49 = vld [vmem:[%s7443_s4 + $0xf0] sm:$0xff]  }
 0x949   : > { %6141 = vpow2.f32 %v3574_v17 }
 0x94a   : > { %v3578_v22 = vmul.f32 1.442695, %v3567_v14  ;;  %v3580_v23 = vmul.f32 1.442695, %v3568_v21 }
 0x94b   : > { %v3560_v24 = vpop.xlane.xlu0 %3559  ;;  %v3557_v25 = vpop.xlane.xlu1 %3556 }
 0x94c   : > { %6143 = vpow2.f32 %v3578_v22  ;;  %v3570_v26 = vsub.f32 %v5766_v51, %v3560_v24  ;;  %v3569_v27 = vsub.f32 %v3528_v61, %v3557_v25 }
 0x94d   : > { %6145 = vpow2.f32 %v3580_v23 }
 0x94e   : > { %v3584_v28 = vmul.f32 1.442695, %v3570_v26  ;;  %v3582_v29 = vmul.f32 1.442695, %v3569_v27 }
 0x94f   : > { %v3563_v30 = vpop.xlane.xlu1 %3562 }
 0x950   : > { %6147 = vpow2.f32 %v3584_v28  ;;  %v3571_v31 = vsub.f32 %v5767_v60, %v3563_v30 }
 0x951   : > { %v6138_v32 = vpop.eup %6137  ;;  %6149 = vpow2.f32 %v3582_v29 }
 0x952   : > { %v3586_v35 = vmul.f32 1.442695, %v3571_v31  ;;  %v3588_v39 = vsel %vm2437_vm3, %v6138_v32, 0.0 }
 0x953   : > { %3589 = vadd.xlane.f32.xlu0 %v3588_v39 }
 0x954   : > { %6151 = vpow2.f32 %v3586_v35 }
 0x955   : > { %v6140_v41 = vpop.eup %6139 }
 0x956   : > { %v6142_v37 = vpop.eup %6141  ;;  %v3594_v38 = vsel %vm2437_vm3, %v6140_v41, 0.0 }
 0x957   : > { %3595 = vadd.xlane.f32.xlu0 %v3594_v38  ;;  %v3591_v47 = vsel %vm2437_vm3, %v6142_v37, 0.0  ;;  %v3612_v55 = vpack.c.bf16 %v6142_v37, %v6138_v32  ;;  %v4033_v37 = vsel %vm2347_vm2, %v7224_v33, 0  ;;  %v6067_v38 = vld [vmem:[#allocation3 + $0x70] sm:$0xff]  }
 0x958   : > { %3592 = vadd.xlane.f32.xlu1 %v3591_v47  ;;  %v4030_v33 = vsel %vm2347_vm2, %v6067_v38, 0 }
 0x959   : > { %v6144_v50 = vpop.eup %6143  ;;  %5776 = vmatprep.mubr.msk.bf16.mxu0 %vm2437_vm3, %v3612_v55 }
 0x95a   : > { %v6146_v45 = vpop.eup %6145  ;;  %v3613_v40 = vpack.c.bf16 %v6144_v50, %v6140_v41  ;;  %v3597_v44 = vsel %vm2437_vm3, %v6144_v50, 0.0 }
 0x95b   : > { %v3600_v46 = vsel %vm2437_vm3, %v6146_v45, 0.0 }
 0x95c   : > { %3601 = vadd.xlane.f32.xlu0 %v3600_v46  ;;  %3598 = vadd.xlane.f32.xlu1 %v3597_v44 }
 0x95d   : > { %v6148_v36 = vpop.eup %6147  ;;  %5777 = vmatmul.mubr.msk.bf16.vlgmr.msra.gmra.mxu0 %vm2437_vm3, %v3613_v40 }
 0x95e   : > { %v6150_v34 = vpop.eup %6149  ;;  %5795 = vmatpush3.bf16.msra.mxu0 %v6055_v0  ;;  %v3606_v42 = vsel %vm2437_vm3, %v6148_v36, 0.0  ;;  %v6061_v0 = vld [vmem:[%s7443_s4 + $0xc8] sm:$0xff]  }
 0x95f   : > { %5796 = vmatprep.subr.bf16.mxu0 %v6056_v49  ;;  %v3603_v51 = vsel %vm2437_vm3, %v6150_v34, 0.0  ;;  %v3614_v54 = vpack.c.bf16 %v6150_v34, %v6146_v45 }
 0x960   : > { %3607 = vadd.xlane.f32.xlu0 %v3606_v42  ;;  %3604 = vadd.xlane.f32.xlu1 %v3603_v51  ;;  %v6068_v42 = vld [vmem:[#allocation3 + $0x68] sm:$0xff]  }
 0x961   : > { %v6152_v58 = vpop.eup %6151  ;;  %5780 = vmatprep.mubr.msk.bf16.mxu0 %vm2437_vm3, %v3614_v54  ;;  %v4027_v51 = vsel %vm2347_vm2, %v6068_v42, 0  ;;  %v6069_v54 = vld [vmem:[#allocation3 + $0x60] sm:$0xff]  }
 0x962   : > { %5797 = vmatpush3.bf16.msra.mxu0 %v6056_v49  ;;  %v3609_v60 = vsel %vm2437_vm3, %v6152_v58, 0.0  ;;  %v3615_v61 = vpack.c.bf16 %v6152_v58, %v6148_v36 }
 0x963   : > { %5798 = vmatprep.subr.bf16.mxu0 %v6057_v57 }
 0x964   : > { %3610 = vadd.xlane.f32.xlu1 %v3609_v60 }
 0x965   : > { %5781 = vmatmul.mubr.msk.bf16.gmra.mxu0 %vm2437_vm3, %v3615_v61  ;;  %v4024_v61 = vsel %vm2347_vm2, %v6069_v54, 0 }
 0x966   : > { %5799 = vmatpush3.bf16.msra.mxu0 %v6057_v57  ;;  %5810 = vmatprep.mubr.bf16.mxu0 %v7176_v56  ;;  %v6062_v56 = vld [vmem:[%s7443_s4 + $0xc0] sm:$0xff]  }
 0x967   : > { %5800 = vmatprep.subr.bf16.mxu0 %v6058_v62 }
 0x96a   : > { %5801 = vmatpush3.bf16.msra.mxu0 %v6058_v62  ;;  %v4937_v62 = vld [vmem:[%s7446_s7 + $0x3] ss:$0 sm:$0xff] }
 0x96b   : > { %5802 = vmatprep.subr.bf16.mxu0 %v6059_v63 }
 0x96e   : > { %5803 = vmatpush3.bf16.msra.mxu0 %v6059_v63 }
 0x96f   : > { %5804 = vmatprep.subr.bf16.mxu0 %v6060_v48 }
 0x972   : > { %5805 = vmatpush3.bf16.msra.mxu0 %v6060_v48 }
 0x973   : > { %5806 = vmatprep.subr.bf16.mxu0 %v6061_v0 }
 0x976   : > { %5807 = vmatpush3.bf16.msra.mxu0 %v6061_v0 }
 0x977   : > { %5808 = vmatprep.subr.bf16.mxu0 %v6062_v56 }
 0x97a   : > { %5809 = vmatpush3.bf16.msra.mxu0 %v6062_v56 }
 0x97b   : > { %5834 = vmatprep.subr.bf16.mxu0 %v6063_v1 }
 0x97d   : > { %5811 = vmatmul.mubr.bf16.vlgmr.msra.gmra.mxu0 %v7191_v59 }
 0x97e   : > { %5814 = vmatprep.mubr.bf16.mxu0 %v7194_v52  ;;  %5835 = vmatpush3.bf16.msra.mxu0 %v6063_v1 }
 0x97f   : > { %5836 = vmatprep.subr.bf16.mxu0 %v6064_v2 }
 0x982   : > { %5837 = vmatpush3.bf16.msra.mxu0 %v6064_v2 }
 0x983   : > { %5838 = vmatprep.subr.bf16.mxu0 %v6065_v3 }
 0x985   : > { %5815 = vmatmul.mubr.bf16.gmra.mxu0 %v7197_v53 }
 0x986   : > { %5839 = vmatpush3.bf16.msra.mxu0 %v6065_v3 }
 0x987   : > { %5840 = vmatprep.subr.bf16.mxu0 %v6066_v9 }
 0x98a   : > { %5841 = vmatpush3.bf16.msra.mxu0 %v6066_v9 }
 0x9dc   : > { %v3590_v6 = vpop.xlane.xlu0 %3589 }
 0x9dd   : > { %6153 = vrcp.f32 %v3590_v6 }
 0x9e0   : > { %v3596_v16 = vpop.xlane.xlu0 %3595 }
 0x9e1   : > { %v3593_v11 = vpop.xlane.xlu1 %3592 }
 0x9e5   : > { %v3599_v10 = vpop.xlane.xlu1 %3598  ;;  %v3602_v52 = vpop.xlane.xlu0 %3601 }
 0x9e6   : > { %6155 = vrcp.f32 %v3599_v10 }
 0x9e7   : > { %6157 = vrcp.f32 %v3593_v11 }
 0x9e8   : > { %6159 = vrcp.f32 %v3596_v16 }
 0x9e9   : > { %v3605_v59 = vpop.xlane.xlu1 %3604  ;;  %6161 = vrcp.f32 %v3602_v52  ;;  %v3608_v19 = vpop.xlane.xlu0 %3607 }
 0x9ea   : > { %v6154_v14 = vpop.eup %6153 }
 0x9ed   : > { %v3611_v17 = vpop.xlane.xlu1 %3610 }
 0x9ee   : > { %6163 = vrcp.f32 %v3611_v17 }
 0x9ef   : > { %6165 = vrcp.f32 %v3605_v59 }
 0x9f0   : > { %6167 = vrcp.f32 %v3608_v19 }
 0x9f3   : > { %v6156_v22 = vpop.eup %6155 }
 0x9f4   : > { %v6158_v23 = vpop.eup %6157 }
 0x9f5   : > { %v6160_v26 = vpop.eup %6159 }
 0x9f6   : > { %v6162_v39 = vpop.eup %6161 }
 0x9fb   : > { %v6164_v47 = vpop.eup %6163 }
 0x9fc   : > { %v6166_v55 = vpop.eup %6165 }
 0x9fd   : > { %v6168_v40 = vpop.eup %6167 }
 0xa1d   : > { %v5778_v12 = vpop.f32.mrf.mxu0 }
 0xa1e   : > { %v3736_v29 = vmul.f32 %v6160_v26, %v5778_v12 }
 0xa1f   : > { %v3695_v53 = vpop.f32.mrf.mxu0 }
 0xa20   : > { %v3734_v27 = vmul.f32 %v6154_v14, %v3695_v53 }
 0xa21   : > { %v5779_v21 = vpop.f32.mrf.mxu0 }
 0xa22   : > { %v3737_v24 = vmul.f32 %v6156_v22, %v5779_v21 }
 0xa23   : > { %v3698_v25 = vpop.f32.mrf.mxu0 }
 0xa24   : > { %v3735_v28 = vmul.f32 %v6158_v23, %v3698_v25  ;;  %v3743_v32 = vpack.c.bf16 %v3737_v24, %v3736_v29 }
 0xa25   : > { %v5782_v30 = vpop.f32.mrf.mxu0 }
 0xa26   : > { %v3742_v31 = vpack.c.bf16 %v3735_v28, %v3734_v27  ;;  %v3740_v49 = vmul.f32 %v6168_v40, %v5782_v30 }
 0xa27   : > { %v3711_v35 = vpop.f32.mrf.mxu0 }
 0xa28   : > { %5786 = vmatprep.mubr.msk.bf16.mxu1 %vm2347_vm2, %v3742_v31  ;;  %v3738_v44 = vmul.f32 %v6162_v39, %v3711_v35 }
 0xa29   : > { %v5783_v41 = vpop.f32.mrf.mxu0  ;;  %5787 = vmatmul.mubr.msk.bf16.vlgmr.msra.gmra.mxu1 %vm2347_vm2, %v3743_v32 }
 0xa2a   : > { %5819 = vmatpush3.bf16.xpose.msra.mxu1 %v4033_v37  ;;  %v3741_v50 = vmul.f32 %v6164_v47, %v5783_v41 }
 0xa2b   : > { %5873 = vmatprep.subr.msk.bf16.mxu1 %vm2347_vm2, %v6067_v38  ;;  %v3714_v45 = vpop.f32.mrf.mxu0 }
 0xa2c   : > { %v3739_v46 = vmul.f32 %v6166_v55, %v3714_v45  ;;  %v3745_v34 = vpack.c.bf16 %v3741_v50, %v3740_v49 }
 0xa2e   : > { %v3744_v36 = vpack.c.bf16 %v3739_v46, %v3738_v44 }
 0xa30   : > { %5790 = vmatprep.mubr.msk.bf16.mxu1 %vm2347_vm2, %v3744_v36 }
 0xa31   : > { %5791 = vmatmul.mubr.msk.bf16.gmra.mxu1 %vm2347_vm2, %v3745_v34 }
 0xa32   : > { %5821 = vmatpush3.bf16.xpose.msra.mxu1 %v4030_v33 }
 0xa33   : > { %5874 = vmatprep.subr.msk.bf16.mxu1 %vm2347_vm2, %v6068_v42 }
 0xa3a   : > { %5823 = vmatpush3.bf16.xpose.msra.mxu1 %v4027_v51 }
 0xa3b   : > { %5875 = vmatprep.subr.msk.bf16.mxu1 %vm2347_vm2, %v6069_v54 }
 0xa3d   : > { %v5812_v57 = vpop.f32.mrf.mxu0 }
 0xa3e   : > { %v3956_v1 = vadd.f32 %v5812_v57, %v4937_v62 }
 0xa3f   : > { %v3947_v58 = vpop.f32.mrf.mxu0 }
 0xa40   : > { %v3948_v0 = vadd.f32 %v4937_v62, %v3947_v58 }
 0xa41   : > { %v5813_v60 = vpop.f32.mrf.mxu0 }
 0xa42   : > { %5825 = vmatpush3.bf16.xpose.msra.mxu1 %v4024_v61  ;;  %v3959_v63 = vadd.f32 %v5813_v60, %v4937_v62 }
 0xa43   : > { %v3950_v48 = vpop.f32.mrf.mxu0 }
 0xa44   : > { %v3951_v56 = vadd.f32 %v4937_v62, %v3950_v48  ;;  %v3979_v9 = vpack.c.bf16 %v3959_v63, %v3956_v1 }
 0xa45   : > { %v5816_v2 = vpop.f32.mrf.mxu0 }
 0xa46   : > { %v3978_v3 = vpack.c.bf16 %v3951_v56, %v3948_v0  ;;  %v3972_v17 = vadd.f32 %v5816_v2, %v4937_v62 }
 0xa47   : > { %v3963_v11 = vpop.f32.mrf.mxu0 }
 0xa48   : > { %5826 = vmatprep.mubr.msk.bf16.mxu1 %vm2347_vm2, %v3978_v3  ;;  %v3964_v59 = vadd.f32 %v4937_v62, %v3963_v11 }
 0xa49   : > { %v5817_v6 = vpop.f32.mrf.mxu0  ;;  %5827 = vmatmul.mubr.msk.bf16.vlgmr.msra.gmra.mxu1 %vm2347_vm2, %v3979_v9 }
 0xa4a   : > { %v3975_v10 = vadd.f32 %v5817_v6, %v4937_v62 }
 0xa4b   : > { %v3966_v16 = vpop.f32.mrf.mxu0 }
 0xa4c   : > { %v3967_v52 = vadd.f32 %v4937_v62, %v3966_v16  ;;  %v3981_v12 = vpack.c.bf16 %v3975_v10, %v3972_v17 }
 0xa4e   : > { %v3980_v19 = vpack.c.bf16 %v3967_v52, %v3964_v59 }
 0xa50   : > { %5830 = vmatprep.mubr.msk.bf16.mxu1 %vm2347_vm2, %v3980_v19 }
 0xa51   : > { %5831 = vmatmul.mubr.msk.bf16.gmra.mxu1 %vm2347_vm2, %v3981_v12 }
 0xae9   : > { %v5788_v53 = vpop.f32.mrf.mxu1 }
 0xaea   : > { %v7300_v14 = vadd.f32 %v5788_v53, %v7203_v4 }
 0xaeb   : > { %v3801_v21 = vpop.f32.mrf.mxu1 }
 0xaec   : > { %v7303_v22 = vadd.f32 %v3801_v21, %v7205_v5  ;;  %v3269_v5 = vadd.f32 %v7230_v43, %v7217_v20 }
 0xaed   : > { %v5789_v23 = vpop.f32.mrf.mxu1 }
 0xaee   : > { %v7306_v24 = vadd.f32 %v5789_v23, %v7207_v8 }
 0xaef   : > { %v3804_v25 = vpop.f32.mrf.mxu1 }
 0xaf0   : > { %v7309_v26 = vadd.f32 %v3804_v25, %v7209_v7 }
 0xaf1   : > { %v5792_v27 = vpop.f32.mrf.mxu1 }
 0xaf2   : > { %v7312_v28 = vadd.f32 %v5792_v27, %v7211_v18 }
 0xaf3   : > { %v3817_v29 = vpop.f32.mrf.mxu1 }
 0xaf4   : > { %v7315_v4 = vadd.f32 %v3817_v29, %v7213_v13 }
 0xaf5   : > { %v5793_v30 = vpop.f32.mrf.mxu1 }
 0xaf6   : > { %v7320_v31 = vadd.f32 %v5793_v30, %v7215_v15 }
 0xaf7   : > { %v3820_v8 = vpop.f32.mrf.mxu1 }
 0xaf8   : > { %v7322_v32 = vadd.f32 %v3820_v8, %v3269_v5 }
 0xb09   : > { %v5828_v7 = vpop.f32.mrf.mxu1 }
 0xb0a   : > { %v4106_v13 = vsel %vm2437_vm3, %v5828_v7, -inf }
 0xb0b   : > { %v4069_v35 = vpop.f32.mrf.mxu1 }
 0xb0c   : > { %v4100_v39 = vsel %vm2437_vm3, %v4069_v35, -inf }
 0xb0d   : > { %4101 = vmax.xlane.f32.xlu0 %v4100_v39  ;;  %v5829_v18 = vpop.f32.mrf.mxu1 }
 0xb0e   : > { %v4109_v15 = vsel %vm2437_vm3, %v5829_v18, -inf }
 0xb0f   : > { %v4072_v41 = vpop.f32.mrf.mxu1 }
 0xb10   : > { %v4103_v37 = vsel %vm2437_vm3, %v4072_v41, -inf }
 0xb11   : > { %4107 = vmax.xlane.f32.xlu0 %v4106_v13  ;;  %4104 = vmax.xlane.f32.xlu1 %v4103_v37  ;;  %v5832_v20 = vpop.f32.mrf.mxu1 }
 0xb12   : > { %v4118_v50 = vsel %vm2437_vm3, %v5832_v20, -inf }
 0xb13   : > { %v4085_v43 = vpop.f32.mrf.mxu1 }
 0xb14   : > { %v4112_v38 = vsel %vm2437_vm3, %v4085_v43, -inf }
 0xb15   : > { %4110 = vmax.xlane.f32.xlu1 %v4109_v15  ;;  %4113 = vmax.xlane.f32.xlu0 %v4112_v38  ;;  %v5833_v47 = vpop.f32.mrf.mxu1 }
 0xb16   : > { %v4121_v40 = vsel %vm2437_vm3, %v5833_v47, -inf }
 0xb17   : > { %v4088_v55 = vpop.f32.mrf.mxu1 }
 0xb18   : > { %v4115_v45 = vsel %vm2437_vm3, %v4088_v55, -inf }
 0xb19   : > { %4119 = vmax.xlane.f32.xlu0 %v4118_v50  ;;  %4116 = vmax.xlane.f32.xlu1 %v4115_v45 }
 0xb1d   : > { %4122 = vmax.xlane.f32.xlu1 %v4121_v40 }
 0xb96   : > { %v4102_v44 = vpop.xlane.xlu0 %4101 }
 0xb97   : > { %v4124_v46 = vsub.f32 %v4069_v35, %v4102_v44 }
 0xb99   : > { %v4132_v49 = vmul.f32 1.442695, %v4124_v46 }
 0xb9a   : > { %v4108_v36 = vpop.xlane.xlu0 %4107  ;;  %v4105_v34 = vpop.xlane.xlu1 %4104 }
 0xb9b   : > { %6169 = vpow2.f32 %v4132_v49  ;;  %v4126_v33 = vsub.f32 %v5828_v7, %v4108_v36  ;;  %v4125_v42 = vsub.f32 %v4072_v41, %v4105_v34  ;;  %v6070_v41 = vld [vmem:[%s7449_s10 + $0x18] sm:$0xff]  }
 0xb9c   : > { %5850 = vmatprep.subr.bf16.mxu1 %v6070_v41 }
 0xb9d   : > { %v4136_v51 = vmul.f32 1.442695, %v4126_v33  ;;  %v4134_v54 = vmul.f32 1.442695, %v4125_v42  ;;  %5851 = vmatpush3.bf16.msra.mxu1 %v6070_v41  ;;  %v4407_v41 = vld [vmem:[%s6432_s29 + $0x30] sm:$0xff] }
 0xb9e   : > { %v4111_v57 = vpop.xlane.xlu1 %4110  ;;  %v4114_v58 = vpop.xlane.xlu0 %4113 }
 0xb9f   : > { %6171 = vpow2.f32 %v4136_v51  ;;  %v4127_v60 = vsub.f32 %v5829_v18, %v4111_v57  ;;  %v4128_v61 = vsub.f32 %v4085_v43, %v4114_v58 }
 0xba0   : > { %6173 = vpow2.f32 %v4134_v54 }
 0xba1   : > { %v4138_v62 = vmul.f32 1.442695, %v4127_v60  ;;  %v4140_v63 = vmul.f32 1.442695, %v4128_v61 }
 0xba2   : > { %v4120_v48 = vpop.xlane.xlu0 %4119  ;;  %v4117_v0 = vpop.xlane.xlu1 %4116 }
 0xba3   : > { %6175 = vpow2.f32 %v4138_v62  ;;  %v4130_v56 = vsub.f32 %v5832_v20, %v4120_v48  ;;  %v4129_v1 = vsub.f32 %v4088_v55, %v4117_v0 }
 0xba4   : > { %6177 = vpow2.f32 %v4140_v63 }
 0xba5   : > { %v4144_v2 = vmul.f32 1.442695, %v4130_v56  ;;  %v4142_v3 = vmul.f32 1.442695, %v4129_v1 }
 0xba6   : > { %v4123_v9 = vpop.xlane.xlu1 %4122 }
 0xba7   : > { %6179 = vpow2.f32 %v4144_v2  ;;  %v4131_v11 = vsub.f32 %v5833_v47, %v4123_v9 }
 0xba8   : > { %v6170_v6 = vpop.eup %6169  ;;  %6181 = vpow2.f32 %v4142_v3 }
 0xba9   : > { %v4146_v10 = vmul.f32 1.442695, %v4131_v11  ;;  %v4148_v16 = vsel %vm2437_vm3, %v6170_v6, 0.0 }
 0xbaa   : > { %4149 = vadd.xlane.f32.xlu0 %v4148_v16 }
 0xbab   : > { %6183 = vpow2.f32 %v4146_v10 }
 0xbac   : > { %v6172_v59 = vpop.eup %6171 }
 0xbad   : > { %v6174_v52 = vpop.eup %6173  ;;  %v4154_v17 = vsel %vm2437_vm3, %v6172_v59, 0.0 }
 0xbae   : > { %4155 = vadd.xlane.f32.xlu0 %v4154_v17  ;;  %v4151_v19 = vsel %vm2437_vm3, %v6174_v52, 0.0  ;;  %v4172_v12 = vpack.c.bf16 %v6174_v52, %v6170_v6  ;;  %v4403_v17 = vld [vmem:[%s6432_s29 + $0x10] sm:$0xff] }
 0xbaf   : > { %4152 = vadd.xlane.f32.xlu1 %v4151_v19 }
 0xbb0   : > { %v6176_v53 = vpop.eup %6175  ;;  %5842 = vmatprep.mubr.msk.bf16.mxu0 %vm2437_vm3, %v4172_v12 }
 0xbb1   : > { %v6178_v21 = vpop.eup %6177  ;;  %v4173_v23 = vpack.c.bf16 %v6176_v53, %v6172_v59  ;;  %v4157_v25 = vsel %vm2437_vm3, %v6176_v53, 0.0  ;;  %v4969_v59 = vld [vmem:[%s7450_s11] ss:$0 sm:$0xff] }
 0xbb2   : > { %v4160_v27 = vsel %vm2437_vm3, %v6178_v21, 0.0 }
 0xbb3   : > { %4161 = vadd.xlane.f32.xlu0 %v4160_v27  ;;  %4158 = vadd.xlane.f32.xlu1 %v4157_v25 }
 0xbb4   : > { %v6180_v29 = vpop.eup %6179  ;;  %5843 = vmatmul.mubr.msk.bf16.vlgmr.msra.gmra.mxu0 %vm2437_vm3, %v4173_v23 }
 0xbb5   : > { %v6182_v30 = vpop.eup %6181  ;;  %v4166_v5 = vsel %vm2437_vm3, %v6180_v29, 0.0 }
 0xbb6   : > { %v4163_v8 = vsel %vm2437_vm3, %v6182_v30, 0.0  ;;  %v4174_v7 = vpack.c.bf16 %v6182_v30, %v6178_v21  ;;  %v4401_v21 = vld [vmem:[%s6432_s29] sm:$0xff]  ;;  %v4404_v30 = vld [vmem:[%s6432_s29 + $0x18] sm:$0xff] }
 0xbb7   : > { %4167 = vadd.xlane.f32.xlu0 %v4166_v5  ;;  %4164 = vadd.xlane.f32.xlu1 %v4163_v8 }
 0xbb8   : > { %v6184_v35 = vpop.eup %6183  ;;  %5846 = vmatprep.mubr.msk.bf16.mxu0 %vm2437_vm3, %v4174_v7  ;;  %v4402_v7 = vld [vmem:[%s6432_s29 + $0x8] sm:$0xff] }
 0xbb9   : > { %v4169_v39 = vsel %vm2437_vm3, %v6184_v35, 0.0  ;;  %v4175_v18 = vpack.c.bf16 %v6184_v35, %v6180_v29 }
 0xbbb   : > { %4170 = vadd.xlane.f32.xlu1 %v4169_v39 }
 0xbbc   : > { %5847 = vmatmul.mubr.msk.bf16.gmra.mxu0 %vm2437_vm3, %v4175_v18 }
 0xc33   : > { %v4150_v37 = vpop.xlane.xlu0 %4149 }
 0xc34   : > { %6185 = vrcp.f32 %v4150_v37 }
 0xc37   : > { %v4156_v43 = vpop.xlane.xlu0 %4155 }
 0xc38   : > { %v4153_v13 = vpop.xlane.xlu1 %4152 }
 0xc3c   : > { %v4159_v20 = vpop.xlane.xlu1 %4158  ;;  %v4162_v38 = vpop.xlane.xlu0 %4161 }
 0xc3d   : > { %6187 = vrcp.f32 %v4159_v20 }
 0xc3e   : > { %6189 = vrcp.f32 %v4153_v13 }
 0xc3f   : > { %6191 = vrcp.f32 %v4156_v43 }
 0xc40   : > { %v4165_v15 = vpop.xlane.xlu1 %4164  ;;  %6193 = vrcp.f32 %v4162_v38  ;;  %v4168_v55 = vpop.xlane.xlu0 %4167 }
 0xc41   : > { %v6186_v40 = vpop.eup %6185 }
 0xc44   : > { %v4171_v47 = vpop.xlane.xlu1 %4170 }
 0xc45   : > { %6195 = vrcp.f32 %v4171_v47 }
 0xc46   : > { %6197 = vrcp.f32 %v4165_v15 }
 0xc47   : > { %6199 = vrcp.f32 %v4168_v55 }
 0xc4a   : > { %v6188_v46 = vpop.eup %6187 }
 0xc4b   : > { %v6190_v49 = vpop.eup %6189 }
 0xc4c   : > { %v6192_v33 = vpop.eup %6191 }
 0xc4d   : > { %v6194_v62 = vpop.eup %6193 }
 0xc52   : > { %v6196_v48 = vpop.eup %6195 }
 0xc53   : > { %v6198_v0 = vpop.eup %6197 }
 0xc54   : > { %v6200_v2 = vpop.eup %6199 }
 0xc74   : > { %v5844_v50 = vpop.f32.mrf.mxu0 }
 0xc75   : > { %v4296_v54 = vmul.f32 %v6192_v33, %v5844_v50 }
 0xc76   : > { %v4255_v45 = vpop.f32.mrf.mxu0 }
 0xc77   : > { %v4294_v42 = vmul.f32 %v6186_v40, %v4255_v45 }
 0xc78   : > { %v5845_v44 = vpop.f32.mrf.mxu0 }
 0xc79   : > { %v4297_v36 = vmul.f32 %v6188_v46, %v5845_v44 }
 0xc7a   : > { %v4258_v34 = vpop.f32.mrf.mxu0 }
 0xc7b   : > { %v4295_v51 = vmul.f32 %v6190_v49, %v4258_v34  ;;  %v4303_v60 = vpack.c.bf16 %v4297_v36, %v4296_v54 }
 0xc7c   : > { %v5848_v57 = vpop.f32.mrf.mxu0 }
 0xc7d   : > { %v4302_v58 = vpack.c.bf16 %v4295_v51, %v4294_v42  ;;  %v4300_v11 = vmul.f32 %v6200_v2, %v5848_v57 }
 0xc7e   : > { %v4271_v61 = vpop.f32.mrf.mxu0 }
 0xc7f   : > { %5852 = vmatprep.mubr.msk.bf16.mxu1 %vm2347_vm2, %v4302_v58  ;;  %v4298_v3 = vmul.f32 %v6194_v62, %v4271_v61 }
 0xc80   : > { %v5849_v63 = vpop.f32.mrf.mxu0  ;;  %5853 = vmatmul.mubr.msk.bf16.vlgmr.msra.gmra.mxu1 %vm2347_vm2, %v4303_v60 }
 0xc81   : > { %v4301_v56 = vmul.f32 %v6196_v48, %v5849_v63 }
 0xc82   : > { %v4274_v1 = vpop.f32.mrf.mxu0 }
 0xc83   : > { %v4299_v9 = vmul.f32 %v6198_v0, %v4274_v1  ;;  %v4305_v10 = vpack.c.bf16 %v4301_v56, %v4300_v11 }
 0xc85   : > { %v4304_v6 = vpack.c.bf16 %v4299_v9, %v4298_v3 }
 0xc87   : > { %5856 = vmatprep.mubr.msk.bf16.mxu1 %vm2347_vm2, %v4304_v6 }
 0xc88   : > { %5857 = vmatmul.mubr.msk.bf16.gmra.mxu1 %vm2347_vm2, %v4305_v10 }
 0xd40   : > { %v5854_v16 = vpop.f32.mrf.mxu1 }
 0xd41   : > { %v4394_v52 = vadd.f32 %v5854_v16, %v7300_v14 }
 0xd42   : > { %v4361_v19 = vpop.f32.mrf.mxu1 }
 0xd43   : > { %v4418_v12 = vadd.f32 %v4969_v59, %v4394_v52  ;;  %v4392_v53 = vadd.f32 %v4361_v19, %v7303_v22 }
 0xd44   : > { %v5855_v23 = vpop.f32.mrf.mxu1 }
 0xd45   : > { %v4426_v25 = vadd.f32 %v4418_v12, %v4403_v17  ;;  %v4416_v27 = vadd.f32 %v4969_v59, %v4392_v53  ;;  %v4395_v29 = vadd.f32 %v5855_v23, %v7306_v24 }
 0xd46   : > { %v4364_v5 = vpop.f32.mrf.mxu1 }
 0xd47   : > { %4434 = vst [vmem:[%s7363_s19 + $0x10] sm:$0xff] %v4426_v25  ;;  %v4424_v14 = vadd.f32 %v4416_v27, %v4401_v21  ;;  %v4419_v8 = vadd.f32 %v4969_v59, %v4395_v29  ;;  %v4393_v22 = vadd.f32 %v4364_v5, %v7309_v26  ;;  %v4405_v26 = vld [vmem:[%s6432_s29 + $0x20] sm:$0xff] }
 0xd48   : > { %v5858_v35 = vpop.f32.mrf.mxu1 }
 0xd49   : > { %4432 = vst [vmem:[%s7363_s19] sm:$0xff] %v4424_v14  ;;  %v4427_v39 = vadd.f32 %v4419_v8, %v4404_v30  ;;  %v4417_v24 = vadd.f32 %v4969_v59, %v4393_v22  ;;  %v4398_v18 = vadd.f32 %v5858_v35, %v7312_v28  ;;  %v4408_v28 = vld [vmem:[%s6432_s29 + $0x38] sm:$0xff] }
 0xd4a   : > { %v4377_v13 = vpop.f32.mrf.mxu1 }
 0xd4b   : > { %4435 = vst [vmem:[%s7363_s19 + $0x18] sm:$0xff] %v4427_v39  ;;  %v4425_v37 = vadd.f32 %v4417_v24, %v4402_v7  ;;  %v4422_v20 = vadd.f32 %v4969_v59, %v4398_v18  ;;  %v4396_v43 = vadd.f32 %v4377_v13, %v7315_v4  ;;  %v4406_v4 = vld [vmem:[%s6432_s29 + $0x28] sm:$0xff]  ;;  %s6205_s29 = scalar_lea.vmem %s7388_s27, 1024 }
 0xd4c   : > { %v5859_v15 = vpop.f32.mrf.mxu1  ;;  %p6206_p12 = scmp.ne.s32.totalorder %s7388_s27, %s6205_s29  ;;  %p6213_p2 = scmp.lt.s32.totalorder %s6211_s18, %s6205_s29 }
 0xd4d   : > { %4433 = vst [vmem:[%s7363_s19 + $0x8] sm:$0xff] %v4425_v37  ;;  %v4430_v38 = vadd.f32 %v4422_v20, %v4407_v41  ;;  %v4420_v47 = vadd.f32 %v4969_v59, %v4396_v43  ;;  %v4399_v55 = vadd.f32 %v5859_v15, %v7320_v31 }
 0xd4e   : > { %v4380_v50 = vpop.f32.mrf.mxu1  ;;  %p6207_p13 = pnand %p6206_p12, %p6393_p4  ;;  %p6214_p3 = por %p6213_p2, %p6212_p1 }
 0xd4f   : > { %4438 = vst [vmem:[%s7363_s19 + $0x30] sm:$0xff] %v4430_v38  ;;  %v4428_v45 = vadd.f32 %v4420_v47, %v4405_v26  ;;  %v4423_v40 = vadd.f32 %v4969_v59, %v4399_v55  ;;  %v4397_v44 = vadd.f32 %v4380_v50, %v7322_v32 }
 0xd50   : > { %p6208_p0 = pneg %p6207_p13 }
 0xd51   : > { %4436 = vst [vmem:[%s7363_s19 + $0x20] sm:$0xff] %v4428_v45  ;;  %v4431_v46 = vadd.f32 %v4423_v40, %v4408_v28  ;;  %v4421_v49 = vadd.f32 %v4969_v59, %v4397_v44 }
 0xd52   : > { %p6215_p5 = pnand %p6214_p3, %p6208_p0 }
 0xd53   : > { %4439 = vst [vmem:[%s7363_s19 + $0x38] sm:$0xff] %v4431_v46  ;;  %v4429_v31 = vadd.f32 %v4421_v49, %v4406_v4 }
 0xd55   : > { %4437 = vst [vmem:[%s7363_s19 + $0x28] sm:$0xff] %v4429_v31 }
 0xd56   : > { %6218 = shalt.err (!%p6215_p5)
}
 0xd57   : > { %s6219_s30 = scalar_lea.hbm %s7386_s1, 1024  ;;  %s6223_s28 = scalar_lea.hbm %s7451_s12, 2048 }
 0xd58   : > { %p6220_p6 = scmp.ne.s32.totalorder %s7386_s1, %s6219_s30  ;;  %p6224_p10 = scmp.lt.s32.totalorder %s7386_s1, %s7451_s12 }
 0xd59   : > { %p6225_p11 = scmp.lt.s32.totalorder %s6223_s28, %s6219_s30 }
 0xd5a   : > { %p6221_p7 = pnand %p6220_p6, %p6393_p4 }
 0xd5b   : > { %p6226_p12 = por %p6225_p11, %p6224_p10 }
 0xd5c   : > { %p6222_p9 = pneg %p6221_p7 }
 0xd5e   : > { %p6227_p13 = pnand %p6226_p12, %p6222_p9 }
 0xd60   : > { %6230 = shalt.err (!%p6227_p13)
}
 0xd61   : > { %s6286_s29 = smov 128   ;;  %s6287_s17 = smov 8  }
 0xd62   : > { %5876 = dma.vmem_to_hbm [thread:$0]  (%p6393_p4), %s7388_s27, 1024, %s7386_s1, %s7394_s24, %s6286_s29, %s6286_s29, %s6287_s17  }
 0xd63 PF: > { %p5882_p0 = scmp.ge.s32.totalorder %s6281_s26, 2  ;;  %s4471_s18 = sand.u32 1, %s6261_s21  }
 0xd64   : > { %s4472_s30 = scalar_lea.sflag [#allocation6], %s4471_s18 }
 0xd65   : > { %p5879_p1 = pnand %p5882_p0, %p6400_p8 }
 0xd67   : > { %p5880_p2 = pneg %p5879_p1 }
 0xd69   : > { %6256 = dma.done.wait (%p5880_p2), %s4472_s30, 1024  }
 0xd6a   : > { %6258 = vsyncadd (%p5880_p2), %s4472_s30, 4294966272  ;;  %s25_s26 = sadd.s32 1, %s6281_s26   ;;  %s7460_s13 = sld [smem:[#allocation8_spill]] }
 0xd6b   : > { %p22_p3 = scmp.ge.s32.totalorder %s25_s26, 4   ;;  %s7461_s21 = smov %s6265_s22 }
 0xd6c   : > { %s7462_s22 = smov %s6269_s23  ;;  %s7463_s23 = smov %s6406_s16 }
 0xd6d   : > { %s7464_s24 = smov %s6277_s25  ;;  %24 = sbr.rel (!%p22_p3) target bundleno = 7 (0x7), region = 142 }
 0xd70   : > { %s7465_s25 = smov %s7460_s13 }
 0xd72   :  { %4477 = vsyncpa [#allocation6], 1 }
 0xd73   :  { %4479 = vsyncpa [#allocation6 + $0x1], 1 }

</bundles_post_ra>
